<compile_context>
chip_gen: v5e
topology: v5e:2x2
jax: 0.10.0
libtpu: 0.0.40
codegen_flags: <defaults>
</compile_context>

<pallas_src>
import jax
import jax.numpy as jnp
from jax.experimental import pallas as pl
from jax.experimental.pallas import tpu as pltpu

IN_FEATS = 121
F_PAD = 128                  # padded feature width (multiple of 128 lanes)
HEAD = 64                    # per-head output features
NUM_HEADS = 3                # 192 = 3 * 64 in the reference layer widths
HID = NUM_HEADS * HEAD       # 192
LEAKY_SLOPE = 0.2
NEG_INF = -1e9


def toy_gat_kernel(adj_ref, x_ref, w1_ref, w2_ref, w3_ref, aux_ref, o_ref):
    Bt, N, _ = x_ref.shape

    # Additive adjacency mask (0 / -1e9), precomputed bf16 in the wrapper,
    # widened once and reused by all three layers.
    adj_bias = adj_ref[...].astype(jnp.float32)                     # [Bt, N, N]

    def gat(h_bf16, w_ref, layer, average):
        # (1) Fused 3-head projection: one (Bt*N, Fin) @ (Fin, 192) MXU pass,
        #     bf16 operands with f32 accumulation.  Kept fused: per-head column
        #     splits would triple the vmatmul pushes for no lane-relayout saving
        #     worth that at b_tile >= 64.
        z = jnp.dot(h_bf16, w_ref[...], preferred_element_type=jnp.float32)
        z = z.reshape(Bt, N, HID)

        lay = aux_ref[layer]                                        # [9, 64] f32
        head_outs = []
        for hh in range(NUM_HEADS):
            zh = z[:, :, hh * HEAD:(hh + 1) * HEAD]                 # [Bt, N, 64]
            a_src = lay[hh]                                         # [64]
            a_dst = lay[NUM_HEADS + hh]                             # [64]
            bias = lay[2 * NUM_HEADS + hh]                          # [64]

            # Attention logits: tiny dots -> VPU multiply + lane reduce (no MXU).
            src = jnp.sum(zh * a_src[None, None, :], axis=-1)       # [Bt, N]
            dst = jnp.sum(zh * a_dst[None, None, :], axis=-1)       # [Bt, N]
            e = src[:, :, None] + dst[:, None, :]                   # [Bt, N, N]
            e = jnp.where(e > 0.0, e, LEAKY_SLOPE * e)              # LeakyReLU(0.2)
            e = e + adj_bias
            # Softmax over neighbours (EUP exp + approx reciprocal).
            e = e - jnp.max(e, axis=-1, keepdims=True)
            p = jnp.exp(e)
            alpha = p * pl.reciprocal(jnp.sum(p, axis=-1, keepdims=True),
                                      approx=True)                  # [Bt, N, N]

            # (2) Neighbour aggregation.  At N=8 a batched MXU einsum would cost
            #     Bt pushes per head per layer (~3x the projection) -> keep it on
            #     the VPU as broadcast-MACs; for large N switch to the MXU.
            if N <= 16:
                acc = jnp.zeros((Bt, N, HEAD), jnp.float32)
                for j in range(N):
                    acc = acc + alpha[:, :, j:j + 1] * zh[:, j:j + 1, :]
            else:
                acc = jnp.einsum('bij,bjf->bif',
                                 alpha.astype(jnp.bfloat16),
                                 zh.astype(jnp.bfloat16),
                                 preferred_element_type=jnp.float32)
            head_outs.append(acc + bias[None, None, :])

        if average:                                                 # gat3
            out = (head_outs[0] + head_outs[1] + head_outs[2]) * jnp.float32(1.0 / NUM_HEADS)
        else:                                                       # gat1 / gat2
            out = jnp.concatenate(head_outs, axis=-1)               # [Bt, N, 192]
        return jnp.maximum(out, 0.0)                                # fused ReLU

    h = gat(x_ref[...].reshape(Bt * N, F_PAD), w1_ref, 0, False)    # [Bt, N, 192]
    h = gat(h.reshape(Bt * N, HID).astype(jnp.bfloat16), w2_ref, 1, False)
    h = gat(h.reshape(Bt * N, HID).astype(jnp.bfloat16), w3_ref, 2, True)   # [Bt,N,64]

    # Global max pooling over nodes; the 1-wide Linear runs in the wrapper so the
    # store here is 64 lanes wide instead of a width-1 masked vst.
    o_ref[...] = jnp.max(h, axis=1).astype(o_ref.dtype)             # [Bt, 64]


def _choose_b_tile(B, N, requested):
    if requested is not None:
        bt = requested
    else:
        # Target >= 512 MXU rows per grid step (row fill on v5e/v6e/v7x MXUs),
        # capped by a rough per-element VMEM footprint against a 16 MiB budget
        # (re-derived per N so large-N reuse stays inside v7x's 64 MiB VMEM).
        target = max(8, -(-512 // N))
        per_elem = (2 * N * F_PAD * 2        # x tile bf16, double-buffered
                    + 2 * N * N * 2          # adjacency bias bf16, double-buffered
                    + 6 * N * HID * 4        # z / h intermediates + bf16 casts
                    + 9 * N * N * 4          # e / p / alpha (live heads)
                    + 3 * N * HEAD * 4       # per-head accumulators
                    + 2 * HEAD * 4)          # pooled output
        cap = max(8, (16 * 1024 * 1024) // per_elem)
        bt = min(target, cap)
    if B <= bt:
        return B                              # single tile; block == full batch
    return max(8, (bt // 8) * 8)              # multiple of 8 so blocks tile cleanly


def toy_gat_forward(A, x, masks, params, *, b_tile=None):
    del masks                        # reference forward() never uses `masks`
    B, N, F = x.shape
    assert F == IN_FEATS

    # Wrapper-side dtype/layout prep: pad 121 -> 128 features, cast the heavy
    # inputs and weights to bf16 (halves DMA bytes; A is 0/1 so exact).
    x_p = jnp.pad(x.astype(jnp.float32),
                  ((0, 0), (0, 0), (0, F_PAD - F))).astype(jnp.bfloat16)
    adj_bias = jnp.where(A > 0.0, 0.0, NEG_INF).astype(jnp.bfloat16)
    w1_p = jnp.pad(params['w1'].astype(jnp.float32),
                   ((0, F_PAD - F), (0, 0))).astype(jnp.bfloat16)
    w2 = params['w2'].astype(jnp.bfloat16)
    w3 = params['w3'].astype(jnp.bfloat16)

    # Pack the 9 tiny attention/bias operands into one (3, 9, 64) array:
    # layer l -> rows [0:3] = a_src heads, [3:6] = a_dst heads, [6:9] = bias heads.
    aux = jnp.stack([
        jnp.concatenate([params['a1_src'], params['a1_dst'], params['b1']], axis=0),
        jnp.concatenate([params['a2_src'], params['a2_dst'], params['b2']], axis=0),
        jnp.concatenate([params['a3_src'], params['a3_dst'], params['b3']], axis=0),
    ], axis=0).astype(jnp.float32)                                  # [3, 9, 64]

    bt = _choose_b_tile(B, N, b_tile)
    B_pad = -(-B // bt) * bt
    if B_pad != B:
        pad = B_pad - B
        x_p = jnp.pad(x_p, ((0, pad), (0, 0), (0, 0)))              # zero graphs,
        adj_bias = jnp.pad(adj_bias, ((0, pad), (0, 0), (0, 0)))    # discarded below
    grid = (B_pad // bt,)

    def batch_spec(*tail):
        zeros = (0,) * len(tail)
        return pl.BlockSpec((bt,) + tail, lambda i, z=zeros: (i,) + z)

    def full_spec(arr):
        zeros = (0,) * arr.ndim
        return pl.BlockSpec(arr.shape, lambda i, z=zeros: z)

    in_specs = [batch_spec(N, N), batch_spec(N, F_PAD),
                full_spec(w1_p), full_spec(w2), full_spec(w3), full_spec(aux)]

    args = (adj_bias, x_p, w1_p, w2, w3, aux)
    flops = int(2 * B_pad * N * (F_PAD * HID + 2 * HID * HID)       # projections
                + 3 * NUM_HEADS * B_pad * (2 * N * N * HEAD         # aggregation
                                           + 4 * N * HEAD           # attn logits
                                           + 6 * N * N))            # mask/softmax
    transcendentals = int(3 * NUM_HEADS * B_pad * N * N)
    bytes_accessed = int(sum(a.size * a.dtype.itemsize for a in args)
                         + B_pad * HEAD * 4)

    pooled = pl.pallas_call(
        toy_gat_kernel,
        out_shape=jax.ShapeDtypeStruct((B_pad, HEAD), jnp.float32),
        grid=grid,
        in_specs=in_specs,
        out_specs=pl.BlockSpec((bt, HEAD), lambda i: (i, 0)),
        compiler_params=pltpu.CompilerParams(
            dimension_semantics=("parallel",),
            vmem_limit_bytes=32 * 1024 * 1024),
        cost_estimate=pl.CostEstimate(flops=flops,
                                      transcendentals=transcendentals,
                                      bytes_accessed=bytes_accessed),
    )(*args)

    # Final Linear(64, 1) + bias on the pooled features (tiny, done in XLA so the
    # kernel never has to emit a width-1 masked store).
    out = jnp.dot(pooled[:B], params['wl'].astype(jnp.float32).T)
    out = out + params['bl'].astype(jnp.float32)
    return out


if __name__ == "__main__":
    key = jax.random.PRNGKey(0)
    ks = jax.random.split(key, 8)

    B, N = 2, 8
    # 0/1 adjacency with self-loops (GAT attends only where A_ij > 0).
    A = (jax.random.uniform(ks[0], (B, N, N)) > 0.5).astype(jnp.float32)
    A = jnp.clip(A + jnp.eye(N, dtype=jnp.float32)[None], 0.0, 1.0)
    x = jax.random.normal(ks[1], (B, N, IN_FEATS), jnp.float32)
    masks = jnp.ones((B, N, IN_FEATS), jnp.float32)   # unused by forward()

    def gat_init(k, fin):
        kw, k1, k2, kb = jax.random.split(k, 4)
        bound = 1.0 / jnp.sqrt(jnp.float32(fin))
        return (jax.random.uniform(kw, (fin, HID), jnp.float32, -bound, bound),
                jax.random.uniform(k1, (NUM_HEADS, HEAD), jnp.float32, -bound, bound),
                jax.random.uniform(k2, (NUM_HEADS, HEAD), jnp.float32, -bound, bound),
                jax.random.uniform(kb, (NUM_HEADS, HEAD), jnp.float32, -bound, bound))

    w1, a1s, a1d, b1 = gat_init(ks[2], IN_FEATS)
    w2, a2s, a2d, b2 = gat_init(ks[3], HID)
    w3, a3s, a3d, b3 = gat_init(ks[4], HID)
    lb = 1.0 / jnp.sqrt(jnp.float32(HEAD))
    wl = jax.random.uniform(ks[5], (1, HEAD), jnp.float32, -lb, lb)
    bl = jax.random.uniform(ks[6], (1, 1), jnp.float32, -lb, lb)

    params = dict(w1=w1, a1_src=a1s, a1_dst=a1d, b1=b1,
                  w2=w2, a2_src=a2s, a2_dst=a2d, b2=b2,
                  w3=w3, a3_src=a3s, a3_dst=a3d, b3=b3,
                  wl=wl, bl=bl)

    out = toy_gat_forward(A, x, masks, params)
    out = jax.block_until_ready(out)
    assert out.shape == (B, 1)
    print("KERNEL_OK")
</pallas_src>

<mosaic_0001>
module attributes {stable_mosaic.version = 11 : i64} {
  func.func @toy_gat_kernel(%arg0: i32, %arg1: memref<2x8x8xbf16, #tpu.memory_space<vmem>>, %arg2: memref<2x8x128xbf16, #tpu.memory_space<vmem>>, %arg3: memref<128x192xbf16, #tpu.memory_space<vmem>>, %arg4: memref<192x192xbf16, #tpu.memory_space<vmem>>, %arg5: memref<192x192xbf16, #tpu.memory_space<vmem>>, %arg6: memref<3x9x64xf32, #tpu.memory_space<vmem>>, %arg7: memref<2x64xf32, #tpu.memory_space<vmem>>) attributes {dimension_semantics = [#tpu.dimension_semantics<parallel>], iteration_bounds = array<i64: 1>, scalar_prefetch = 0 : i64, scratch_operands = 0 : i64, tpu.core_type = #tpu.core_type<tc>, window_params = [{transform_indices = @transform_0, window_bounds = array<i64: 2, 8, 8>}, {transform_indices = @transform_1, window_bounds = array<i64: 2, 8, 128>}, {pipeline_mode = #tpu.pipeline_mode<synchronous>, transform_indices = @transform_2, window_bounds = array<i64: 128, 192>}, {pipeline_mode = #tpu.pipeline_mode<synchronous>, transform_indices = @transform_3, window_bounds = array<i64: 192, 192>}, {pipeline_mode = #tpu.pipeline_mode<synchronous>, transform_indices = @transform_4, window_bounds = array<i64: 192, 192>}, {pipeline_mode = #tpu.pipeline_mode<synchronous>, transform_indices = @transform_5, window_bounds = array<i64: 3, 9, 64>}, {transform_indices = @transform_6, window_bounds = array<i64: 2, 64>}]} {
    %c0 = arith.constant 0 : index
    %c0_0 = arith.constant 0 : index
    %c0_1 = arith.constant 0 : index
    %0 = vector.load %arg1[%c0, %c0_0, %c0_1] : memref<2x8x8xbf16, #tpu.memory_space<vmem>>, vector<2x8x8xbf16>
    %1 = arith.extf %0 : vector<2x8x8xbf16> to vector<2x8x8xf32>
    %c0_2 = arith.constant 0 : index
    %c0_3 = arith.constant 0 : index
    %c0_4 = arith.constant 0 : index
    %2 = vector.load %arg2[%c0_2, %c0_3, %c0_4] : memref<2x8x128xbf16, #tpu.memory_space<vmem>>, vector<2x8x128xbf16>
    %3 = vector.shape_cast %2 : vector<2x8x128xbf16> to vector<16x128xbf16>
    %c0_5 = arith.constant 0 : index
    %c0_6 = arith.constant 0 : index
    %4 = vector.load %arg3[%c0_5, %c0_6] : memref<128x192xbf16, #tpu.memory_space<vmem>>, vector<128x192xbf16>
    %cst = arith.constant dense<0.000000e+00> : vector<16x192xf32>
    %5 = tpu.matmul %3, %4, %cst {dimension_numbers = #tpu.dot_dimension_numbers<[1], [0], [0], [1], [0, 0, 1, 1], [], []>} : vector<16x128xbf16>, vector<128x192xbf16>, vector<16x192xf32> -> vector<16x192xf32>
    %6 = vector.shape_cast %5 : vector<16x192xf32> to vector<2x8x192xf32>
    %c0_7 = arith.constant 0 : index
    %c0_8 = arith.constant 0 : index
    %c0_9 = arith.constant 0 : index
    %7 = vector.load %arg6[%c0_7, %c0_8, %c0_9] : memref<3x9x64xf32, #tpu.memory_space<vmem>>, vector<1x9x64xf32>
    %8 = vector.shape_cast %7 : vector<1x9x64xf32> to vector<9x64xf32>
    %9 = vector.extract_strided_slice %6 {offsets = [0, 0, 0], sizes = [2, 8, 64], strides = [1, 1, 1]} : vector<2x8x192xf32> to vector<2x8x64xf32>
    %10 = vector.extract_strided_slice %8 {offsets = [0, 0], sizes = [1, 64], strides = [1, 1]} : vector<9x64xf32> to vector<1x64xf32>
    %11 = vector.shape_cast %10 : vector<1x64xf32> to vector<64xf32>
    %12 = vector.extract_strided_slice %8 {offsets = [3, 0], sizes = [1, 64], strides = [1, 1]} : vector<9x64xf32> to vector<1x64xf32>
    %13 = vector.shape_cast %12 : vector<1x64xf32> to vector<64xf32>
    %14 = vector.extract_strided_slice %8 {offsets = [6, 0], sizes = [1, 64], strides = [1, 1]} : vector<9x64xf32> to vector<1x64xf32>
    %15 = vector.shape_cast %14 : vector<1x64xf32> to vector<64xf32>
    %16 = vector.shape_cast %11 : vector<64xf32> to vector<1x1x64xf32>
    %17 = vector.broadcast %16 : vector<1x1x64xf32> to vector<2x8x64xf32>
    %18 = arith.mulf %9, %17 : vector<2x8x64xf32>
    %cst_10 = arith.constant dense<0.000000e+00> : vector<2x8xf32>
    %19 = vector.multi_reduction <add>, %18, %cst_10 [2] : vector<2x8x64xf32> to vector<2x8xf32>
    %20 = vector.shape_cast %13 : vector<64xf32> to vector<1x1x64xf32>
    %21 = vector.broadcast %20 : vector<1x1x64xf32> to vector<2x8x64xf32>
    %22 = arith.mulf %9, %21 : vector<2x8x64xf32>
    %cst_11 = arith.constant dense<0.000000e+00> : vector<2x8xf32>
    %23 = vector.multi_reduction <add>, %22, %cst_11 [2] : vector<2x8x64xf32> to vector<2x8xf32>
    %24 = vector.shape_cast %19 : vector<2x8xf32> to vector<2x8x1xf32>
    %25 = vector.shape_cast %23 : vector<2x8xf32> to vector<2x1x8xf32>
    %26 = vector.broadcast %24 : vector<2x8x1xf32> to vector<2x8x8xf32>
    %27 = vector.broadcast %25 : vector<2x1x8xf32> to vector<2x8x8xf32>
    %28 = arith.addf %26, %27 : vector<2x8x8xf32>
    %cst_12 = arith.constant 0.000000e+00 : f32
    %29 = vector.broadcast %cst_12 : f32 to vector<2x8x8xf32>
    %30 = arith.cmpf ogt, %28, %29 : vector<2x8x8xf32>
    %cst_13 = arith.constant 2.000000e-01 : f32
    %31 = vector.broadcast %cst_13 : f32 to vector<2x8x8xf32>
    %32 = arith.mulf %31, %28 : vector<2x8x8xf32>
    %33 = arith.select %30, %28, %32 : vector<2x8x8xi1>, vector<2x8x8xf32>
    %34 = arith.addf %33, %1 : vector<2x8x8xf32>
    %cst_14 = arith.constant dense<0xFF800000> : vector<2x8xf32>
    %35 = vector.multi_reduction <maximumf>, %34, %cst_14 [2] : vector<2x8x8xf32> to vector<2x8xf32>
    %36 = vector.shape_cast %35 : vector<2x8xf32> to vector<2x8x1xf32>
    %37 = vector.broadcast %36 : vector<2x8x1xf32> to vector<2x8x8xf32>
    %38 = arith.subf %34, %37 : vector<2x8x8xf32>
    %39 = math.exp %38 : vector<2x8x8xf32>
    %cst_15 = arith.constant dense<0.000000e+00> : vector<2x8xf32>
    %40 = vector.multi_reduction <add>, %39, %cst_15 [2] : vector<2x8x8xf32> to vector<2x8xf32>
    %41 = vector.shape_cast %40 : vector<2x8xf32> to vector<2x8x1xf32>
    %42 = tpu.reciprocal %41 {approx = true} : vector<2x8x1xf32> -> vector<2x8x1xf32>
    %43 = vector.broadcast %42 : vector<2x8x1xf32> to vector<2x8x8xf32>
    %44 = arith.mulf %39, %43 : vector<2x8x8xf32>
    %cst_16 = arith.constant 0.000000e+00 : f32
    %45 = vector.broadcast %cst_16 : f32 to vector<2x8x64xf32>
    %46 = vector.extract_strided_slice %44 {offsets = [0, 0, 0], sizes = [2, 8, 1], strides = [1, 1, 1]} : vector<2x8x8xf32> to vector<2x8x1xf32>
    %47 = vector.extract_strided_slice %9 {offsets = [0, 0, 0], sizes = [2, 1, 64], strides = [1, 1, 1]} : vector<2x8x64xf32> to vector<2x1x64xf32>
    %48 = vector.broadcast %46 : vector<2x8x1xf32> to vector<2x8x64xf32>
    %49 = vector.broadcast %47 : vector<2x1x64xf32> to vector<2x8x64xf32>
    %50 = arith.mulf %48, %49 : vector<2x8x64xf32>
    %51 = arith.addf %45, %50 : vector<2x8x64xf32>
    %52 = vector.extract_strided_slice %44 {offsets = [0, 0, 1], sizes = [2, 8, 1], strides = [1, 1, 1]} : vector<2x8x8xf32> to vector<2x8x1xf32>
    %53 = vector.extract_strided_slice %9 {offsets = [0, 1, 0], sizes = [2, 1, 64], strides = [1, 1, 1]} : vector<2x8x64xf32> to vector<2x1x64xf32>
    %54 = vector.broadcast %52 : vector<2x8x1xf32> to vector<2x8x64xf32>
    %55 = vector.broadcast %53 : vector<2x1x64xf32> to vector<2x8x64xf32>
    %56 = arith.mulf %54, %55 : vector<2x8x64xf32>
    %57 = arith.addf %51, %56 : vector<2x8x64xf32>
    %58 = vector.extract_strided_slice %44 {offsets = [0, 0, 2], sizes = [2, 8, 1], strides = [1, 1, 1]} : vector<2x8x8xf32> to vector<2x8x1xf32>
    %59 = vector.extract_strided_slice %9 {offsets = [0, 2, 0], sizes = [2, 1, 64], strides = [1, 1, 1]} : vector<2x8x64xf32> to vector<2x1x64xf32>
    %60 = vector.broadcast %58 : vector<2x8x1xf32> to vector<2x8x64xf32>
    %61 = vector.broadcast %59 : vector<2x1x64xf32> to vector<2x8x64xf32>
    %62 = arith.mulf %60, %61 : vector<2x8x64xf32>
    %63 = arith.addf %57, %62 : vector<2x8x64xf32>
    %64 = vector.extract_strided_slice %44 {offsets = [0, 0, 3], sizes = [2, 8, 1], strides = [1, 1, 1]} : vector<2x8x8xf32> to vector<2x8x1xf32>
    %65 = vector.extract_strided_slice %9 {offsets = [0, 3, 0], sizes = [2, 1, 64], strides = [1, 1, 1]} : vector<2x8x64xf32> to vector<2x1x64xf32>
    %66 = vector.broadcast %64 : vector<2x8x1xf32> to vector<2x8x64xf32>
    %67 = vector.broadcast %65 : vector<2x1x64xf32> to vector<2x8x64xf32>
    %68 = arith.mulf %66, %67 : vector<2x8x64xf32>
    %69 = arith.addf %63, %68 : vector<2x8x64xf32>
    %70 = vector.extract_strided_slice %44 {offsets = [0, 0, 4], sizes = [2, 8, 1], strides = [1, 1, 1]} : vector<2x8x8xf32> to vector<2x8x1xf32>
    %71 = vector.extract_strided_slice %9 {offsets = [0, 4, 0], sizes = [2, 1, 64], strides = [1, 1, 1]} : vector<2x8x64xf32> to vector<2x1x64xf32>
    %72 = vector.broadcast %70 : vector<2x8x1xf32> to vector<2x8x64xf32>
    %73 = vector.broadcast %71 : vector<2x1x64xf32> to vector<2x8x64xf32>
    %74 = arith.mulf %72, %73 : vector<2x8x64xf32>
    %75 = arith.addf %69, %74 : vector<2x8x64xf32>
    %76 = vector.extract_strided_slice %44 {offsets = [0, 0, 5], sizes = [2, 8, 1], strides = [1, 1, 1]} : vector<2x8x8xf32> to vector<2x8x1xf32>
    %77 = vector.extract_strided_slice %9 {offsets = [0, 5, 0], sizes = [2, 1, 64], strides = [1, 1, 1]} : vector<2x8x64xf32> to vector<2x1x64xf32>
    %78 = vector.broadcast %76 : vector<2x8x1xf32> to vector<2x8x64xf32>
    %79 = vector.broadcast %77 : vector<2x1x64xf32> to vector<2x8x64xf32>
    %80 = arith.mulf %78, %79 : vector<2x8x64xf32>
    %81 = arith.addf %75, %80 : vector<2x8x64xf32>
    %82 = vector.extract_strided_slice %44 {offsets = [0, 0, 6], sizes = [2, 8, 1], strides = [1, 1, 1]} : vector<2x8x8xf32> to vector<2x8x1xf32>
    %83 = vector.extract_strided_slice %9 {offsets = [0, 6, 0], sizes = [2, 1, 64], strides = [1, 1, 1]} : vector<2x8x64xf32> to vector<2x1x64xf32>
    %84 = vector.broadcast %82 : vector<2x8x1xf32> to vector<2x8x64xf32>
    %85 = vector.broadcast %83 : vector<2x1x64xf32> to vector<2x8x64xf32>
    %86 = arith.mulf %84, %85 : vector<2x8x64xf32>
    %87 = arith.addf %81, %86 : vector<2x8x64xf32>
    %88 = vector.extract_strided_slice %44 {offsets = [0, 0, 7], sizes = [2, 8, 1], strides = [1, 1, 1]} : vector<2x8x8xf32> to vector<2x8x1xf32>
    %89 = vector.extract_strided_slice %9 {offsets = [0, 7, 0], sizes = [2, 1, 64], strides = [1, 1, 1]} : vector<2x8x64xf32> to vector<2x1x64xf32>
    %90 = vector.broadcast %88 : vector<2x8x1xf32> to vector<2x8x64xf32>
    %91 = vector.broadcast %89 : vector<2x1x64xf32> to vector<2x8x64xf32>
    %92 = arith.mulf %90, %91 : vector<2x8x64xf32>
    %93 = arith.addf %87, %92 : vector<2x8x64xf32>
    %94 = vector.shape_cast %15 : vector<64xf32> to vector<1x1x64xf32>
    %95 = vector.broadcast %94 : vector<1x1x64xf32> to vector<2x8x64xf32>
    %96 = arith.addf %93, %95 : vector<2x8x64xf32>
    %97 = vector.extract_strided_slice %6 {offsets = [0, 0, 64], sizes = [2, 8, 64], strides = [1, 1, 1]} : vector<2x8x192xf32> to vector<2x8x64xf32>
    %98 = vector.extract_strided_slice %8 {offsets = [1, 0], sizes = [1, 64], strides = [1, 1]} : vector<9x64xf32> to vector<1x64xf32>
    %99 = vector.shape_cast %98 : vector<1x64xf32> to vector<64xf32>
    %100 = vector.extract_strided_slice %8 {offsets = [4, 0], sizes = [1, 64], strides = [1, 1]} : vector<9x64xf32> to vector<1x64xf32>
    %101 = vector.shape_cast %100 : vector<1x64xf32> to vector<64xf32>
    %102 = vector.extract_strided_slice %8 {offsets = [7, 0], sizes = [1, 64], strides = [1, 1]} : vector<9x64xf32> to vector<1x64xf32>
    %103 = vector.shape_cast %102 : vector<1x64xf32> to vector<64xf32>
    %104 = vector.shape_cast %99 : vector<64xf32> to vector<1x1x64xf32>
    %105 = vector.broadcast %104 : vector<1x1x64xf32> to vector<2x8x64xf32>
    %106 = arith.mulf %97, %105 : vector<2x8x64xf32>
    %cst_17 = arith.constant dense<0.000000e+00> : vector<2x8xf32>
    %107 = vector.multi_reduction <add>, %106, %cst_17 [2] : vector<2x8x64xf32> to vector<2x8xf32>
    %108 = vector.shape_cast %101 : vector<64xf32> to vector<1x1x64xf32>
    %109 = vector.broadcast %108 : vector<1x1x64xf32> to vector<2x8x64xf32>
    %110 = arith.mulf %97, %109 : vector<2x8x64xf32>
    %cst_18 = arith.constant dense<0.000000e+00> : vector<2x8xf32>
    %111 = vector.multi_reduction <add>, %110, %cst_18 [2] : vector<2x8x64xf32> to vector<2x8xf32>
    %112 = vector.shape_cast %107 : vector<2x8xf32> to vector<2x8x1xf32>
    %113 = vector.shape_cast %111 : vector<2x8xf32> to vector<2x1x8xf32>
    %114 = vector.broadcast %112 : vector<2x8x1xf32> to vector<2x8x8xf32>
    %115 = vector.broadcast %113 : vector<2x1x8xf32> to vector<2x8x8xf32>
    %116 = arith.addf %114, %115 : vector<2x8x8xf32>
    %cst_19 = arith.constant 0.000000e+00 : f32
    %117 = vector.broadcast %cst_19 : f32 to vector<2x8x8xf32>
    %118 = arith.cmpf ogt, %116, %117 : vector<2x8x8xf32>
    %cst_20 = arith.constant 2.000000e-01 : f32
    %119 = vector.broadcast %cst_20 : f32 to vector<2x8x8xf32>
    %120 = arith.mulf %119, %116 : vector<2x8x8xf32>
    %121 = arith.select %118, %116, %120 : vector<2x8x8xi1>, vector<2x8x8xf32>
    %122 = arith.addf %121, %1 : vector<2x8x8xf32>
    %cst_21 = arith.constant dense<0xFF800000> : vector<2x8xf32>
    %123 = vector.multi_reduction <maximumf>, %122, %cst_21 [2] : vector<2x8x8xf32> to vector<2x8xf32>
    %124 = vector.shape_cast %123 : vector<2x8xf32> to vector<2x8x1xf32>
    %125 = vector.broadcast %124 : vector<2x8x1xf32> to vector<2x8x8xf32>
    %126 = arith.subf %122, %125 : vector<2x8x8xf32>
    %127 = math.exp %126 : vector<2x8x8xf32>
    %cst_22 = arith.constant dense<0.000000e+00> : vector<2x8xf32>
    %128 = vector.multi_reduction <add>, %127, %cst_22 [2] : vector<2x8x8xf32> to vector<2x8xf32>
    %129 = vector.shape_cast %128 : vector<2x8xf32> to vector<2x8x1xf32>
    %130 = tpu.reciprocal %129 {approx = true} : vector<2x8x1xf32> -> vector<2x8x1xf32>
    %131 = vector.broadcast %130 : vector<2x8x1xf32> to vector<2x8x8xf32>
    %132 = arith.mulf %127, %131 : vector<2x8x8xf32>
    %cst_23 = arith.constant 0.000000e+00 : f32
    %133 = vector.broadcast %cst_23 : f32 to vector<2x8x64xf32>
    %134 = vector.extract_strided_slice %132 {offsets = [0, 0, 0], sizes = [2, 8, 1], strides = [1, 1, 1]} : vector<2x8x8xf32> to vector<2x8x1xf32>
    %135 = vector.extract_strided_slice %97 {offsets = [0, 0, 0], sizes = [2, 1, 64], strides = [1, 1, 1]} : vector<2x8x64xf32> to vector<2x1x64xf32>
    %136 = vector.broadcast %134 : vector<2x8x1xf32> to vector<2x8x64xf32>
    %137 = vector.broadcast %135 : vector<2x1x64xf32> to vector<2x8x64xf32>
    %138 = arith.mulf %136, %137 : vector<2x8x64xf32>
    %139 = arith.addf %133, %138 : vector<2x8x64xf32>
    %140 = vector.extract_strided_slice %132 {offsets = [0, 0, 1], sizes = [2, 8, 1], strides = [1, 1, 1]} : vector<2x8x8xf32> to vector<2x8x1xf32>
    %141 = vector.extract_strided_slice %97 {offsets = [0, 1, 0], sizes = [2, 1, 64], strides = [1, 1, 1]} : vector<2x8x64xf32> to vector<2x1x64xf32>
    %142 = vector.broadcast %140 : vector<2x8x1xf32> to vector<2x8x64xf32>
    %143 = vector.broadcast %141 : vector<2x1x64xf32> to vector<2x8x64xf32>
    %144 = arith.mulf %142, %143 : vector<2x8x64xf32>
    %145 = arith.addf %139, %144 : vector<2x8x64xf32>
    %146 = vector.extract_strided_slice %132 {offsets = [0, 0, 2], sizes = [2, 8, 1], strides = [1, 1, 1]} : vector<2x8x8xf32> to vector<2x8x1xf32>
    %147 = vector.extract_strided_slice %97 {offsets = [0, 2, 0], sizes = [2, 1, 64], strides = [1, 1, 1]} : vector<2x8x64xf32> to vector<2x1x64xf32>
    %148 = vector.broadcast %146 : vector<2x8x1xf32> to vector<2x8x64xf32>
    %149 = vector.broadcast %147 : vector<2x1x64xf32> to vector<2x8x64xf32>
    %150 = arith.mulf %148, %149 : vector<2x8x64xf32>
    %151 = arith.addf %145, %150 : vector<2x8x64xf32>
    %152 = vector.extract_strided_slice %132 {offsets = [0, 0, 3], sizes = [2, 8, 1], strides = [1, 1, 1]} : vector<2x8x8xf32> to vector<2x8x1xf32>
    %153 = vector.extract_strided_slice %97 {offsets = [0, 3, 0], sizes = [2, 1, 64], strides = [1, 1, 1]} : vector<2x8x64xf32> to vector<2x1x64xf32>
    %154 = vector.broadcast %152 : vector<2x8x1xf32> to vector<2x8x64xf32>
    %155 = vector.broadcast %153 : vector<2x1x64xf32> to vector<2x8x64xf32>
    %156 = arith.mulf %154, %155 : vector<2x8x64xf32>
    %157 = arith.addf %151, %156 : vector<2x8x64xf32>
    %158 = vector.extract_strided_slice %132 {offsets = [0, 0, 4], sizes = [2, 8, 1], strides = [1, 1, 1]} : vector<2x8x8xf32> to vector<2x8x1xf32>
    %159 = vector.extract_strided_slice %97 {offsets = [0, 4, 0], sizes = [2, 1, 64], strides = [1, 1, 1]} : vector<2x8x64xf32> to vector<2x1x64xf32>
    %160 = vector.broadcast %158 : vector<2x8x1xf32> to vector<2x8x64xf32>
    %161 = vector.broadcast %159 : vector<2x1x64xf32> to vector<2x8x64xf32>
    %162 = arith.mulf %160, %161 : vector<2x8x64xf32>
    %163 = arith.addf %157, %162 : vector<2x8x64xf32>
    %164 = vector.extract_strided_slice %132 {offsets = [0, 0, 5], sizes = [2, 8, 1], strides = [1, 1, 1]} : vector<2x8x8xf32> to vector<2x8x1xf32>
    %165 = vector.extract_strided_slice %97 {offsets = [0, 5, 0], sizes = [2, 1, 64], strides = [1, 1, 1]} : vector<2x8x64xf32> to vector<2x1x64xf32>
    %166 = vector.broadcast %164 : vector<2x8x1xf32> to vector<2x8x64xf32>
    %167 = vector.broadcast %165 : vector<2x1x64xf32> to vector<2x8x64xf32>
    %168 = arith.mulf %166, %167 : vector<2x8x64xf32>
    %169 = arith.addf %163, %168 : vector<2x8x64xf32>
    %170 = vector.extract_strided_slice %132 {offsets = [0, 0, 6], sizes = [2, 8, 1], strides = [1, 1, 1]} : vector<2x8x8xf32> to vector<2x8x1xf32>
    %171 = vector.extract_strided_slice %97 {offsets = [0, 6, 0], sizes = [2, 1, 64], strides = [1, 1, 1]} : vector<2x8x64xf32> to vector<2x1x64xf32>
    %172 = vector.broadcast %170 : vector<2x8x1xf32> to vector<2x8x64xf32>
    %173 = vector.broadcast %171 : vector<2x1x64xf32> to vector<2x8x64xf32>
    %174 = arith.mulf %172, %173 : vector<2x8x64xf32>
    %175 = arith.addf %169, %174 : vector<2x8x64xf32>
    %176 = vector.extract_strided_slice %132 {offsets = [0, 0, 7], sizes = [2, 8, 1], strides = [1, 1, 1]} : vector<2x8x8xf32> to vector<2x8x1xf32>
    %177 = vector.extract_strided_slice %97 {offsets = [0, 7, 0], sizes = [2, 1, 64], strides = [1, 1, 1]} : vector<2x8x64xf32> to vector<2x1x64xf32>
    %178 = vector.broadcast %176 : vector<2x8x1xf32> to vector<2x8x64xf32>
    %179 = vector.broadcast %177 : vector<2x1x64xf32> to vector<2x8x64xf32>
    %180 = arith.mulf %178, %179 : vector<2x8x64xf32>
    %181 = arith.addf %175, %180 : vector<2x8x64xf32>
    %182 = vector.shape_cast %103 : vector<64xf32> to vector<1x1x64xf32>
    %183 = vector.broadcast %182 : vector<1x1x64xf32> to vector<2x8x64xf32>
    %184 = arith.addf %181, %183 : vector<2x8x64xf32>
    %185 = vector.extract_strided_slice %6 {offsets = [0, 0, 128], sizes = [2, 8, 64], strides = [1, 1, 1]} : vector<2x8x192xf32> to vector<2x8x64xf32>
    %186 = vector.extract_strided_slice %8 {offsets = [2, 0], sizes = [1, 64], strides = [1, 1]} : vector<9x64xf32> to vector<1x64xf32>
    %187 = vector.shape_cast %186 : vector<1x64xf32> to vector<64xf32>
    %188 = vector.extract_strided_slice %8 {offsets = [5, 0], sizes = [1, 64], strides = [1, 1]} : vector<9x64xf32> to vector<1x64xf32>
    %189 = vector.shape_cast %188 : vector<1x64xf32> to vector<64xf32>
    %190 = vector.extract_strided_slice %8 {offsets = [8, 0], sizes = [1, 64], strides = [1, 1]} : vector<9x64xf32> to vector<1x64xf32>
    %191 = vector.shape_cast %190 : vector<1x64xf32> to vector<64xf32>
    %192 = vector.shape_cast %187 : vector<64xf32> to vector<1x1x64xf32>
    %193 = vector.broadcast %192 : vector<1x1x64xf32> to vector<2x8x64xf32>
    %194 = arith.mulf %185, %193 : vector<2x8x64xf32>
    %cst_24 = arith.constant dense<0.000000e+00> : vector<2x8xf32>
    %195 = vector.multi_reduction <add>, %194, %cst_24 [2] : vector<2x8x64xf32> to vector<2x8xf32>
    %196 = vector.shape_cast %189 : vector<64xf32> to vector<1x1x64xf32>
    %197 = vector.broadcast %196 : vector<1x1x64xf32> to vector<2x8x64xf32>
    %198 = arith.mulf %185, %197 : vector<2x8x64xf32>
    %cst_25 = arith.constant dense<0.000000e+00> : vector<2x8xf32>
    %199 = vector.multi_reduction <add>, %198, %cst_25 [2] : vector<2x8x64xf32> to vector<2x8xf32>
    %200 = vector.shape_cast %195 : vector<2x8xf32> to vector<2x8x1xf32>
    %201 = vector.shape_cast %199 : vector<2x8xf32> to vector<2x1x8xf32>
    %202 = vector.broadcast %200 : vector<2x8x1xf32> to vector<2x8x8xf32>
    %203 = vector.broadcast %201 : vector<2x1x8xf32> to vector<2x8x8xf32>
    %204 = arith.addf %202, %203 : vector<2x8x8xf32>
    %cst_26 = arith.constant 0.000000e+00 : f32
    %205 = vector.broadcast %cst_26 : f32 to vector<2x8x8xf32>
    %206 = arith.cmpf ogt, %204, %205 : vector<2x8x8xf32>
    %cst_27 = arith.constant 2.000000e-01 : f32
    %207 = vector.broadcast %cst_27 : f32 to vector<2x8x8xf32>
    %208 = arith.mulf %207, %204 : vector<2x8x8xf32>
    %209 = arith.select %206, %204, %208 : vector<2x8x8xi1>, vector<2x8x8xf32>
    %210 = arith.addf %209, %1 : vector<2x8x8xf32>
    %cst_28 = arith.constant dense<0xFF800000> : vector<2x8xf32>
    %211 = vector.multi_reduction <maximumf>, %210, %cst_28 [2] : vector<2x8x8xf32> to vector<2x8xf32>
    %212 = vector.shape_cast %211 : vector<2x8xf32> to vector<2x8x1xf32>
    %213 = vector.broadcast %212 : vector<2x8x1xf32> to vector<2x8x8xf32>
    %214 = arith.subf %210, %213 : vector<2x8x8xf32>
    %215 = math.exp %214 : vector<2x8x8xf32>
    %cst_29 = arith.constant dense<0.000000e+00> : vector<2x8xf32>
    %216 = vector.multi_reduction <add>, %215, %cst_29 [2] : vector<2x8x8xf32> to vector<2x8xf32>
    %217 = vector.shape_cast %216 : vector<2x8xf32> to vector<2x8x1xf32>
    %218 = tpu.reciprocal %217 {approx = true} : vector<2x8x1xf32> -> vector<2x8x1xf32>
    %219 = vector.broadcast %218 : vector<2x8x1xf32> to vector<2x8x8xf32>
    %220 = arith.mulf %215, %219 : vector<2x8x8xf32>
    %cst_30 = arith.constant 0.000000e+00 : f32
    %221 = vector.broadcast %cst_30 : f32 to vector<2x8x64xf32>
    %222 = vector.extract_strided_slice %220 {offsets = [0, 0, 0], sizes = [2, 8, 1], strides = [1, 1, 1]} : vector<2x8x8xf32> to vector<2x8x1xf32>
    %223 = vector.extract_strided_slice %185 {offsets = [0, 0, 0], sizes = [2, 1, 64], strides = [1, 1, 1]} : vector<2x8x64xf32> to vector<2x1x64xf32>
    %224 = vector.broadcast %222 : vector<2x8x1xf32> to vector<2x8x64xf32>
    %225 = vector.broadcast %223 : vector<2x1x64xf32> to vector<2x8x64xf32>
    %226 = arith.mulf %224, %225 : vector<2x8x64xf32>
    %227 = arith.addf %221, %226 : vector<2x8x64xf32>
    %228 = vector.extract_strided_slice %220 {offsets = [0, 0, 1], sizes = [2, 8, 1], strides = [1, 1, 1]} : vector<2x8x8xf32> to vector<2x8x1xf32>
    %229 = vector.extract_strided_slice %185 {offsets = [0, 1, 0], sizes = [2, 1, 64], strides = [1, 1, 1]} : vector<2x8x64xf32> to vector<2x1x64xf32>
    %230 = vector.broadcast %228 : vector<2x8x1xf32> to vector<2x8x64xf32>
    %231 = vector.broadcast %229 : vector<2x1x64xf32> to vector<2x8x64xf32>
    %232 = arith.mulf %230, %231 : vector<2x8x64xf32>
    %233 = arith.addf %227, %232 : vector<2x8x64xf32>
    %234 = vector.extract_strided_slice %220 {offsets = [0, 0, 2], sizes = [2, 8, 1], strides = [1, 1, 1]} : vector<2x8x8xf32> to vector<2x8x1xf32>
    %235 = vector.extract_strided_slice %185 {offsets = [0, 2, 0], sizes = [2, 1, 64], strides = [1, 1, 1]} : vector<2x8x64xf32> to vector<2x1x64xf32>
    %236 = vector.broadcast %234 : vector<2x8x1xf32> to vector<2x8x64xf32>
    %237 = vector.broadcast %235 : vector<2x1x64xf32> to vector<2x8x64xf32>
    %238 = arith.mulf %236, %237 : vector<2x8x64xf32>
    %239 = arith.addf %233, %238 : vector<2x8x64xf32>
    %240 = vector.extract_strided_slice %220 {offsets = [0, 0, 3], sizes = [2, 8, 1], strides = [1, 1, 1]} : vector<2x8x8xf32> to vector<2x8x1xf32>
    %241 = vector.extract_strided_slice %185 {offsets = [0, 3, 0], sizes = [2, 1, 64], strides = [1, 1, 1]} : vector<2x8x64xf32> to vector<2x1x64xf32>
    %242 = vector.broadcast %240 : vector<2x8x1xf32> to vector<2x8x64xf32>
    %243 = vector.broadcast %241 : vector<2x1x64xf32> to vector<2x8x64xf32>
    %244 = arith.mulf %242, %243 : vector<2x8x64xf32>
    %245 = arith.addf %239, %244 : vector<2x8x64xf32>
    %246 = vector.extract_strided_slice %220 {offsets = [0, 0, 4], sizes = [2, 8, 1], strides = [1, 1, 1]} : vector<2x8x8xf32> to vector<2x8x1xf32>
    %247 = vector.extract_strided_slice %185 {offsets = [0, 4, 0], sizes = [2, 1, 64], strides = [1, 1, 1]} : vector<2x8x64xf32> to vector<2x1x64xf32>
    %248 = vector.broadcast %246 : vector<2x8x1xf32> to vector<2x8x64xf32>
    %249 = vector.broadcast %247 : vector<2x1x64xf32> to vector<2x8x64xf32>
    %250 = arith.mulf %248, %249 : vector<2x8x64xf32>
    %251 = arith.addf %245, %250 : vector<2x8x64xf32>
    %252 = vector.extract_strided_slice %220 {offsets = [0, 0, 5], sizes = [2, 8, 1], strides = [1, 1, 1]} : vector<2x8x8xf32> to vector<2x8x1xf32>
    %253 = vector.extract_strided_slice %185 {offsets = [0, 5, 0], sizes = [2, 1, 64], strides = [1, 1, 1]} : vector<2x8x64xf32> to vector<2x1x64xf32>
    %254 = vector.broadcast %252 : vector<2x8x1xf32> to vector<2x8x64xf32>
    %255 = vector.broadcast %253 : vector<2x1x64xf32> to vector<2x8x64xf32>
    %256 = arith.mulf %254, %255 : vector<2x8x64xf32>
    %257 = arith.addf %251, %256 : vector<2x8x64xf32>
    %258 = vector.extract_strided_slice %220 {offsets = [0, 0, 6], sizes = [2, 8, 1], strides = [1, 1, 1]} : vector<2x8x8xf32> to vector<2x8x1xf32>
    %259 = vector.extract_strided_slice %185 {offsets = [0, 6, 0], sizes = [2, 1, 64], strides = [1, 1, 1]} : vector<2x8x64xf32> to vector<2x1x64xf32>
    %260 = vector.broadcast %258 : vector<2x8x1xf32> to vector<2x8x64xf32>
    %261 = vector.broadcast %259 : vector<2x1x64xf32> to vector<2x8x64xf32>
    %262 = arith.mulf %260, %261 : vector<2x8x64xf32>
    %263 = arith.addf %257, %262 : vector<2x8x64xf32>
    %264 = vector.extract_strided_slice %220 {offsets = [0, 0, 7], sizes = [2, 8, 1], strides = [1, 1, 1]} : vector<2x8x8xf32> to vector<2x8x1xf32>
    %265 = vector.extract_strided_slice %185 {offsets = [0, 7, 0], sizes = [2, 1, 64], strides = [1, 1, 1]} : vector<2x8x64xf32> to vector<2x1x64xf32>
    %266 = vector.broadcast %264 : vector<2x8x1xf32> to vector<2x8x64xf32>
    %267 = vector.broadcast %265 : vector<2x1x64xf32> to vector<2x8x64xf32>
    %268 = arith.mulf %266, %267 : vector<2x8x64xf32>
    %269 = arith.addf %263, %268 : vector<2x8x64xf32>
    %270 = vector.shape_cast %191 : vector<64xf32> to vector<1x1x64xf32>
    %271 = vector.broadcast %270 : vector<1x1x64xf32> to vector<2x8x64xf32>
    %272 = arith.addf %269, %271 : vector<2x8x64xf32>
    %273 = tpu.concatenate %96, %184, %272 in 2 : vector<2x8x64xf32>, vector<2x8x64xf32>, vector<2x8x64xf32> -> vector<2x8x192xf32>
    %cst_31 = arith.constant 0.000000e+00 : f32
    %274 = vector.broadcast %cst_31 : f32 to vector<2x8x192xf32>
    %275 = arith.maximumf %273, %274 : vector<2x8x192xf32>
    %276 = vector.shape_cast %275 : vector<2x8x192xf32> to vector<16x192xf32>
    %277 = arith.truncf %276 : vector<16x192xf32> to vector<16x192xbf16>
    %c0_32 = arith.constant 0 : index
    %c0_33 = arith.constant 0 : index
    %278 = vector.load %arg4[%c0_32, %c0_33] : memref<192x192xbf16, #tpu.memory_space<vmem>>, vector<192x192xbf16>
    %cst_34 = arith.constant dense<0.000000e+00> : vector<16x192xf32>
    %279 = tpu.matmul %277, %278, %cst_34 {dimension_numbers = #tpu.dot_dimension_numbers<[1], [0], [0], [1], [0, 0, 1, 1], [], []>} : vector<16x192xbf16>, vector<192x192xbf16>, vector<16x192xf32> -> vector<16x192xf32>
    %280 = vector.shape_cast %279 : vector<16x192xf32> to vector<2x8x192xf32>
    %c1 = arith.constant 1 : index
    %c0_35 = arith.constant 0 : index
    %c0_36 = arith.constant 0 : index
    %281 = vector.load %arg6[%c1, %c0_35, %c0_36] : memref<3x9x64xf32, #tpu.memory_space<vmem>>, vector<1x9x64xf32>
    %282 = vector.shape_cast %281 : vector<1x9x64xf32> to vector<9x64xf32>
    %283 = vector.extract_strided_slice %280 {offsets = [0, 0, 0], sizes = [2, 8, 64], strides = [1, 1, 1]} : vector<2x8x192xf32> to vector<2x8x64xf32>
    %284 = vector.extract_strided_slice %282 {offsets = [0, 0], sizes = [1, 64], strides = [1, 1]} : vector<9x64xf32> to vector<1x64xf32>
    %285 = vector.shape_cast %284 : vector<1x64xf32> to vector<64xf32>
    %286 = vector.extract_strided_slice %282 {offsets = [3, 0], sizes = [1, 64], strides = [1, 1]} : vector<9x64xf32> to vector<1x64xf32>
    %287 = vector.shape_cast %286 : vector<1x64xf32> to vector<64xf32>
    %288 = vector.extract_strided_slice %282 {offsets = [6, 0], sizes = [1, 64], strides = [1, 1]} : vector<9x64xf32> to vector<1x64xf32>
    %289 = vector.shape_cast %288 : vector<1x64xf32> to vector<64xf32>
    %290 = vector.shape_cast %285 : vector<64xf32> to vector<1x1x64xf32>
    %291 = vector.broadcast %290 : vector<1x1x64xf32> to vector<2x8x64xf32>
    %292 = arith.mulf %283, %291 : vector<2x8x64xf32>
    %cst_37 = arith.constant dense<0.000000e+00> : vector<2x8xf32>
    %293 = vector.multi_reduction <add>, %292, %cst_37 [2] : vector<2x8x64xf32> to vector<2x8xf32>
    %294 = vector.shape_cast %287 : vector<64xf32> to vector<1x1x64xf32>
    %295 = vector.broadcast %294 : vector<1x1x64xf32> to vector<2x8x64xf32>
    %296 = arith.mulf %283, %295 : vector<2x8x64xf32>
    %cst_38 = arith.constant dense<0.000000e+00> : vector<2x8xf32>
    %297 = vector.multi_reduction <add>, %296, %cst_38 [2] : vector<2x8x64xf32> to vector<2x8xf32>
    %298 = vector.shape_cast %293 : vector<2x8xf32> to vector<2x8x1xf32>
    %299 = vector.shape_cast %297 : vector<2x8xf32> to vector<2x1x8xf32>
    %300 = vector.broadcast %298 : vector<2x8x1xf32> to vector<2x8x8xf32>
    %301 = vector.broadcast %299 : vector<2x1x8xf32> to vector<2x8x8xf32>
    %302 = arith.addf %300, %301 : vector<2x8x8xf32>
    %cst_39 = arith.constant 0.000000e+00 : f32
    %303 = vector.broadcast %cst_39 : f32 to vector<2x8x8xf32>
    %304 = arith.cmpf ogt, %302, %303 : vector<2x8x8xf32>
    %cst_40 = arith.constant 2.000000e-01 : f32
    %305 = vector.broadcast %cst_40 : f32 to vector<2x8x8xf32>
    %306 = arith.mulf %305, %302 : vector<2x8x8xf32>
    %307 = arith.select %304, %302, %306 : vector<2x8x8xi1>, vector<2x8x8xf32>
    %308 = arith.addf %307, %1 : vector<2x8x8xf32>
    %cst_41 = arith.constant dense<0xFF800000> : vector<2x8xf32>
    %309 = vector.multi_reduction <maximumf>, %308, %cst_41 [2] : vector<2x8x8xf32> to vector<2x8xf32>
    %310 = vector.shape_cast %309 : vector<2x8xf32> to vector<2x8x1xf32>
    %311 = vector.broadcast %310 : vector<2x8x1xf32> to vector<2x8x8xf32>
    %312 = arith.subf %308, %311 : vector<2x8x8xf32>
    %313 = math.exp %312 : vector<2x8x8xf32>
    %cst_42 = arith.constant dense<0.000000e+00> : vector<2x8xf32>
    %314 = vector.multi_reduction <add>, %313, %cst_42 [2] : vector<2x8x8xf32> to vector<2x8xf32>
    %315 = vector.shape_cast %314 : vector<2x8xf32> to vector<2x8x1xf32>
    %316 = tpu.reciprocal %315 {approx = true} : vector<2x8x1xf32> -> vector<2x8x1xf32>
    %317 = vector.broadcast %316 : vector<2x8x1xf32> to vector<2x8x8xf32>
    %318 = arith.mulf %313, %317 : vector<2x8x8xf32>
    %cst_43 = arith.constant 0.000000e+00 : f32
    %319 = vector.broadcast %cst_43 : f32 to vector<2x8x64xf32>
    %320 = vector.extract_strided_slice %318 {offsets = [0, 0, 0], sizes = [2, 8, 1], strides = [1, 1, 1]} : vector<2x8x8xf32> to vector<2x8x1xf32>
    %321 = vector.extract_strided_slice %283 {offsets = [0, 0, 0], sizes = [2, 1, 64], strides = [1, 1, 1]} : vector<2x8x64xf32> to vector<2x1x64xf32>
    %322 = vector.broadcast %320 : vector<2x8x1xf32> to vector<2x8x64xf32>
    %323 = vector.broadcast %321 : vector<2x1x64xf32> to vector<2x8x64xf32>
    %324 = arith.mulf %322, %323 : vector<2x8x64xf32>
    %325 = arith.addf %319, %324 : vector<2x8x64xf32>
    %326 = vector.extract_strided_slice %318 {offsets = [0, 0, 1], sizes = [2, 8, 1], strides = [1, 1, 1]} : vector<2x8x8xf32> to vector<2x8x1xf32>
    %327 = vector.extract_strided_slice %283 {offsets = [0, 1, 0], sizes = [2, 1, 64], strides = [1, 1, 1]} : vector<2x8x64xf32> to vector<2x1x64xf32>
    %328 = vector.broadcast %326 : vector<2x8x1xf32> to vector<2x8x64xf32>
    %329 = vector.broadcast %327 : vector<2x1x64xf32> to vector<2x8x64xf32>
    %330 = arith.mulf %328, %329 : vector<2x8x64xf32>
    %331 = arith.addf %325, %330 : vector<2x8x64xf32>
    %332 = vector.extract_strided_slice %318 {offsets = [0, 0, 2], sizes = [2, 8, 1], strides = [1, 1, 1]} : vector<2x8x8xf32> to vector<2x8x1xf32>
    %333 = vector.extract_strided_slice %283 {offsets = [0, 2, 0], sizes = [2, 1, 64], strides = [1, 1, 1]} : vector<2x8x64xf32> to vector<2x1x64xf32>
    %334 = vector.broadcast %332 : vector<2x8x1xf32> to vector<2x8x64xf32>
    %335 = vector.broadcast %333 : vector<2x1x64xf32> to vector<2x8x64xf32>
    %336 = arith.mulf %334, %335 : vector<2x8x64xf32>
    %337 = arith.addf %331, %336 : vector<2x8x64xf32>
    %338 = vector.extract_strided_slice %318 {offsets = [0, 0, 3], sizes = [2, 8, 1], strides = [1, 1, 1]} : vector<2x8x8xf32> to vector<2x8x1xf32>
    %339 = vector.extract_strided_slice %283 {offsets = [0, 3, 0], sizes = [2, 1, 64], strides = [1, 1, 1]} : vector<2x8x64xf32> to vector<2x1x64xf32>
    %340 = vector.broadcast %338 : vector<2x8x1xf32> to vector<2x8x64xf32>
    %341 = vector.broadcast %339 : vector<2x1x64xf32> to vector<2x8x64xf32>
    %342 = arith.mulf %340, %341 : vector<2x8x64xf32>
    %343 = arith.addf %337, %342 : vector<2x8x64xf32>
    %344 = vector.extract_strided_slice %318 {offsets = [0, 0, 4], sizes = [2, 8, 1], strides = [1, 1, 1]} : vector<2x8x8xf32> to vector<2x8x1xf32>
    %345 = vector.extract_strided_slice %283 {offsets = [0, 4, 0], sizes = [2, 1, 64], strides = [1, 1, 1]} : vector<2x8x64xf32> to vector<2x1x64xf32>
    %346 = vector.broadcast %344 : vector<2x8x1xf32> to vector<2x8x64xf32>
    %347 = vector.broadcast %345 : vector<2x1x64xf32> to vector<2x8x64xf32>
    %348 = arith.mulf %346, %347 : vector<2x8x64xf32>
    %349 = arith.addf %343, %348 : vector<2x8x64xf32>
    %350 = vector.extract_strided_slice %318 {offsets = [0, 0, 5], sizes = [2, 8, 1], strides = [1, 1, 1]} : vector<2x8x8xf32> to vector<2x8x1xf32>
    %351 = vector.extract_strided_slice %283 {offsets = [0, 5, 0], sizes = [2, 1, 64], strides = [1, 1, 1]} : vector<2x8x64xf32> to vector<2x1x64xf32>
    %352 = vector.broadcast %350 : vector<2x8x1xf32> to vector<2x8x64xf32>
    %353 = vector.broadcast %351 : vector<2x1x64xf32> to vector<2x8x64xf32>
    %354 = arith.mulf %352, %353 : vector<2x8x64xf32>
    %355 = arith.addf %349, %354 : vector<2x8x64xf32>
    %356 = vector.extract_strided_slice %318 {offsets = [0, 0, 6], sizes = [2, 8, 1], strides = [1, 1, 1]} : vector<2x8x8xf32> to vector<2x8x1xf32>
    %357 = vector.extract_strided_slice %283 {offsets = [0, 6, 0], sizes = [2, 1, 64], strides = [1, 1, 1]} : vector<2x8x64xf32> to vector<2x1x64xf32>
    %358 = vector.broadcast %356 : vector<2x8x1xf32> to vector<2x8x64xf32>
    %359 = vector.broadcast %357 : vector<2x1x64xf32> to vector<2x8x64xf32>
    %360 = arith.mulf %358, %359 : vector<2x8x64xf32>
    %361 = arith.addf %355, %360 : vector<2x8x64xf32>
    %362 = vector.extract_strided_slice %318 {offsets = [0, 0, 7], sizes = [2, 8, 1], strides = [1, 1, 1]} : vector<2x8x8xf32> to vector<2x8x1xf32>
    %363 = vector.extract_strided_slice %283 {offsets = [0, 7, 0], sizes = [2, 1, 64], strides = [1, 1, 1]} : vector<2x8x64xf32> to vector<2x1x64xf32>
    %364 = vector.broadcast %362 : vector<2x8x1xf32> to vector<2x8x64xf32>
    %365 = vector.broadcast %363 : vector<2x1x64xf32> to vector<2x8x64xf32>
    %366 = arith.mulf %364, %365 : vector<2x8x64xf32>
    %367 = arith.addf %361, %366 : vector<2x8x64xf32>
    %368 = vector.shape_cast %289 : vector<64xf32> to vector<1x1x64xf32>
    %369 = vector.broadcast %368 : vector<1x1x64xf32> to vector<2x8x64xf32>
    %370 = arith.addf %367, %369 : vector<2x8x64xf32>
    %371 = vector.extract_strided_slice %280 {offsets = [0, 0, 64], sizes = [2, 8, 64], strides = [1, 1, 1]} : vector<2x8x192xf32> to vector<2x8x64xf32>
    %372 = vector.extract_strided_slice %282 {offsets = [1, 0], sizes = [1, 64], strides = [1, 1]} : vector<9x64xf32> to vector<1x64xf32>
    %373 = vector.shape_cast %372 : vector<1x64xf32> to vector<64xf32>
    %374 = vector.extract_strided_slice %282 {offsets = [4, 0], sizes = [1, 64], strides = [1, 1]} : vector<9x64xf32> to vector<1x64xf32>
    %375 = vector.shape_cast %374 : vector<1x64xf32> to vector<64xf32>
    %376 = vector.extract_strided_slice %282 {offsets = [7, 0], sizes = [1, 64], strides = [1, 1]} : vector<9x64xf32> to vector<1x64xf32>
    %377 = vector.shape_cast %376 : vector<1x64xf32> to vector<64xf32>
    %378 = vector.shape_cast %373 : vector<64xf32> to vector<1x1x64xf32>
    %379 = vector.broadcast %378 : vector<1x1x64xf32> to vector<2x8x64xf32>
    %380 = arith.mulf %371, %379 : vector<2x8x64xf32>
    %cst_44 = arith.constant dense<0.000000e+00> : vector<2x8xf32>
    %381 = vector.multi_reduction <add>, %380, %cst_44 [2] : vector<2x8x64xf32> to vector<2x8xf32>
    %382 = vector.shape_cast %375 : vector<64xf32> to vector<1x1x64xf32>
    %383 = vector.broadcast %382 : vector<1x1x64xf32> to vector<2x8x64xf32>
    %384 = arith.mulf %371, %383 : vector<2x8x64xf32>
    %cst_45 = arith.constant dense<0.000000e+00> : vector<2x8xf32>
    %385 = vector.multi_reduction <add>, %384, %cst_45 [2] : vector<2x8x64xf32> to vector<2x8xf32>
    %386 = vector.shape_cast %381 : vector<2x8xf32> to vector<2x8x1xf32>
    %387 = vector.shape_cast %385 : vector<2x8xf32> to vector<2x1x8xf32>
    %388 = vector.broadcast %386 : vector<2x8x1xf32> to vector<2x8x8xf32>
    %389 = vector.broadcast %387 : vector<2x1x8xf32> to vector<2x8x8xf32>
    %390 = arith.addf %388, %389 : vector<2x8x8xf32>
    %cst_46 = arith.constant 0.000000e+00 : f32
    %391 = vector.broadcast %cst_46 : f32 to vector<2x8x8xf32>
    %392 = arith.cmpf ogt, %390, %391 : vector<2x8x8xf32>
    %cst_47 = arith.constant 2.000000e-01 : f32
    %393 = vector.broadcast %cst_47 : f32 to vector<2x8x8xf32>
    %394 = arith.mulf %393, %390 : vector<2x8x8xf32>
    %395 = arith.select %392, %390, %394 : vector<2x8x8xi1>, vector<2x8x8xf32>
    %396 = arith.addf %395, %1 : vector<2x8x8xf32>
    %cst_48 = arith.constant dense<0xFF800000> : vector<2x8xf32>
    %397 = vector.multi_reduction <maximumf>, %396, %cst_48 [2] : vector<2x8x8xf32> to vector<2x8xf32>
    %398 = vector.shape_cast %397 : vector<2x8xf32> to vector<2x8x1xf32>
    %399 = vector.broadcast %398 : vector<2x8x1xf32> to vector<2x8x8xf32>
    %400 = arith.subf %396, %399 : vector<2x8x8xf32>
    %401 = math.exp %400 : vector<2x8x8xf32>
    %cst_49 = arith.constant dense<0.000000e+00> : vector<2x8xf32>
    %402 = vector.multi_reduction <add>, %401, %cst_49 [2] : vector<2x8x8xf32> to vector<2x8xf32>
    %403 = vector.shape_cast %402 : vector<2x8xf32> to vector<2x8x1xf32>
    %404 = tpu.reciprocal %403 {approx = true} : vector<2x8x1xf32> -> vector<2x8x1xf32>
    %405 = vector.broadcast %404 : vector<2x8x1xf32> to vector<2x8x8xf32>
    %406 = arith.mulf %401, %405 : vector<2x8x8xf32>
    %cst_50 = arith.constant 0.000000e+00 : f32
    %407 = vector.broadcast %cst_50 : f32 to vector<2x8x64xf32>
    %408 = vector.extract_strided_slice %406 {offsets = [0, 0, 0], sizes = [2, 8, 1], strides = [1, 1, 1]} : vector<2x8x8xf32> to vector<2x8x1xf32>
    %409 = vector.extract_strided_slice %371 {offsets = [0, 0, 0], sizes = [2, 1, 64], strides = [1, 1, 1]} : vector<2x8x64xf32> to vector<2x1x64xf32>
    %410 = vector.broadcast %408 : vector<2x8x1xf32> to vector<2x8x64xf32>
    %411 = vector.broadcast %409 : vector<2x1x64xf32> to vector<2x8x64xf32>
    %412 = arith.mulf %410, %411 : vector<2x8x64xf32>
    %413 = arith.addf %407, %412 : vector<2x8x64xf32>
    %414 = vector.extract_strided_slice %406 {offsets = [0, 0, 1], sizes = [2, 8, 1], strides = [1, 1, 1]} : vector<2x8x8xf32> to vector<2x8x1xf32>
    %415 = vector.extract_strided_slice %371 {offsets = [0, 1, 0], sizes = [2, 1, 64], strides = [1, 1, 1]} : vector<2x8x64xf32> to vector<2x1x64xf32>
    %416 = vector.broadcast %414 : vector<2x8x1xf32> to vector<2x8x64xf32>
    %417 = vector.broadcast %415 : vector<2x1x64xf32> to vector<2x8x64xf32>
    %418 = arith.mulf %416, %417 : vector<2x8x64xf32>
    %419 = arith.addf %413, %418 : vector<2x8x64xf32>
    %420 = vector.extract_strided_slice %406 {offsets = [0, 0, 2], sizes = [2, 8, 1], strides = [1, 1, 1]} : vector<2x8x8xf32> to vector<2x8x1xf32>
    %421 = vector.extract_strided_slice %371 {offsets = [0, 2, 0], sizes = [2, 1, 64], strides = [1, 1, 1]} : vector<2x8x64xf32> to vector<2x1x64xf32>
    %422 = vector.broadcast %420 : vector<2x8x1xf32> to vector<2x8x64xf32>
    %423 = vector.broadcast %421 : vector<2x1x64xf32> to vector<2x8x64xf32>
    %424 = arith.mulf %422, %423 : vector<2x8x64xf32>
    %425 = arith.addf %419, %424 : vector<2x8x64xf32>
    %426 = vector.extract_strided_slice %406 {offsets = [0, 0, 3], sizes = [2, 8, 1], strides = [1, 1, 1]} : vector<2x8x8xf32> to vector<2x8x1xf32>
    %427 = vector.extract_strided_slice %371 {offsets = [0, 3, 0], sizes = [2, 1, 64], strides = [1, 1, 1]} : vector<2x8x64xf32> to vector<2x1x64xf32>
    %428 = vector.broadcast %426 : vector<2x8x1xf32> to vector<2x8x64xf32>
    %429 = vector.broadcast %427 : vector<2x1x64xf32> to vector<2x8x64xf32>
    %430 = arith.mulf %428, %429 : vector<2x8x64xf32>
    %431 = arith.addf %425, %430 : vector<2x8x64xf32>
    %432 = vector.extract_strided_slice %406 {offsets = [0, 0, 4], sizes = [2, 8, 1], strides = [1, 1, 1]} : vector<2x8x8xf32> to vector<2x8x1xf32>
    %433 = vector.extract_strided_slice %371 {offsets = [0, 4, 0], sizes = [2, 1, 64], strides = [1, 1, 1]} : vector<2x8x64xf32> to vector<2x1x64xf32>
    %434 = vector.broadcast %432 : vector<2x8x1xf32> to vector<2x8x64xf32>
    %435 = vector.broadcast %433 : vector<2x1x64xf32> to vector<2x8x64xf32>
    %436 = arith.mulf %434, %435 : vector<2x8x64xf32>
    %437 = arith.addf %431, %436 : vector<2x8x64xf32>
    %438 = vector.extract_strided_slice %406 {offsets = [0, 0, 5], sizes = [2, 8, 1], strides = [1, 1, 1]} : vector<2x8x8xf32> to vector<2x8x1xf32>
    %439 = vector.extract_strided_slice %371 {offsets = [0, 5, 0], sizes = [2, 1, 64], strides = [1, 1, 1]} : vector<2x8x64xf32> to vector<2x1x64xf32>
    %440 = vector.broadcast %438 : vector<2x8x1xf32> to vector<2x8x64xf32>
    %441 = vector.broadcast %439 : vector<2x1x64xf32> to vector<2x8x64xf32>
    %442 = arith.mulf %440, %441 : vector<2x8x64xf32>
    %443 = arith.addf %437, %442 : vector<2x8x64xf32>
    %444 = vector.extract_strided_slice %406 {offsets = [0, 0, 6], sizes = [2, 8, 1], strides = [1, 1, 1]} : vector<2x8x8xf32> to vector<2x8x1xf32>
    %445 = vector.extract_strided_slice %371 {offsets = [0, 6, 0], sizes = [2, 1, 64], strides = [1, 1, 1]} : vector<2x8x64xf32> to vector<2x1x64xf32>
    %446 = vector.broadcast %444 : vector<2x8x1xf32> to vector<2x8x64xf32>
    %447 = vector.broadcast %445 : vector<2x1x64xf32> to vector<2x8x64xf32>
    %448 = arith.mulf %446, %447 : vector<2x8x64xf32>
    %449 = arith.addf %443, %448 : vector<2x8x64xf32>
    %450 = vector.extract_strided_slice %406 {offsets = [0, 0, 7], sizes = [2, 8, 1], strides = [1, 1, 1]} : vector<2x8x8xf32> to vector<2x8x1xf32>
    %451 = vector.extract_strided_slice %371 {offsets = [0, 7, 0], sizes = [2, 1, 64], strides = [1, 1, 1]} : vector<2x8x64xf32> to vector<2x1x64xf32>
    %452 = vector.broadcast %450 : vector<2x8x1xf32> to vector<2x8x64xf32>
    %453 = vector.broadcast %451 : vector<2x1x64xf32> to vector<2x8x64xf32>
    %454 = arith.mulf %452, %453 : vector<2x8x64xf32>
    %455 = arith.addf %449, %454 : vector<2x8x64xf32>
    %456 = vector.shape_cast %377 : vector<64xf32> to vector<1x1x64xf32>
    %457 = vector.broadcast %456 : vector<1x1x64xf32> to vector<2x8x64xf32>
    %458 = arith.addf %455, %457 : vector<2x8x64xf32>
    %459 = vector.extract_strided_slice %280 {offsets = [0, 0, 128], sizes = [2, 8, 64], strides = [1, 1, 1]} : vector<2x8x192xf32> to vector<2x8x64xf32>
    %460 = vector.extract_strided_slice %282 {offsets = [2, 0], sizes = [1, 64], strides = [1, 1]} : vector<9x64xf32> to vector<1x64xf32>
    %461 = vector.shape_cast %460 : vector<1x64xf32> to vector<64xf32>
    %462 = vector.extract_strided_slice %282 {offsets = [5, 0], sizes = [1, 64], strides = [1, 1]} : vector<9x64xf32> to vector<1x64xf32>
    %463 = vector.shape_cast %462 : vector<1x64xf32> to vector<64xf32>
    %464 = vector.extract_strided_slice %282 {offsets = [8, 0], sizes = [1, 64], strides = [1, 1]} : vector<9x64xf32> to vector<1x64xf32>
    %465 = vector.shape_cast %464 : vector<1x64xf32> to vector<64xf32>
    %466 = vector.shape_cast %461 : vector<64xf32> to vector<1x1x64xf32>
    %467 = vector.broadcast %466 : vector<1x1x64xf32> to vector<2x8x64xf32>
    %468 = arith.mulf %459, %467 : vector<2x8x64xf32>
    %cst_51 = arith.constant dense<0.000000e+00> : vector<2x8xf32>
    %469 = vector.multi_reduction <add>, %468, %cst_51 [2] : vector<2x8x64xf32> to vector<2x8xf32>
    %470 = vector.shape_cast %463 : vector<64xf32> to vector<1x1x64xf32>
    %471 = vector.broadcast %470 : vector<1x1x64xf32> to vector<2x8x64xf32>
    %472 = arith.mulf %459, %471 : vector<2x8x64xf32>
    %cst_52 = arith.constant dense<0.000000e+00> : vector<2x8xf32>
    %473 = vector.multi_reduction <add>, %472, %cst_52 [2] : vector<2x8x64xf32> to vector<2x8xf32>
    %474 = vector.shape_cast %469 : vector<2x8xf32> to vector<2x8x1xf32>
    %475 = vector.shape_cast %473 : vector<2x8xf32> to vector<2x1x8xf32>
    %476 = vector.broadcast %474 : vector<2x8x1xf32> to vector<2x8x8xf32>
    %477 = vector.broadcast %475 : vector<2x1x8xf32> to vector<2x8x8xf32>
    %478 = arith.addf %476, %477 : vector<2x8x8xf32>
    %cst_53 = arith.constant 0.000000e+00 : f32
    %479 = vector.broadcast %cst_53 : f32 to vector<2x8x8xf32>
    %480 = arith.cmpf ogt, %478, %479 : vector<2x8x8xf32>
    %cst_54 = arith.constant 2.000000e-01 : f32
    %481 = vector.broadcast %cst_54 : f32 to vector<2x8x8xf32>
    %482 = arith.mulf %481, %478 : vector<2x8x8xf32>
    %483 = arith.select %480, %478, %482 : vector<2x8x8xi1>, vector<2x8x8xf32>
    %484 = arith.addf %483, %1 : vector<2x8x8xf32>
    %cst_55 = arith.constant dense<0xFF800000> : vector<2x8xf32>
    %485 = vector.multi_reduction <maximumf>, %484, %cst_55 [2] : vector<2x8x8xf32> to vector<2x8xf32>
    %486 = vector.shape_cast %485 : vector<2x8xf32> to vector<2x8x1xf32>
    %487 = vector.broadcast %486 : vector<2x8x1xf32> to vector<2x8x8xf32>
    %488 = arith.subf %484, %487 : vector<2x8x8xf32>
    %489 = math.exp %488 : vector<2x8x8xf32>
    %cst_56 = arith.constant dense<0.000000e+00> : vector<2x8xf32>
    %490 = vector.multi_reduction <add>, %489, %cst_56 [2] : vector<2x8x8xf32> to vector<2x8xf32>
    %491 = vector.shape_cast %490 : vector<2x8xf32> to vector<2x8x1xf32>
    %492 = tpu.reciprocal %491 {approx = true} : vector<2x8x1xf32> -> vector<2x8x1xf32>
    %493 = vector.broadcast %492 : vector<2x8x1xf32> to vector<2x8x8xf32>
    %494 = arith.mulf %489, %493 : vector<2x8x8xf32>
    %cst_57 = arith.constant 0.000000e+00 : f32
    %495 = vector.broadcast %cst_57 : f32 to vector<2x8x64xf32>
    %496 = vector.extract_strided_slice %494 {offsets = [0, 0, 0], sizes = [2, 8, 1], strides = [1, 1, 1]} : vector<2x8x8xf32> to vector<2x8x1xf32>
    %497 = vector.extract_strided_slice %459 {offsets = [0, 0, 0], sizes = [2, 1, 64], strides = [1, 1, 1]} : vector<2x8x64xf32> to vector<2x1x64xf32>
    %498 = vector.broadcast %496 : vector<2x8x1xf32> to vector<2x8x64xf32>
    %499 = vector.broadcast %497 : vector<2x1x64xf32> to vector<2x8x64xf32>
    %500 = arith.mulf %498, %499 : vector<2x8x64xf32>
    %501 = arith.addf %495, %500 : vector<2x8x64xf32>
    %502 = vector.extract_strided_slice %494 {offsets = [0, 0, 1], sizes = [2, 8, 1], strides = [1, 1, 1]} : vector<2x8x8xf32> to vector<2x8x1xf32>
    %503 = vector.extract_strided_slice %459 {offsets = [0, 1, 0], sizes = [2, 1, 64], strides = [1, 1, 1]} : vector<2x8x64xf32> to vector<2x1x64xf32>
    %504 = vector.broadcast %502 : vector<2x8x1xf32> to vector<2x8x64xf32>
    %505 = vector.broadcast %503 : vector<2x1x64xf32> to vector<2x8x64xf32>
    %506 = arith.mulf %504, %505 : vector<2x8x64xf32>
    %507 = arith.addf %501, %506 : vector<2x8x64xf32>
    %508 = vector.extract_strided_slice %494 {offsets = [0, 0, 2], sizes = [2, 8, 1], strides = [1, 1, 1]} : vector<2x8x8xf32> to vector<2x8x1xf32>
    %509 = vector.extract_strided_slice %459 {offsets = [0, 2, 0], sizes = [2, 1, 64], strides = [1, 1, 1]} : vector<2x8x64xf32> to vector<2x1x64xf32>
    %510 = vector.broadcast %508 : vector<2x8x1xf32> to vector<2x8x64xf32>
    %511 = vector.broadcast %509 : vector<2x1x64xf32> to vector<2x8x64xf32>
    %512 = arith.mulf %510, %511 : vector<2x8x64xf32>
    %513 = arith.addf %507, %512 : vector<2x8x64xf32>
    %514 = vector.extract_strided_slice %494 {offsets = [0, 0, 3], sizes = [2, 8, 1], strides = [1, 1, 1]} : vector<2x8x8xf32> to vector<2x8x1xf32>
    %515 = vector.extract_strided_slice %459 {offsets = [0, 3, 0], sizes = [2, 1, 64], strides = [1, 1, 1]} : vector<2x8x64xf32> to vector<2x1x64xf32>
    %516 = vector.broadcast %514 : vector<2x8x1xf32> to vector<2x8x64xf32>
    %517 = vector.broadcast %515 : vector<2x1x64xf32> to vector<2x8x64xf32>
    %518 = arith.mulf %516, %517 : vector<2x8x64xf32>
    %519 = arith.addf %513, %518 : vector<2x8x64xf32>
    %520 = vector.extract_strided_slice %494 {offsets = [0, 0, 4], sizes = [2, 8, 1], strides = [1, 1, 1]} : vector<2x8x8xf32> to vector<2x8x1xf32>
    %521 = vector.extract_strided_slice %459 {offsets = [0, 4, 0], sizes = [2, 1, 64], strides = [1, 1, 1]} : vector<2x8x64xf32> to vector<2x1x64xf32>
    %522 = vector.broadcast %520 : vector<2x8x1xf32> to vector<2x8x64xf32>
    %523 = vector.broadcast %521 : vector<2x1x64xf32> to vector<2x8x64xf32>
    %524 = arith.mulf %522, %523 : vector<2x8x64xf32>
    %525 = arith.addf %519, %524 : vector<2x8x64xf32>
    %526 = vector.extract_strided_slice %494 {offsets = [0, 0, 5], sizes = [2, 8, 1], strides = [1, 1, 1]} : vector<2x8x8xf32> to vector<2x8x1xf32>
    %527 = vector.extract_strided_slice %459 {offsets = [0, 5, 0], sizes = [2, 1, 64], strides = [1, 1, 1]} : vector<2x8x64xf32> to vector<2x1x64xf32>
    %528 = vector.broadcast %526 : vector<2x8x1xf32> to vector<2x8x64xf32>
    %529 = vector.broadcast %527 : vector<2x1x64xf32> to vector<2x8x64xf32>
    %530 = arith.mulf %528, %529 : vector<2x8x64xf32>
    %531 = arith.addf %525, %530 : vector<2x8x64xf32>
    %532 = vector.extract_strided_slice %494 {offsets = [0, 0, 6], sizes = [2, 8, 1], strides = [1, 1, 1]} : vector<2x8x8xf32> to vector<2x8x1xf32>
    %533 = vector.extract_strided_slice %459 {offsets = [0, 6, 0], sizes = [2, 1, 64], strides = [1, 1, 1]} : vector<2x8x64xf32> to vector<2x1x64xf32>
    %534 = vector.broadcast %532 : vector<2x8x1xf32> to vector<2x8x64xf32>
    %535 = vector.broadcast %533 : vector<2x1x64xf32> to vector<2x8x64xf32>
    %536 = arith.mulf %534, %535 : vector<2x8x64xf32>
    %537 = arith.addf %531, %536 : vector<2x8x64xf32>
    %538 = vector.extract_strided_slice %494 {offsets = [0, 0, 7], sizes = [2, 8, 1], strides = [1, 1, 1]} : vector<2x8x8xf32> to vector<2x8x1xf32>
    %539 = vector.extract_strided_slice %459 {offsets = [0, 7, 0], sizes = [2, 1, 64], strides = [1, 1, 1]} : vector<2x8x64xf32> to vector<2x1x64xf32>
    %540 = vector.broadcast %538 : vector<2x8x1xf32> to vector<2x8x64xf32>
    %541 = vector.broadcast %539 : vector<2x1x64xf32> to vector<2x8x64xf32>
    %542 = arith.mulf %540, %541 : vector<2x8x64xf32>
    %543 = arith.addf %537, %542 : vector<2x8x64xf32>
    %544 = vector.shape_cast %465 : vector<64xf32> to vector<1x1x64xf32>
    %545 = vector.broadcast %544 : vector<1x1x64xf32> to vector<2x8x64xf32>
    %546 = arith.addf %543, %545 : vector<2x8x64xf32>
    %547 = tpu.concatenate %370, %458, %546 in 2 : vector<2x8x64xf32>, vector<2x8x64xf32>, vector<2x8x64xf32> -> vector<2x8x192xf32>
    %cst_58 = arith.constant 0.000000e+00 : f32
    %548 = vector.broadcast %cst_58 : f32 to vector<2x8x192xf32>
    %549 = arith.maximumf %547, %548 : vector<2x8x192xf32>
    %550 = vector.shape_cast %549 : vector<2x8x192xf32> to vector<16x192xf32>
    %551 = arith.truncf %550 : vector<16x192xf32> to vector<16x192xbf16>
    %c0_59 = arith.constant 0 : index
    %c0_60 = arith.constant 0 : index
    %552 = vector.load %arg5[%c0_59, %c0_60] : memref<192x192xbf16, #tpu.memory_space<vmem>>, vector<192x192xbf16>
    %cst_61 = arith.constant dense<0.000000e+00> : vector<16x192xf32>
    %553 = tpu.matmul %551, %552, %cst_61 {dimension_numbers = #tpu.dot_dimension_numbers<[1], [0], [0], [1], [0, 0, 1, 1], [], []>} : vector<16x192xbf16>, vector<192x192xbf16>, vector<16x192xf32> -> vector<16x192xf32>
    %554 = vector.shape_cast %553 : vector<16x192xf32> to vector<2x8x192xf32>
    %c2 = arith.constant 2 : index
    %c0_62 = arith.constant 0 : index
    %c0_63 = arith.constant 0 : index
    %555 = vector.load %arg6[%c2, %c0_62, %c0_63] : memref<3x9x64xf32, #tpu.memory_space<vmem>>, vector<1x9x64xf32>
    %556 = vector.shape_cast %555 : vector<1x9x64xf32> to vector<9x64xf32>
    %557 = vector.extract_strided_slice %554 {offsets = [0, 0, 0], sizes = [2, 8, 64], strides = [1, 1, 1]} : vector<2x8x192xf32> to vector<2x8x64xf32>
    %558 = vector.extract_strided_slice %556 {offsets = [0, 0], sizes = [1, 64], strides = [1, 1]} : vector<9x64xf32> to vector<1x64xf32>
    %559 = vector.shape_cast %558 : vector<1x64xf32> to vector<64xf32>
    %560 = vector.extract_strided_slice %556 {offsets = [3, 0], sizes = [1, 64], strides = [1, 1]} : vector<9x64xf32> to vector<1x64xf32>
    %561 = vector.shape_cast %560 : vector<1x64xf32> to vector<64xf32>
    %562 = vector.extract_strided_slice %556 {offsets = [6, 0], sizes = [1, 64], strides = [1, 1]} : vector<9x64xf32> to vector<1x64xf32>
    %563 = vector.shape_cast %562 : vector<1x64xf32> to vector<64xf32>
    %564 = vector.shape_cast %559 : vector<64xf32> to vector<1x1x64xf32>
    %565 = vector.broadcast %564 : vector<1x1x64xf32> to vector<2x8x64xf32>
    %566 = arith.mulf %557, %565 : vector<2x8x64xf32>
    %cst_64 = arith.constant dense<0.000000e+00> : vector<2x8xf32>
    %567 = vector.multi_reduction <add>, %566, %cst_64 [2] : vector<2x8x64xf32> to vector<2x8xf32>
    %568 = vector.shape_cast %561 : vector<64xf32> to vector<1x1x64xf32>
    %569 = vector.broadcast %568 : vector<1x1x64xf32> to vector<2x8x64xf32>
    %570 = arith.mulf %557, %569 : vector<2x8x64xf32>
    %cst_65 = arith.constant dense<0.000000e+00> : vector<2x8xf32>
    %571 = vector.multi_reduction <add>, %570, %cst_65 [2] : vector<2x8x64xf32> to vector<2x8xf32>
    %572 = vector.shape_cast %567 : vector<2x8xf32> to vector<2x8x1xf32>
    %573 = vector.shape_cast %571 : vector<2x8xf32> to vector<2x1x8xf32>
    %574 = vector.broadcast %572 : vector<2x8x1xf32> to vector<2x8x8xf32>
    %575 = vector.broadcast %573 : vector<2x1x8xf32> to vector<2x8x8xf32>
    %576 = arith.addf %574, %575 : vector<2x8x8xf32>
    %cst_66 = arith.constant 0.000000e+00 : f32
    %577 = vector.broadcast %cst_66 : f32 to vector<2x8x8xf32>
    %578 = arith.cmpf ogt, %576, %577 : vector<2x8x8xf32>
    %cst_67 = arith.constant 2.000000e-01 : f32
    %579 = vector.broadcast %cst_67 : f32 to vector<2x8x8xf32>
    %580 = arith.mulf %579, %576 : vector<2x8x8xf32>
    %581 = arith.select %578, %576, %580 : vector<2x8x8xi1>, vector<2x8x8xf32>
    %582 = arith.addf %581, %1 : vector<2x8x8xf32>
    %cst_68 = arith.constant dense<0xFF800000> : vector<2x8xf32>
    %583 = vector.multi_reduction <maximumf>, %582, %cst_68 [2] : vector<2x8x8xf32> to vector<2x8xf32>
    %584 = vector.shape_cast %583 : vector<2x8xf32> to vector<2x8x1xf32>
    %585 = vector.broadcast %584 : vector<2x8x1xf32> to vector<2x8x8xf32>
    %586 = arith.subf %582, %585 : vector<2x8x8xf32>
    %587 = math.exp %586 : vector<2x8x8xf32>
    %cst_69 = arith.constant dense<0.000000e+00> : vector<2x8xf32>
    %588 = vector.multi_reduction <add>, %587, %cst_69 [2] : vector<2x8x8xf32> to vector<2x8xf32>
    %589 = vector.shape_cast %588 : vector<2x8xf32> to vector<2x8x1xf32>
    %590 = tpu.reciprocal %589 {approx = true} : vector<2x8x1xf32> -> vector<2x8x1xf32>
    %591 = vector.broadcast %590 : vector<2x8x1xf32> to vector<2x8x8xf32>
    %592 = arith.mulf %587, %591 : vector<2x8x8xf32>
    %cst_70 = arith.constant 0.000000e+00 : f32
    %593 = vector.broadcast %cst_70 : f32 to vector<2x8x64xf32>
    %594 = vector.extract_strided_slice %592 {offsets = [0, 0, 0], sizes = [2, 8, 1], strides = [1, 1, 1]} : vector<2x8x8xf32> to vector<2x8x1xf32>
    %595 = vector.extract_strided_slice %557 {offsets = [0, 0, 0], sizes = [2, 1, 64], strides = [1, 1, 1]} : vector<2x8x64xf32> to vector<2x1x64xf32>
    %596 = vector.broadcast %594 : vector<2x8x1xf32> to vector<2x8x64xf32>
    %597 = vector.broadcast %595 : vector<2x1x64xf32> to vector<2x8x64xf32>
    %598 = arith.mulf %596, %597 : vector<2x8x64xf32>
    %599 = arith.addf %593, %598 : vector<2x8x64xf32>
    %600 = vector.extract_strided_slice %592 {offsets = [0, 0, 1], sizes = [2, 8, 1], strides = [1, 1, 1]} : vector<2x8x8xf32> to vector<2x8x1xf32>
    %601 = vector.extract_strided_slice %557 {offsets = [0, 1, 0], sizes = [2, 1, 64], strides = [1, 1, 1]} : vector<2x8x64xf32> to vector<2x1x64xf32>
    %602 = vector.broadcast %600 : vector<2x8x1xf32> to vector<2x8x64xf32>
    %603 = vector.broadcast %601 : vector<2x1x64xf32> to vector<2x8x64xf32>
    %604 = arith.mulf %602, %603 : vector<2x8x64xf32>
    %605 = arith.addf %599, %604 : vector<2x8x64xf32>
    %606 = vector.extract_strided_slice %592 {offsets = [0, 0, 2], sizes = [2, 8, 1], strides = [1, 1, 1]} : vector<2x8x8xf32> to vector<2x8x1xf32>
    %607 = vector.extract_strided_slice %557 {offsets = [0, 2, 0], sizes = [2, 1, 64], strides = [1, 1, 1]} : vector<2x8x64xf32> to vector<2x1x64xf32>
    %608 = vector.broadcast %606 : vector<2x8x1xf32> to vector<2x8x64xf32>
    %609 = vector.broadcast %607 : vector<2x1x64xf32> to vector<2x8x64xf32>
    %610 = arith.mulf %608, %609 : vector<2x8x64xf32>
    %611 = arith.addf %605, %610 : vector<2x8x64xf32>
    %612 = vector.extract_strided_slice %592 {offsets = [0, 0, 3], sizes = [2, 8, 1], strides = [1, 1, 1]} : vector<2x8x8xf32> to vector<2x8x1xf32>
    %613 = vector.extract_strided_slice %557 {offsets = [0, 3, 0], sizes = [2, 1, 64], strides = [1, 1, 1]} : vector<2x8x64xf32> to vector<2x1x64xf32>
    %614 = vector.broadcast %612 : vector<2x8x1xf32> to vector<2x8x64xf32>
    %615 = vector.broadcast %613 : vector<2x1x64xf32> to vector<2x8x64xf32>
    %616 = arith.mulf %614, %615 : vector<2x8x64xf32>
    %617 = arith.addf %611, %616 : vector<2x8x64xf32>
    %618 = vector.extract_strided_slice %592 {offsets = [0, 0, 4], sizes = [2, 8, 1], strides = [1, 1, 1]} : vector<2x8x8xf32> to vector<2x8x1xf32>
    %619 = vector.extract_strided_slice %557 {offsets = [0, 4, 0], sizes = [2, 1, 64], strides = [1, 1, 1]} : vector<2x8x64xf32> to vector<2x1x64xf32>
    %620 = vector.broadcast %618 : vector<2x8x1xf32> to vector<2x8x64xf32>
    %621 = vector.broadcast %619 : vector<2x1x64xf32> to vector<2x8x64xf32>
    %622 = arith.mulf %620, %621 : vector<2x8x64xf32>
    %623 = arith.addf %617, %622 : vector<2x8x64xf32>
    %624 = vector.extract_strided_slice %592 {offsets = [0, 0, 5], sizes = [2, 8, 1], strides = [1, 1, 1]} : vector<2x8x8xf32> to vector<2x8x1xf32>
    %625 = vector.extract_strided_slice %557 {offsets = [0, 5, 0], sizes = [2, 1, 64], strides = [1, 1, 1]} : vector<2x8x64xf32> to vector<2x1x64xf32>
    %626 = vector.broadcast %624 : vector<2x8x1xf32> to vector<2x8x64xf32>
    %627 = vector.broadcast %625 : vector<2x1x64xf32> to vector<2x8x64xf32>
    %628 = arith.mulf %626, %627 : vector<2x8x64xf32>
    %629 = arith.addf %623, %628 : vector<2x8x64xf32>
    %630 = vector.extract_strided_slice %592 {offsets = [0, 0, 6], sizes = [2, 8, 1], strides = [1, 1, 1]} : vector<2x8x8xf32> to vector<2x8x1xf32>
    %631 = vector.extract_strided_slice %557 {offsets = [0, 6, 0], sizes = [2, 1, 64], strides = [1, 1, 1]} : vector<2x8x64xf32> to vector<2x1x64xf32>
    %632 = vector.broadcast %630 : vector<2x8x1xf32> to vector<2x8x64xf32>
    %633 = vector.broadcast %631 : vector<2x1x64xf32> to vector<2x8x64xf32>
    %634 = arith.mulf %632, %633 : vector<2x8x64xf32>
    %635 = arith.addf %629, %634 : vector<2x8x64xf32>
    %636 = vector.extract_strided_slice %592 {offsets = [0, 0, 7], sizes = [2, 8, 1], strides = [1, 1, 1]} : vector<2x8x8xf32> to vector<2x8x1xf32>
    %637 = vector.extract_strided_slice %557 {offsets = [0, 7, 0], sizes = [2, 1, 64], strides = [1, 1, 1]} : vector<2x8x64xf32> to vector<2x1x64xf32>
    %638 = vector.broadcast %636 : vector<2x8x1xf32> to vector<2x8x64xf32>
    %639 = vector.broadcast %637 : vector<2x1x64xf32> to vector<2x8x64xf32>
    %640 = arith.mulf %638, %639 : vector<2x8x64xf32>
    %641 = arith.addf %635, %640 : vector<2x8x64xf32>
    %642 = vector.shape_cast %563 : vector<64xf32> to vector<1x1x64xf32>
    %643 = vector.broadcast %642 : vector<1x1x64xf32> to vector<2x8x64xf32>
    %644 = arith.addf %641, %643 : vector<2x8x64xf32>
    %645 = vector.extract_strided_slice %554 {offsets = [0, 0, 64], sizes = [2, 8, 64], strides = [1, 1, 1]} : vector<2x8x192xf32> to vector<2x8x64xf32>
    %646 = vector.extract_strided_slice %556 {offsets = [1, 0], sizes = [1, 64], strides = [1, 1]} : vector<9x64xf32> to vector<1x64xf32>
    %647 = vector.shape_cast %646 : vector<1x64xf32> to vector<64xf32>
    %648 = vector.extract_strided_slice %556 {offsets = [4, 0], sizes = [1, 64], strides = [1, 1]} : vector<9x64xf32> to vector<1x64xf32>
    %649 = vector.shape_cast %648 : vector<1x64xf32> to vector<64xf32>
    %650 = vector.extract_strided_slice %556 {offsets = [7, 0], sizes = [1, 64], strides = [1, 1]} : vector<9x64xf32> to vector<1x64xf32>
    %651 = vector.shape_cast %650 : vector<1x64xf32> to vector<64xf32>
    %652 = vector.shape_cast %647 : vector<64xf32> to vector<1x1x64xf32>
    %653 = vector.broadcast %652 : vector<1x1x64xf32> to vector<2x8x64xf32>
    %654 = arith.mulf %645, %653 : vector<2x8x64xf32>
    %cst_71 = arith.constant dense<0.000000e+00> : vector<2x8xf32>
    %655 = vector.multi_reduction <add>, %654, %cst_71 [2] : vector<2x8x64xf32> to vector<2x8xf32>
    %656 = vector.shape_cast %649 : vector<64xf32> to vector<1x1x64xf32>
    %657 = vector.broadcast %656 : vector<1x1x64xf32> to vector<2x8x64xf32>
    %658 = arith.mulf %645, %657 : vector<2x8x64xf32>
    %cst_72 = arith.constant dense<0.000000e+00> : vector<2x8xf32>
    %659 = vector.multi_reduction <add>, %658, %cst_72 [2] : vector<2x8x64xf32> to vector<2x8xf32>
    %660 = vector.shape_cast %655 : vector<2x8xf32> to vector<2x8x1xf32>
    %661 = vector.shape_cast %659 : vector<2x8xf32> to vector<2x1x8xf32>
    %662 = vector.broadcast %660 : vector<2x8x1xf32> to vector<2x8x8xf32>
    %663 = vector.broadcast %661 : vector<2x1x8xf32> to vector<2x8x8xf32>
    %664 = arith.addf %662, %663 : vector<2x8x8xf32>
    %cst_73 = arith.constant 0.000000e+00 : f32
    %665 = vector.broadcast %cst_73 : f32 to vector<2x8x8xf32>
    %666 = arith.cmpf ogt, %664, %665 : vector<2x8x8xf32>
    %cst_74 = arith.constant 2.000000e-01 : f32
    %667 = vector.broadcast %cst_74 : f32 to vector<2x8x8xf32>
    %668 = arith.mulf %667, %664 : vector<2x8x8xf32>
    %669 = arith.select %666, %664, %668 : vector<2x8x8xi1>, vector<2x8x8xf32>
    %670 = arith.addf %669, %1 : vector<2x8x8xf32>
    %cst_75 = arith.constant dense<0xFF800000> : vector<2x8xf32>
    %671 = vector.multi_reduction <maximumf>, %670, %cst_75 [2] : vector<2x8x8xf32> to vector<2x8xf32>
    %672 = vector.shape_cast %671 : vector<2x8xf32> to vector<2x8x1xf32>
    %673 = vector.broadcast %672 : vector<2x8x1xf32> to vector<2x8x8xf32>
    %674 = arith.subf %670, %673 : vector<2x8x8xf32>
    %675 = math.exp %674 : vector<2x8x8xf32>
    %cst_76 = arith.constant dense<0.000000e+00> : vector<2x8xf32>
    %676 = vector.multi_reduction <add>, %675, %cst_76 [2] : vector<2x8x8xf32> to vector<2x8xf32>
    %677 = vector.shape_cast %676 : vector<2x8xf32> to vector<2x8x1xf32>
    %678 = tpu.reciprocal %677 {approx = true} : vector<2x8x1xf32> -> vector<2x8x1xf32>
    %679 = vector.broadcast %678 : vector<2x8x1xf32> to vector<2x8x8xf32>
    %680 = arith.mulf %675, %679 : vector<2x8x8xf32>
    %cst_77 = arith.constant 0.000000e+00 : f32
    %681 = vector.broadcast %cst_77 : f32 to vector<2x8x64xf32>
    %682 = vector.extract_strided_slice %680 {offsets = [0, 0, 0], sizes = [2, 8, 1], strides = [1, 1, 1]} : vector<2x8x8xf32> to vector<2x8x1xf32>
    %683 = vector.extract_strided_slice %645 {offsets = [0, 0, 0], sizes = [2, 1, 64], strides = [1, 1, 1]} : vector<2x8x64xf32> to vector<2x1x64xf32>
    %684 = vector.broadcast %682 : vector<2x8x1xf32> to vector<2x8x64xf32>
    %685 = vector.broadcast %683 : vector<2x1x64xf32> to vector<2x8x64xf32>
    %686 = arith.mulf %684, %685 : vector<2x8x64xf32>
    %687 = arith.addf %681, %686 : vector<2x8x64xf32>
    %688 = vector.extract_strided_slice %680 {offsets = [0, 0, 1], sizes = [2, 8, 1], strides = [1, 1, 1]} : vector<2x8x8xf32> to vector<2x8x1xf32>
    %689 = vector.extract_strided_slice %645 {offsets = [0, 1, 0], sizes = [2, 1, 64], strides = [1, 1, 1]} : vector<2x8x64xf32> to vector<2x1x64xf32>
    %690 = vector.broadcast %688 : vector<2x8x1xf32> to vector<2x8x64xf32>
    %691 = vector.broadcast %689 : vector<2x1x64xf32> to vector<2x8x64xf32>
    %692 = arith.mulf %690, %691 : vector<2x8x64xf32>
    %693 = arith.addf %687, %692 : vector<2x8x64xf32>
    %694 = vector.extract_strided_slice %680 {offsets = [0, 0, 2], sizes = [2, 8, 1], strides = [1, 1, 1]} : vector<2x8x8xf32> to vector<2x8x1xf32>
    %695 = vector.extract_strided_slice %645 {offsets = [0, 2, 0], sizes = [2, 1, 64], strides = [1, 1, 1]} : vector<2x8x64xf32> to vector<2x1x64xf32>
    %696 = vector.broadcast %694 : vector<2x8x1xf32> to vector<2x8x64xf32>
    %697 = vector.broadcast %695 : vector<2x1x64xf32> to vector<2x8x64xf32>
    %698 = arith.mulf %696, %697 : vector<2x8x64xf32>
    %699 = arith.addf %693, %698 : vector<2x8x64xf32>
    %700 = vector.extract_strided_slice %680 {offsets = [0, 0, 3], sizes = [2, 8, 1], strides = [1, 1, 1]} : vector<2x8x8xf32> to vector<2x8x1xf32>
    %701 = vector.extract_strided_slice %645 {offsets = [0, 3, 0], sizes = [2, 1, 64], strides = [1, 1, 1]} : vector<2x8x64xf32> to vector<2x1x64xf32>
    %702 = vector.broadcast %700 : vector<2x8x1xf32> to vector<2x8x64xf32>
    %703 = vector.broadcast %701 : vector<2x1x64xf32> to vector<2x8x64xf32>
    %704 = arith.mulf %702, %703 : vector<2x8x64xf32>
    %705 = arith.addf %699, %704 : vector<2x8x64xf32>
    %706 = vector.extract_strided_slice %680 {offsets = [0, 0, 4], sizes = [2, 8, 1], strides = [1, 1, 1]} : vector<2x8x8xf32> to vector<2x8x1xf32>
    %707 = vector.extract_strided_slice %645 {offsets = [0, 4, 0], sizes = [2, 1, 64], strides = [1, 1, 1]} : vector<2x8x64xf32> to vector<2x1x64xf32>
    %708 = vector.broadcast %706 : vector<2x8x1xf32> to vector<2x8x64xf32>
    %709 = vector.broadcast %707 : vector<2x1x64xf32> to vector<2x8x64xf32>
    %710 = arith.mulf %708, %709 : vector<2x8x64xf32>
    %711 = arith.addf %705, %710 : vector<2x8x64xf32>
    %712 = vector.extract_strided_slice %680 {offsets = [0, 0, 5], sizes = [2, 8, 1], strides = [1, 1, 1]} : vector<2x8x8xf32> to vector<2x8x1xf32>
    %713 = vector.extract_strided_slice %645 {offsets = [0, 5, 0], sizes = [2, 1, 64], strides = [1, 1, 1]} : vector<2x8x64xf32> to vector<2x1x64xf32>
    %714 = vector.broadcast %712 : vector<2x8x1xf32> to vector<2x8x64xf32>
    %715 = vector.broadcast %713 : vector<2x1x64xf32> to vector<2x8x64xf32>
    %716 = arith.mulf %714, %715 : vector<2x8x64xf32>
    %717 = arith.addf %711, %716 : vector<2x8x64xf32>
    %718 = vector.extract_strided_slice %680 {offsets = [0, 0, 6], sizes = [2, 8, 1], strides = [1, 1, 1]} : vector<2x8x8xf32> to vector<2x8x1xf32>
    %719 = vector.extract_strided_slice %645 {offsets = [0, 6, 0], sizes = [2, 1, 64], strides = [1, 1, 1]} : vector<2x8x64xf32> to vector<2x1x64xf32>
    %720 = vector.broadcast %718 : vector<2x8x1xf32> to vector<2x8x64xf32>
    %721 = vector.broadcast %719 : vector<2x1x64xf32> to vector<2x8x64xf32>
    %722 = arith.mulf %720, %721 : vector<2x8x64xf32>
    %723 = arith.addf %717, %722 : vector<2x8x64xf32>
    %724 = vector.extract_strided_slice %680 {offsets = [0, 0, 7], sizes = [2, 8, 1], strides = [1, 1, 1]} : vector<2x8x8xf32> to vector<2x8x1xf32>
    %725 = vector.extract_strided_slice %645 {offsets = [0, 7, 0], sizes = [2, 1, 64], strides = [1, 1, 1]} : vector<2x8x64xf32> to vector<2x1x64xf32>
    %726 = vector.broadcast %724 : vector<2x8x1xf32> to vector<2x8x64xf32>
    %727 = vector.broadcast %725 : vector<2x1x64xf32> to vector<2x8x64xf32>
    %728 = arith.mulf %726, %727 : vector<2x8x64xf32>
    %729 = arith.addf %723, %728 : vector<2x8x64xf32>
    %730 = vector.shape_cast %651 : vector<64xf32> to vector<1x1x64xf32>
    %731 = vector.broadcast %730 : vector<1x1x64xf32> to vector<2x8x64xf32>
    %732 = arith.addf %729, %731 : vector<2x8x64xf32>
    %733 = vector.extract_strided_slice %554 {offsets = [0, 0, 128], sizes = [2, 8, 64], strides = [1, 1, 1]} : vector<2x8x192xf32> to vector<2x8x64xf32>
    %734 = vector.extract_strided_slice %556 {offsets = [2, 0], sizes = [1, 64], strides = [1, 1]} : vector<9x64xf32> to vector<1x64xf32>
    %735 = vector.shape_cast %734 : vector<1x64xf32> to vector<64xf32>
    %736 = vector.extract_strided_slice %556 {offsets = [5, 0], sizes = [1, 64], strides = [1, 1]} : vector<9x64xf32> to vector<1x64xf32>
    %737 = vector.shape_cast %736 : vector<1x64xf32> to vector<64xf32>
    %738 = vector.extract_strided_slice %556 {offsets = [8, 0], sizes = [1, 64], strides = [1, 1]} : vector<9x64xf32> to vector<1x64xf32>
    %739 = vector.shape_cast %738 : vector<1x64xf32> to vector<64xf32>
    %740 = vector.shape_cast %735 : vector<64xf32> to vector<1x1x64xf32>
    %741 = vector.broadcast %740 : vector<1x1x64xf32> to vector<2x8x64xf32>
    %742 = arith.mulf %733, %741 : vector<2x8x64xf32>
    %cst_78 = arith.constant dense<0.000000e+00> : vector<2x8xf32>
    %743 = vector.multi_reduction <add>, %742, %cst_78 [2] : vector<2x8x64xf32> to vector<2x8xf32>
    %744 = vector.shape_cast %737 : vector<64xf32> to vector<1x1x64xf32>
    %745 = vector.broadcast %744 : vector<1x1x64xf32> to vector<2x8x64xf32>
    %746 = arith.mulf %733, %745 : vector<2x8x64xf32>
    %cst_79 = arith.constant dense<0.000000e+00> : vector<2x8xf32>
    %747 = vector.multi_reduction <add>, %746, %cst_79 [2] : vector<2x8x64xf32> to vector<2x8xf32>
    %748 = vector.shape_cast %743 : vector<2x8xf32> to vector<2x8x1xf32>
    %749 = vector.shape_cast %747 : vector<2x8xf32> to vector<2x1x8xf32>
    %750 = vector.broadcast %748 : vector<2x8x1xf32> to vector<2x8x8xf32>
    %751 = vector.broadcast %749 : vector<2x1x8xf32> to vector<2x8x8xf32>
    %752 = arith.addf %750, %751 : vector<2x8x8xf32>
    %cst_80 = arith.constant 0.000000e+00 : f32
    %753 = vector.broadcast %cst_80 : f32 to vector<2x8x8xf32>
    %754 = arith.cmpf ogt, %752, %753 : vector<2x8x8xf32>
    %cst_81 = arith.constant 2.000000e-01 : f32
    %755 = vector.broadcast %cst_81 : f32 to vector<2x8x8xf32>
    %756 = arith.mulf %755, %752 : vector<2x8x8xf32>
    %757 = arith.select %754, %752, %756 : vector<2x8x8xi1>, vector<2x8x8xf32>
    %758 = arith.addf %757, %1 : vector<2x8x8xf32>
    %cst_82 = arith.constant dense<0xFF800000> : vector<2x8xf32>
    %759 = vector.multi_reduction <maximumf>, %758, %cst_82 [2] : vector<2x8x8xf32> to vector<2x8xf32>
    %760 = vector.shape_cast %759 : vector<2x8xf32> to vector<2x8x1xf32>
    %761 = vector.broadcast %760 : vector<2x8x1xf32> to vector<2x8x8xf32>
    %762 = arith.subf %758, %761 : vector<2x8x8xf32>
    %763 = math.exp %762 : vector<2x8x8xf32>
    %cst_83 = arith.constant dense<0.000000e+00> : vector<2x8xf32>
    %764 = vector.multi_reduction <add>, %763, %cst_83 [2] : vector<2x8x8xf32> to vector<2x8xf32>
    %765 = vector.shape_cast %764 : vector<2x8xf32> to vector<2x8x1xf32>
    %766 = tpu.reciprocal %765 {approx = true} : vector<2x8x1xf32> -> vector<2x8x1xf32>
    %767 = vector.broadcast %766 : vector<2x8x1xf32> to vector<2x8x8xf32>
    %768 = arith.mulf %763, %767 : vector<2x8x8xf32>
    %cst_84 = arith.constant 0.000000e+00 : f32
    %769 = vector.broadcast %cst_84 : f32 to vector<2x8x64xf32>
    %770 = vector.extract_strided_slice %768 {offsets = [0, 0, 0], sizes = [2, 8, 1], strides = [1, 1, 1]} : vector<2x8x8xf32> to vector<2x8x1xf32>
    %771 = vector.extract_strided_slice %733 {offsets = [0, 0, 0], sizes = [2, 1, 64], strides = [1, 1, 1]} : vector<2x8x64xf32> to vector<2x1x64xf32>
    %772 = vector.broadcast %770 : vector<2x8x1xf32> to vector<2x8x64xf32>
    %773 = vector.broadcast %771 : vector<2x1x64xf32> to vector<2x8x64xf32>
    %774 = arith.mulf %772, %773 : vector<2x8x64xf32>
    %775 = arith.addf %769, %774 : vector<2x8x64xf32>
    %776 = vector.extract_strided_slice %768 {offsets = [0, 0, 1], sizes = [2, 8, 1], strides = [1, 1, 1]} : vector<2x8x8xf32> to vector<2x8x1xf32>
    %777 = vector.extract_strided_slice %733 {offsets = [0, 1, 0], sizes = [2, 1, 64], strides = [1, 1, 1]} : vector<2x8x64xf32> to vector<2x1x64xf32>
    %778 = vector.broadcast %776 : vector<2x8x1xf32> to vector<2x8x64xf32>
    %779 = vector.broadcast %777 : vector<2x1x64xf32> to vector<2x8x64xf32>
    %780 = arith.mulf %778, %779 : vector<2x8x64xf32>
    %781 = arith.addf %775, %780 : vector<2x8x64xf32>
    %782 = vector.extract_strided_slice %768 {offsets = [0, 0, 2], sizes = [2, 8, 1], strides = [1, 1, 1]} : vector<2x8x8xf32> to vector<2x8x1xf32>
    %783 = vector.extract_strided_slice %733 {offsets = [0, 2, 0], sizes = [2, 1, 64], strides = [1, 1, 1]} : vector<2x8x64xf32> to vector<2x1x64xf32>
    %784 = vector.broadcast %782 : vector<2x8x1xf32> to vector<2x8x64xf32>
    %785 = vector.broadcast %783 : vector<2x1x64xf32> to vector<2x8x64xf32>
    %786 = arith.mulf %784, %785 : vector<2x8x64xf32>
    %787 = arith.addf %781, %786 : vector<2x8x64xf32>
    %788 = vector.extract_strided_slice %768 {offsets = [0, 0, 3], sizes = [2, 8, 1], strides = [1, 1, 1]} : vector<2x8x8xf32> to vector<2x8x1xf32>
    %789 = vector.extract_strided_slice %733 {offsets = [0, 3, 0], sizes = [2, 1, 64], strides = [1, 1, 1]} : vector<2x8x64xf32> to vector<2x1x64xf32>
    %790 = vector.broadcast %788 : vector<2x8x1xf32> to vector<2x8x64xf32>
    %791 = vector.broadcast %789 : vector<2x1x64xf32> to vector<2x8x64xf32>
    %792 = arith.mulf %790, %791 : vector<2x8x64xf32>
    %793 = arith.addf %787, %792 : vector<2x8x64xf32>
    %794 = vector.extract_strided_slice %768 {offsets = [0, 0, 4], sizes = [2, 8, 1], strides = [1, 1, 1]} : vector<2x8x8xf32> to vector<2x8x1xf32>
    %795 = vector.extract_strided_slice %733 {offsets = [0, 4, 0], sizes = [2, 1, 64], strides = [1, 1, 1]} : vector<2x8x64xf32> to vector<2x1x64xf32>
    %796 = vector.broadcast %794 : vector<2x8x1xf32> to vector<2x8x64xf32>
    %797 = vector.broadcast %795 : vector<2x1x64xf32> to vector<2x8x64xf32>
    %798 = arith.mulf %796, %797 : vector<2x8x64xf32>
    %799 = arith.addf %793, %798 : vector<2x8x64xf32>
    %800 = vector.extract_strided_slice %768 {offsets = [0, 0, 5], sizes = [2, 8, 1], strides = [1, 1, 1]} : vector<2x8x8xf32> to vector<2x8x1xf32>
    %801 = vector.extract_strided_slice %733 {offsets = [0, 5, 0], sizes = [2, 1, 64], strides = [1, 1, 1]} : vector<2x8x64xf32> to vector<2x1x64xf32>
    %802 = vector.broadcast %800 : vector<2x8x1xf32> to vector<2x8x64xf32>
    %803 = vector.broadcast %801 : vector<2x1x64xf32> to vector<2x8x64xf32>
    %804 = arith.mulf %802, %803 : vector<2x8x64xf32>
    %805 = arith.addf %799, %804 : vector<2x8x64xf32>
    %806 = vector.extract_strided_slice %768 {offsets = [0, 0, 6], sizes = [2, 8, 1], strides = [1, 1, 1]} : vector<2x8x8xf32> to vector<2x8x1xf32>
    %807 = vector.extract_strided_slice %733 {offsets = [0, 6, 0], sizes = [2, 1, 64], strides = [1, 1, 1]} : vector<2x8x64xf32> to vector<2x1x64xf32>
    %808 = vector.broadcast %806 : vector<2x8x1xf32> to vector<2x8x64xf32>
    %809 = vector.broadcast %807 : vector<2x1x64xf32> to vector<2x8x64xf32>
    %810 = arith.mulf %808, %809 : vector<2x8x64xf32>
    %811 = arith.addf %805, %810 : vector<2x8x64xf32>
    %812 = vector.extract_strided_slice %768 {offsets = [0, 0, 7], sizes = [2, 8, 1], strides = [1, 1, 1]} : vector<2x8x8xf32> to vector<2x8x1xf32>
    %813 = vector.extract_strided_slice %733 {offsets = [0, 7, 0], sizes = [2, 1, 64], strides = [1, 1, 1]} : vector<2x8x64xf32> to vector<2x1x64xf32>
    %814 = vector.broadcast %812 : vector<2x8x1xf32> to vector<2x8x64xf32>
    %815 = vector.broadcast %813 : vector<2x1x64xf32> to vector<2x8x64xf32>
    %816 = arith.mulf %814, %815 : vector<2x8x64xf32>
    %817 = arith.addf %811, %816 : vector<2x8x64xf32>
    %818 = vector.shape_cast %739 : vector<64xf32> to vector<1x1x64xf32>
    %819 = vector.broadcast %818 : vector<1x1x64xf32> to vector<2x8x64xf32>
    %820 = arith.addf %817, %819 : vector<2x8x64xf32>
    %821 = arith.addf %644, %732 : vector<2x8x64xf32>
    %822 = arith.addf %821, %820 : vector<2x8x64xf32>
    %cst_85 = arith.constant 0.333333343 : f32
    %823 = vector.broadcast %cst_85 : f32 to vector<2x8x64xf32>
    %824 = arith.mulf %822, %823 : vector<2x8x64xf32>
    %cst_86 = arith.constant 0.000000e+00 : f32
    %825 = vector.broadcast %cst_86 : f32 to vector<2x8x64xf32>
    %826 = arith.maximumf %824, %825 : vector<2x8x64xf32>
    %cst_87 = arith.constant dense<0xFF800000> : vector<2x64xf32>
    %827 = vector.multi_reduction <maximumf>, %826, %cst_87 [1] : vector<2x8x64xf32> to vector<2x64xf32>
    %c0_88 = arith.constant 0 : index
    %c0_89 = arith.constant 0 : index
    %828 = vector.load %arg7[%c0_88, %c0_89] : memref<2x64xf32, #tpu.memory_space<vmem>>, vector<2x64xf32>
    tpu.vector_store %arg7[%c0_88, %c0_89], %827 {strides = array<i32>} : memref<2x64xf32, #tpu.memory_space<vmem>>, vector<2x64xf32>,
    return
  }
  func.func @transform_0(%arg0: i32) -> (i32, i32, i32) {
    %c0_i32 = arith.constant 0 : i32
    %c0_i32_0 = arith.constant 0 : i32
    %c0_i32_1 = arith.constant 0 : i32
    return %arg0, %c0_i32, %c0_i32_0 : i32, i32, i32
  }
  func.func @transform_1(%arg0: i32) -> (i32, i32, i32) {
    %c0_i32 = arith.constant 0 : i32
    %c0_i32_0 = arith.constant 0 : i32
    %c0_i32_1 = arith.constant 0 : i32
    return %arg0, %c0_i32, %c0_i32_0 : i32, i32, i32
  }
  func.func @transform_2(%arg0: i32) -> (i32, i32) {
    %c0_i32 = arith.constant 0 : i32
    %c0_i32_0 = arith.constant 0 : i32
    %c0_i32_1 = arith.constant 0 : i32
    return %c0_i32, %c0_i32_0 : i32, i32
  }
  func.func @transform_3(%arg0: i32) -> (i32, i32) {
    %c0_i32 = arith.constant 0 : i32
    %c0_i32_0 = arith.constant 0 : i32
    %c0_i32_1 = arith.constant 0 : i32
    return %c0_i32, %c0_i32_0 : i32, i32
  }
  func.func @transform_4(%arg0: i32) -> (i32, i32) {
    %c0_i32 = arith.constant 0 : i32
    %c0_i32_0 = arith.constant 0 : i32
    %c0_i32_1 = arith.constant 0 : i32
    return %c0_i32, %c0_i32_0 : i32, i32
  }
  func.func @transform_5(%arg0: i32) -> (i32, i32, i32) {
    %c0_i32 = arith.constant 0 : i32
    %c0_i32_0 = arith.constant 0 : i32
    %c0_i32_1 = arith.constant 0 : i32
    %c0_i32_2 = arith.constant 0 : i32
    return %c0_i32, %c0_i32_0, %c0_i32_1 : i32, i32, i32
  }
  func.func @transform_6(%arg0: i32) -> (i32, i32) {
    %c0_i32 = arith.constant 0 : i32
    %c0_i32_0 = arith.constant 0 : i32
    return %arg0, %c0_i32 : i32, i32
  }
}

</mosaic_0001>

<bundles_post_ra>
// kernel: tpu_custom_call.1
= control target key start
LH: loop header
LB: loop body
LE: loop exit
PB: predicated region body
PF: predicated region fallthrough
CT: control target
= control target key end

     0   :  { %11 = vsyncpa [#allocation3], 0  ;;  %s4240_s0 = inlined_call_operand.vmem [shape: bf16[2,8,8], index: 0, kind: input, shape index: {}]   ;;  %s4241_s1 = inlined_call_operand.vmem [shape: bf16[2,8,128], index: 1, kind: input, shape index: {}]   ;;  %s4242_s2 = inlined_call_operand.vmem [shape: bf16[128,192], index: 2, kind: input, shape index: {}]   ;;  %s4243_s3 = inlined_call_operand.vmem [shape: bf16[192,192], index: 3, kind: input, shape index: {}]   ;;  %s4244_s4 = inlined_call_operand.hbm [shape: bf16[192,192], index: 4, kind: input, shape index: {}]   ;;  %s4245_s5 = inlined_call_operand.vmem [shape: f32[3,9,64], index: 5, kind: input, shape index: {}]   ;;  %s4246_s6 = inlined_call_operand.hbm [shape: f32[2,64], index: 6, kind: output, shape index: {}]  }
   0x1   :  { %12 = vsyncpa [#allocation4], 0  ;;  %s25_s23 = sshll.u32 %s4244_s4, 4  ;;  %s2991_s24 = smov [#allocation2]   ;;  %s26_s23 = int_to_ptr.hbm [resolvable:$true] %s25_s23 }
   0x2   :  { %s27_s25 = sshll.u32 %s2991_s24, 4  ;;  %s2992_s26 = smov 128   ;;  %s28_s25 = int_to_ptr.vmem [resolvable:$true] %s27_s25 }
   0x3   :  { %s2993_s27 = smov 8  }
   0x4   :  { %33 = dma.hbm_to_vmem [thread:$0]  %s26_s23, 3072, %s28_s25, [#allocation3], %s2992_s26, %s2992_s26, %s2993_s27  }
   0x5   :  { %2987 = dma.done.wait [#allocation3], 3072  }
   0x6   :  { %2988 = vsyncadd [#allocation3], 4294964224  ;;  %v2434_v0 = vld [vmem:[%s4242_s2 + $0x70] sm:$0xf]  ;;  %v2656_v1 = vld [vmem:[%s4242_s2 + $0x74] sm:$0xf0] }
   0x7   :  { %v2426_v2 = vld [vmem:[%s4242_s2 + $0x60] sm:$0xf]  ;;  %v2435_v3 = vor.u32 %v2656_v1, %v2434_v0  ;;  %v2654_v4 = vld [vmem:[%s4242_s2 + $0x64] sm:$0xf0]  ;;  %v2418_v6 = vld [vmem:[%s4242_s2 + $0x50] sm:$0xf] }
   0x8   :  { %v2427_v5 = vor.u32 %v2654_v4, %v2426_v2  ;;  %v2652_v7 = vld [vmem:[%s4242_s2 + $0x54] sm:$0xf0]  ;;  %v2655_v8 = vld [vmem:[%s4242_s2 + $0x74] sm:$0xf]  ;;  %v2436_v9 = vld [vmem:[%s4242_s2 + $0x78] sm:$0xf0] }
   0x9   :  { %149 = vmatpush.bf16.msra.mxu0 %v2435_v3  ;;  %v3069_v10 = vld [vmem:[%s4245_s5] sm:$0xff]  ;;  %v2419_v12 = vor.u32 %v2652_v7, %v2418_v6  ;;  %v2439_v13 = vor.u32 %v2655_v8, %v2436_v9  ;;  %v2428_v15 = vld [vmem:[%s4242_s2 + $0x68] sm:$0xf0]  ;;  %v2650_v18 = vld [vmem:[%s4242_s2 + $0x44] sm:$0xf0]  ;;  %s2994_s29 = smov 64  }
   0xa   :  { %v2653_v11 = vld [vmem:[%s4242_s2 + $0x64] sm:$0xf]  ;;  %v396_v14 = vperm.slane %v3069_v10, 4  ;;  %v375_v16 = vperm.slane %v3069_v10, 1  ;;  %v2410_v17 = vld [vmem:[%s4242_s2 + $0x40] sm:$0xf] }
   0xb   :  { %163 = vmatpush.bf16.msra.mxu1 %v2439_v13  ;;  %v2431_v19 = vor.u32 %v2653_v11, %v2428_v15  ;;  %v2651_v20 = vld [vmem:[%s4242_s2 + $0x54] sm:$0xf]  ;;  %v2420_v21 = vld [vmem:[%s4242_s2 + $0x58] sm:$0xf0]  ;;  %v2411_v22 = vor.u32 %v2650_v18, %v2410_v17  ;;  %v2402_v23 = vld [vmem:[%s4242_s2 + $0x30] sm:$0xf] }
   0xc   :  { %398 = vrot.lane.b32.xlu0 %v396_v14, %s2994_s29  ;;  %377 = vrot.lane.b32.xlu2 %v375_v16, %s2994_s29  ;;  %v2648_v24 = vld [vmem:[%s4242_s2 + $0x34] sm:$0xf0]  ;;  %v565_v25 = vperm.slane %v3069_v10, 7  ;;  %v2423_v26 = vor.u32 %v2651_v20, %v2420_v21  ;;  %v2649_v27 = vld [vmem:[%s4242_s2 + $0x44] sm:$0xf]  ;;  %v572_v58 = vperm.slane %v3069_v10, 2 }
   0xd   :  { %150 = vmatpush.bf16.msra.mxu0 %v2427_v5  ;;  %v2412_v28 = vld [vmem:[%s4242_s2 + $0x48] sm:$0xf0]  ;;  %v2403_v29 = vor.u32 %v2648_v24, %v2402_v23  ;;  %v2394_v30 = vld [vmem:[%s4242_s2 + $0x20] sm:$0xf]  ;;  %v2646_v31 = vld [vmem:[%s4242_s2 + $0x24] sm:$0xf0] }
   0xe   :  { %567 = vrot.lane.b32.xlu1 %v565_v25, %s2994_s29  ;;  %v2415_v32 = vor.u32 %v2649_v27, %v2412_v28  ;;  %v2647_v33 = vld [vmem:[%s4242_s2 + $0x34] sm:$0xf]  ;;  %v2404_v34 = vld [vmem:[%s4242_s2 + $0x38] sm:$0xf0]  ;;  %v2395_v35 = vor.u32 %v2646_v31, %v2394_v30  ;;  %v2386_v36 = vld [vmem:[%s4242_s2 + $0x10] sm:$0xf]  ;;  %v200_v25 = vlaneseq }
   0xf   :  { %164 = vmatpush.bf16.msra.mxu1 %v2431_v19  ;;  %v2644_v37 = vld [vmem:[%s4242_s2 + $0x14] sm:$0xf0]  ;;  %v2407_v38 = vor.u32 %v2647_v33, %v2404_v34  ;;  %v2645_v39 = vld [vmem:[%s4242_s2 + $0x24] sm:$0xf]  ;;  %v2396_v40 = vld [vmem:[%s4242_s2 + $0x28] sm:$0xf0] }
  0x10   :  { %v2387_v41 = vor.u32 %v2644_v37, %v2386_v36  ;;  %v2378_v42 = vld [vmem:[%s4242_s2] sm:$0xf]  ;;  %v2642_v43 = vld [vmem:[%s4242_s2 + $0x4] sm:$0xf0]  ;;  %v2399_v44 = vor.u32 %v2645_v39, %v2396_v40  ;;  %v2643_v45 = vld [vmem:[%s4242_s2 + $0x14] sm:$0xf] }
  0x11   :  { %151 = vmatpush.bf16.msra.mxu0 %v2419_v12  ;;  %v2388_v46 = vld [vmem:[%s4242_s2 + $0x18] sm:$0xf0]  ;;  %v2379_v47 = vor.u32 %v2642_v43, %v2378_v42  ;;  %v2640_v49 = vld [vmem:[%s4241_s1] sm:$0xff]  ;;  %v2380_v51 = vld [vmem:[%s4242_s2 + $0x8] sm:$0xf0]  ;;  %vm182_vm0 = vcmask 523264  }
  0x12   :  { %v2391_v48 = vor.u32 %v2643_v45, %v2388_v46  ;;  %v2641_v50 = vld [vmem:[%s4242_s2 + $0x4] sm:$0xf]  ;;  %v189_v62 = vperm.slane %v3069_v10, 3  ;;  %v179_v63 = vperm.slane %v3069_v10, 0  ;;  %v581_v2 = vperm.slane %v3069_v10, 5  ;;  %s2362_s25 = sshll.u32 %s4246_s6, 4  ;;  %s2363_s25 = int_to_ptr.hbm [resolvable:$true] %s2362_s25 }
  0x13   :  { %165 = vmatpush.bf16.msra.mxu1 %v2423_v26  ;;  %v2383_v52 = vor.u32 %v2641_v50, %v2380_v51  ;;  %v3192_v27 = vand.u32 127, %v200_v25  ;;  %vm235_vm2 = vcmask 64512  }
  0x15   :  { %152 = vmatpush.bf16.msra.mxu0 %v2411_v22 }
  0x17   :  { %166 = vmatpush.bf16.msra.mxu1 %v2415_v32 }
  0x19   :  { %153 = vmatpush.bf16.msra.mxu0 %v2403_v29 }
  0x1b   :  { %167 = vmatpush.bf16.msra.mxu1 %v2407_v38 }
  0x1d   :  { %154 = vmatpush.bf16.msra.mxu0 %v2395_v35  ;;  %v2706_v35 = vld [vmem:[%s4240_s0] sm:$0xff]  }
  0x1e   :  { %v3201_v39 = vunpack.c.l.bf16 %v2706_v35 }
  0x1f   :  { %168 = vmatpush.bf16.msra.mxu1 %v2399_v44 }
  0x21   :  { %155 = vmatpush.bf16.msra.mxu0 %v2387_v41 }
  0x23   :  { %169 = vmatpush.bf16.msra.mxu1 %v2391_v48 }
  0x25   :  { %156 = vmatpush.bf16.msra.mxu0 %v2379_v47 }
  0x27   :  { %170 = vmatpush.bf16.msra.mxu1 %v2383_v52  ;;  %v3208_v52 = vunpack.c.h.bf16 %v2706_v35 }
  0x28   :  { %157 = vmatmul.bf16.vlgmr.msra.gmra.mxu0 %v2640_v49 }
  0x2a   :  { %171 = vmatmul.bf16.vlgmr.msra.gmra.mxu1 %v2640_v49 }
  0x66   :  { %v378_v54 = vpop.permute.xlu2 %377 }
  0x7e   :  { %v399_v53 = vpop.permute.xlu0 %398 }
  0x80   :  { %v3184_v15 = vpop.permute.xlu1 %567 }
  0xa5   :  { %v3152_v55 = vpop.f32.mrf.mxu0 }
  0xa6   :  { %v401_v56 = vmul.f32 %v399_v53, %v3152_v55  ;;  %v380_v57 = vmul.f32 %v378_v54, %v3152_v55  ;;  %v190_v0 = vmul.f32 %v189_v62, %v3152_v55  ;;  %v180_v1 = vmul.f32 %v179_v63, %v3152_v55 }
  0xa7   :  { %v3159_v59 = vpop.f32.mrf.mxu1 }
  0xa8   :  { %405 = vrot.lane.b32.xlu0 %v401_v56, %s2994_s29  ;;  %384 = vrot.lane.b32.xlu1 %v380_v57, %s2994_s29  ;;  %v573_v60 = vmul.f32 %v572_v58, %v3159_v59  ;;  %v192_v3 = vsel %vm182_vm0, %v190_v0, 0.0  ;;  %v183_v4 = vsel %vm182_vm0, %v180_v1, 0.0  ;;  %v582_v6 = vmul.f32 %v581_v2, %v3159_v59 }
  0xaa   :  { %v575_v61 = vsel %vm182_vm0, %v573_v60, 0.0  ;;  %v584_v8 = vsel %vm182_vm0, %v582_v6, 0.0 }
  0xab   :  { %576 = vadd.xlane.f32.xlu2 %v575_v61 }
  0xad   :  { %v3170_v5 = vpop.f32.mrf.mxu0 }
  0xae   :  { %v191_v7 = vmul.f32 %v189_v62, %v3170_v5  ;;  %v381_v13 = vmul.f32 %v378_v54, %v3170_v5  ;;  %v402_v14 = vmul.f32 %v399_v53, %v3170_v5  ;;  %v181_v18 = vmul.f32 %v179_v63, %v3170_v5 }
  0xaf   :  { %v3176_v11 = vpop.f32.mrf.mxu1 }
  0xb0   :  { %v195_v9 = vsel %vm182_vm0, %v191_v7, 0.0  ;;  %v583_v10 = vmul.f32 %v581_v2, %v3176_v11  ;;  %v186_v19 = vsel %vm182_vm0, %v181_v18, 0.0  ;;  %v574_v20 = vmul.f32 %v572_v58, %v3176_v11 }
  0xb2   :  { %v587_v12 = vsel %vm182_vm0, %v583_v10, 0.0  ;;  %v578_v21 = vsel %vm182_vm0, %v574_v20, 0.0 }
  0xd2   :  { %193 = vadd.xlane.f32.xlu1 %v192_v3  ;;  %184 = vadd.xlane.f32.xlu0 %v183_v4 }
  0xda   :  { %585 = vadd.xlane.f32.xlu0 %v584_v8  ;;  %196 = vadd.xlane.f32.xlu1 %v195_v9 }
  0xe2   :  { %588 = vadd.xlane.f32.xlu1 %v587_v12 }
  0xee   :  { %386 = vrot.lane.b32.xlu0 %v381_v13, %s2994_s29 }
  0xf6   :  { %407 = vrot.lane.b32.xlu0 %v402_v14, %s2994_s29 }
 0x11a   :  { %v385_v16 = vpop.permute.xlu1 %384  ;;  %v406_v22 = vpop.permute.xlu0 %405 }
 0x11b   :  { %v390_v17 = vsel %vm182_vm0, %v385_v16, 0.0  ;;  %v411_v23 = vsel %vm182_vm0, %v406_v22, 0.0 }
 0x11c   :  { %391 = vadd.xlane.f32.xlu2 %v390_v17 }
 0x11e   :  { %v577_v37 = vpop.xlane.xlu2 %576 }
 0x120   :  { %187 = vadd.xlane.f32.xlu0 %v186_v19 }
 0x128   :  { %579 = vadd.xlane.f32.xlu0 %v578_v21 }
 0x130   :  { %412 = vadd.xlane.f32.xlu0 %v411_v23 }
 0x145   :  { %v185_v24 = vpop.xlane.xlu0 %184  ;;  %v194_v28 = vpop.xlane.xlu1 %193 }
 0x146   :  { %v202_v29 = vperm.slane %v194_v28, %v3192_v27 }
 0x148   :  { %v225_v32 = vadd.f32 %v202_v29, %v185_v24 }
 0x14a   :  { %v229_v33 = vmul.f32 0.2, %v225_v32  ;;  %vm227_vm1 = vcmp.gt.f32.partialorder %v225_v32, 0.0 }
 0x14c   :  { %v231_v41 = vsel %vm227_vm1, %v225_v32, %v229_v33 }
 0x14d   :  { %v586_v26 = vpop.xlane.xlu0 %585  ;;  %v233_v42 = vadd.f32 %v3201_v39, %v231_v41  ;;  %v197_v48 = vpop.xlane.xlu1 %196 }
 0x14e   :  { %v592_v34 = vperm.slane %v586_v26, %v3192_v27  ;;  %v203_v49 = vperm.slane %v197_v48, %v3192_v27 }
 0x14f   :  { %v236_v44 = vsel %vm235_vm2, %v233_v42, -inf }
 0x150   :  { %v608_v40 = vadd.f32 %v592_v34, %v577_v37 }
 0x152   :  { %v612_v43 = vmul.f32 0.2, %v608_v40  ;;  %vm610_vm3 = vcmp.gt.f32.partialorder %v608_v40, 0.0 }
 0x154   :  { %v614_v45 = vsel %vm610_vm3, %v608_v40, %v612_v43 }
 0x155   :  { %v616_v46 = vadd.f32 %v3201_v39, %v614_v45  ;;  %v589_v54 = vpop.xlane.xlu1 %588 }
 0x156   :  { %v593_v58 = vperm.slane %v589_v54, %v3192_v27 }
 0x157   :  { %v618_v47 = vsel %vm235_vm2, %v616_v46, -inf }
 0x160   :  { %v387_v30 = vpop.permute.xlu0 %386 }
 0x161   :  { %v393_v31 = vsel %vm182_vm0, %v387_v30, 0.0 }
 0x162   :  { %394 = vadd.xlane.f32.xlu1 %v393_v31 }
 0x168   :  { %v408_v36 = vpop.permute.xlu0 %407 }
 0x169   :  { %v414_v38 = vsel %vm182_vm0, %v408_v36, 0.0 }
 0x16a   :  { %415 = vadd.xlane.f32.xlu2 %v414_v38 }
 0x172   :  { %237 = vmax.xlane.f32.xlu2 %v236_v44 }
 0x17a   :  { %619 = vmax.xlane.f32.xlu2 %v618_v47 }
 0x18f   :  { %v392_v6 = vpop.xlane.xlu2 %391 }
 0x193   :  { %v188_v50 = vpop.xlane.xlu0 %187 }
 0x194   :  { %v226_v51 = vadd.f32 %v203_v49, %v188_v50  ;;  %v4255_v49 = vmov 4   ;;  %v4253_v50 = vmov 1  }
 0x195   :  { %2726 = vset.pattern.permute.xlu0 %v4255_v49  ;;  %2723 = vset.pattern.permute.xlu1 %v4253_v50 }
 0x196   :  { %vm228_vm4 = vcmp.gt.f32.partialorder %v226_v51, 0.0  ;;  %v230_v53 = vmul.f32 0.2, %v226_v51 }
 0x198   :  { %v232_v56 = vsel %vm228_vm4, %v226_v51, %v230_v53  ;;  %v4251_v51 = vmov 0  }
 0x199   :  { %v234_v57 = vadd.f32 %v3208_v52, %v232_v56  ;;  %2722 = vset.pattern.permute.xlu2 %v4251_v51 }
 0x19b   :  { %v580_v60 = vpop.xlane.xlu0 %579  ;;  %v239_v61 = vsel %vm235_vm2, %v234_v57, -inf }
 0x19c   :  { %v609_v62 = vadd.f32 %v593_v58, %v580_v60  ;;  %240 = vmax.xlane.f32.xlu2 %v239_v61 }
 0x19e   :  { %vm611_vm5 = vcmp.gt.f32.partialorder %v609_v62, 0.0  ;;  %v613_v63 = vmul.f32 0.2, %v609_v62 }
 0x1a0   :  { %v615_v0 = vsel %vm611_vm5, %v609_v62, %v613_v63 }
 0x1a1   :  { %v617_v1 = vadd.f32 %v3208_v52, %v615_v0 }
 0x1a3   :  { %v413_v2 = vpop.xlane.xlu0 %412  ;;  %v621_v3 = vsel %vm235_vm2, %v617_v1, -inf }
 0x1a4   :  { %v419_v4 = vperm.slane %v413_v2, %v3192_v27  ;;  %622 = vmax.xlane.f32.xlu0 %v621_v3  ;;  %v4261_v2 = vmov 5   ;;  %v4257_v3 = vmov 6  }
 0x1a6   :  { %v435_v7 = vadd.f32 %v419_v4, %v392_v6  ;;  %v4247_v4 = vmov 2  }
 0x1a8   :  { %v439_v8 = vmul.f32 0.2, %v435_v7  ;;  %vm437_vm6 = vcmp.gt.f32.partialorder %v435_v7, 0.0 }
 0x1aa   :  { %v441_v9 = vsel %vm437_vm6, %v435_v7, %v439_v8  ;;  %v4259_v7 = vmov 3   ;;  %vm2353_vm6 = vcmask 517120  }
 0x1ab   :  { %v443_v10 = vadd.f32 %v3201_v39, %v441_v9 }
 0x1ad   :  { %v445_v12 = vsel %vm235_vm2, %v443_v10, -inf }
 0x1ae   :  { %446 = vmax.xlane.f32.xlu1 %v445_v12 }
 0x1d5   :  { %v395_v16 = vpop.xlane.xlu1 %394 }
 0x1dd   :  { %v416_v13 = vpop.xlane.xlu2 %415 }
 0x1de   :  { %v420_v14 = vperm.slane %v416_v13, %v3192_v27 }
 0x1e0   :  { %v436_v17 = vadd.f32 %v420_v14, %v395_v16 }
 0x1e2   :  { %vm438_vm7 = vcmp.gt.f32.partialorder %v436_v17, 0.0  ;;  %v440_v18 = vmul.f32 0.2, %v436_v17 }
 0x1e4   :  { %v442_v19 = vsel %vm438_vm7, %v436_v17, %v440_v18 }
 0x1e5   :  { %v238_v20 = vpop.xlane.xlu2 %237  ;;  %v444_v21 = vadd.f32 %v3208_v52, %v442_v19 }
 0x1e6   :  { %v242_v22 = vsub.f32 %v233_v42, %v238_v20 }
 0x1e7   :  { %v448_v23 = vsel %vm235_vm2, %v444_v21, -inf }
 0x1e8   :  { %v244_v24 = vmul.f32 1.442695, %v242_v22  ;;  %449 = vmax.xlane.f32.xlu2 %v448_v23 }
 0x1ea   :  { %2865 = vpow2.f32 %v244_v24 }
 0x1ed   :  { %v620_v25 = vpop.xlane.xlu2 %619 }
 0x1ee   :  { %v624_v26 = vsub.f32 %v616_v46, %v620_v25 }
 0x1f0   :  { %v2866_v28 = vpop.eup %2865  ;;  %v626_v29 = vmul.f32 1.442695, %v624_v26 }
 0x1f1   :  { %v248_v30 = vsel %vm235_vm2, %v2866_v28, 0.0 }
 0x1f2   :  { %2867 = vpow2.f32 %v626_v29  ;;  %249 = vadd.xlane.f32.xlu0 %v248_v30 }
 0x1f8   :  { %v2868_v31 = vpop.eup %2867 }
 0x1f9   :  { %v630_v32 = vsel %vm235_vm2, %v2868_v31, 0.0 }
 0x1fa   :  { %631 = vadd.xlane.f32.xlu2 %v630_v32 }
 0x20f   :  { %v241_v33 = vpop.xlane.xlu2 %240 }
 0x210   :  { %v243_v34 = vsub.f32 %v234_v57, %v241_v33 }
 0x212   :  { %v246_v35 = vmul.f32 1.442695, %v243_v34 }
 0x214   :  { %2869 = vpow2.f32 %v246_v35 }
 0x217   :  { %v623_v36 = vpop.xlane.xlu0 %622 }
 0x218   :  { %v625_v37 = vsub.f32 %v617_v1, %v623_v36 }
 0x21a   :  { %v2870_v38 = vpop.eup %2869  ;;  %v628_v40 = vmul.f32 1.442695, %v625_v37 }
 0x21b   :  { %v251_v41 = vsel %vm235_vm2, %v2870_v38, 0.0 }
 0x21c   :  { %2871 = vpow2.f32 %v628_v40  ;;  %252 = vadd.xlane.f32.xlu1 %v251_v41 }
 0x221   :  { %v447_v42 = vpop.xlane.xlu1 %446 }
 0x222   :  { %v3224_v43 = vpop.eup %2871  ;;  %v451_v44 = vsub.f32 %v443_v10, %v447_v42  ;;  %v4249_v10 = vmov 7  }
 0x223   :  { %v633_v45 = vsel %vm235_vm2, %v3224_v43, 0.0 }
 0x224   :  { %v453_v46 = vmul.f32 1.442695, %v451_v44  ;;  %634 = vadd.xlane.f32.xlu0 %v633_v45 }
 0x226   :  { %2873 = vpow2.f32 %v453_v46 }
 0x22c   :  { %v3228_v47 = vpop.eup %2873 }
 0x22d   :  { %v457_v48 = vsel %vm235_vm2, %v3228_v47, 0.0 }
 0x22e   :  { %458 = vadd.xlane.f32.xlu1 %v457_v48 }
 0x25b   :  { %v450_v53 = vpop.xlane.xlu2 %449 }
 0x25c   :  { %v452_v54 = vsub.f32 %v444_v21, %v450_v53 }
 0x25e   :  { %v455_v56 = vmul.f32 1.442695, %v452_v54 }
 0x260   :  { %2875 = vpow2.f32 %v455_v56 }
 0x265   :  { %v250_v57 = vpop.xlane.xlu0 %249 }
 0x266   :  { %v3235_v58 = vpop.eup %2875  ;;  %2877 = vrcp.f32 %v250_v57 }
 0x267   :  { %v460_v60 = vsel %vm235_vm2, %v3235_v58, 0.0 }
 0x268   :  { %461 = vadd.xlane.f32.xlu2 %v460_v60  ;;  %v2498_v60 = vld [vmem:[%s4243_s3 + $0x70] sm:$0xf] }
 0x26c   :  { %v2878_v61 = vpop.eup %2877 }
 0x26d   :  { %v256_v62 = vmul.f32 %v2878_v61, %v2866_v28  ;;  %v632_v63 = vpop.xlane.xlu2 %631  ;;  %v2672_v61 = vld [vmem:[%s4243_s3 + $0x74] sm:$0xf0] }
 0x26e   :  { %2879 = vrcp.f32 %v632_v63  ;;  %v2499_v63 = vor.u32 %v2672_v61, %v2498_v60  ;;  %v2474_v60 = vld [vmem:[%s4243_s3 + $0x40] sm:$0xf]  ;;  %v2666_v61 = vld [vmem:[%s4243_s3 + $0x44] sm:$0xf0] }
 0x26f   :  { %317 = vperm.xlu0 %2726, %v256_v62   ;;  %275 = vperm.xlu1 %2723, %v256_v62  }
 0x270   :  { %912 = vmatpush.bf16.msra.mxu2 %v2499_v63 }
 0x274   :  { %v2880_v0 = vpop.eup %2879 }
 0x275   :  { %v3239_v1 = vmul.f32 %v2880_v0, %v2868_v31  ;;  %v2670_v0 = vld [vmem:[%s4243_s3 + $0x64] sm:$0xf0] }
 0x277   :  { %2735 = vset.pattern.permute.xlu0 %v4261_v2  ;;  %2727 = vset.pattern.permute.xlu1 %v4261_v2 }
 0x278   :  { %331 = vperm.xlu1 %2727, %v256_v62   ;;  %713 = vperm.xlu0 %2735, %v3239_v1  }
 0x280   :  { %2728 = vset.pattern.permute.xlu1 %v4257_v3  ;;  %260 = vperm.xlu2 %2722, %v256_v62  }
 0x281   :  { %345 = vperm.xlu1 %2728, %v256_v62   ;;  %2737 = vset.pattern.permute.xlu0 %v4251_v51 }
 0x288   :  { %2724 = vset.pattern.permute.xlu2 %v4247_v4 }
 0x289   :  { %2731 = vset.pattern.permute.xlu1 %v4253_v50  ;;  %289 = vperm.xlu2 %2724, %v256_v62  }
 0x28a   :  { %657 = vperm.xlu1 %2731, %v3239_v1  }
 0x28f   :  { %v253_v6 = vpop.xlane.xlu1 %252 }
 0x290   :  { %2881 = vrcp.f32 %v253_v6 }
 0x291   :  { %2725 = vset.pattern.permute.xlu2 %v4259_v7 }
 0x292   :  { %303 = vperm.xlu2 %2725, %v256_v62   ;;  %2732 = vset.pattern.permute.xlu1 %v4247_v4 }
 0x293   :  { %671 = vperm.xlu1 %2732, %v3239_v1  }
 0x296   :  { %v2882_v8 = vpop.eup %2881 }
 0x297   :  { %v257_v9 = vmul.f32 %v2882_v8, %v2870_v38  ;;  %v635_v12 = vpop.xlane.xlu0 %634 }
 0x298   :  { %2883 = vrcp.f32 %v635_v12  ;;  %v2530_v12 = vld [vmem:[%s4243_s3 + $0xb0] sm:$0xf] }
 0x299   :  { %265 = vperm.xlu0 %2737, %v257_v9  }
 0x29a   :  { %2729 = vset.pattern.permute.xlu2 %v4249_v10 }
 0x29b   :  { %359 = vperm.xlu2 %2729, %v256_v62   ;;  %2733 = vset.pattern.permute.xlu1 %v4259_v7  ;;  %v2490_v62 = vld [vmem:[%s4243_s3 + $0x60] sm:$0xf] }
 0x29c   :  { %685 = vperm.xlu1 %2733, %v3239_v1   ;;  %v2491_v6 = vor.u32 %v2670_v0, %v2490_v62  ;;  %v2475_v0 = vor.u32 %v2666_v61, %v2474_v60  ;;  %v2506_v60 = vld [vmem:[%s4243_s3 + $0x80] sm:$0xf]  ;;  %v2674_v61 = vld [vmem:[%s4243_s3 + $0x84] sm:$0xf0] }
 0x29e   :  { %v2884_v13 = vpop.eup %2883  ;;  %913 = vmatpush.bf16.msra.mxu2 %v2491_v6 }
 0x29f   :  { %v3261_v16 = vmul.f32 %v2884_v13, %v3224_v43  ;;  %v2680_v13 = vld [vmem:[%s4243_s3 + $0xb4] sm:$0xf0] }
 0x2a1   :  { %2743 = vset.pattern.permute.xlu0 %v4257_v3  ;;  %v459_v14 = vpop.xlane.xlu1 %458 }
 0x2a2   :  { %349 = vperm.xlu0 %2743, %v257_v9   ;;  %2885 = vrcp.f32 %v459_v14  ;;  %v2482_v14 = vld [vmem:[%s4243_s3 + $0x50] sm:$0xf] }
 0x2a3   :  { %2730 = vset.pattern.permute.xlu2 %v4251_v51 }
 0x2a4   :  { %2734 = vset.pattern.permute.xlu1 %v4255_v49  ;;  %642 = vperm.xlu2 %2730, %v3239_v1  }
 0x2a5   :  { %699 = vperm.xlu1 %2734, %v3239_v1  }
 0x2a8   :  { %v2886_v17 = vpop.eup %2885 }
 0x2a9   :  { %v465_v18 = vmul.f32 %v2886_v17, %v3228_v47  ;;  %v2668_v17 = vld [vmem:[%s4243_s3 + $0x54] sm:$0xf0] }
 0x2aa   :  { %2745 = vset.pattern.permute.xlu0 %v4251_v51 }
 0x2ab   :  { %647 = vperm.xlu0 %2745, %v3261_v16  }
 0x2ac   :  { %2736 = vset.pattern.permute.xlu2 %v4257_v3 }
 0x2ad   :  { %2739 = vset.pattern.permute.xlu1 %v4247_v4  ;;  %727 = vperm.xlu2 %2736, %v3239_v1  }
 0x2ae   :  { %293 = vperm.xlu1 %2739, %v257_v9  }
 0x2b3   :  { %2752 = vset.pattern.permute.xlu0 %v4253_v50 }
 0x2b4   :  { %482 = vperm.xlu0 %2752, %v465_v18  }
 0x2b5   :  { %2738 = vset.pattern.permute.xlu2 %v4253_v50 }
 0x2b6   :  { %2740 = vset.pattern.permute.xlu1 %v4259_v7  ;;  %279 = vperm.xlu2 %2738, %v257_v9  }
 0x2b7   :  { %307 = vperm.xlu1 %2740, %v257_v9  }
 0x2bc   :  { %2765 = vset.pattern.permute.xlu0 %v4261_v2 }
 0x2be   :  { %2741 = vset.pattern.permute.xlu2 %v4255_v49 }
 0x2bf   :  { %2744 = vset.pattern.permute.xlu1 %v4249_v10  ;;  %321 = vperm.xlu2 %2741, %v257_v9  }
 0x2c0   :  { %363 = vperm.xlu1 %2744, %v257_v9  }
 0x2c7   :  { %2742 = vset.pattern.permute.xlu2 %v4261_v2 }
 0x2c8   :  { %2746 = vset.pattern.permute.xlu1 %v4253_v50  ;;  %335 = vperm.xlu2 %2742, %v257_v9  }
 0x2c9   :  { %661 = vperm.xlu1 %2746, %v3261_v16  }
 0x2d0   :  { %2747 = vset.pattern.permute.xlu2 %v4247_v4 }
 0x2d1   :  { %2750 = vset.pattern.permute.xlu1 %v4261_v2  ;;  %675 = vperm.xlu2 %2747, %v3261_v16  }
 0x2d2   :  { %717 = vperm.xlu1 %2750, %v3261_v16  }
 0x2d9   :  { %2748 = vset.pattern.permute.xlu2 %v4259_v7 }
 0x2da   :  { %2751 = vset.pattern.permute.xlu1 %v4251_v51  ;;  %689 = vperm.xlu2 %2748, %v3261_v16  }
 0x2db   :  { %469 = vperm.xlu1 %2751, %v465_v18   ;;  %v462_v19 = vpop.xlane.xlu2 %461 }
 0x2dc   :  { %2887 = vrcp.f32 %v462_v19  ;;  %v2678_v19 = vld [vmem:[%s4243_s3 + $0xa4] sm:$0xf0] }
 0x2e1   :  { %v3285_v20 = vpop.permute.xlu1 %275  ;;  %v3353_v46 = vpop.permute.xlu0 %317 }
 0x2e2   :  { %v2888_v21 = vpop.eup %2887  ;;  %2749 = vset.pattern.permute.xlu2 %v4255_v49 }
 0x2e3   :  { %v466_v22 = vmul.f32 %v2888_v21, %v3235_v58  ;;  %2757 = vset.pattern.permute.xlu1 %v4257_v3  ;;  %703 = vperm.xlu2 %2749, %v3261_v16   ;;  %v3291_v23 = vpop.permute.xlu2 %260 }
 0x2e4   :  { %542 = vperm.xlu1 %2757, %v465_v18  }
 0x2e5   :  { %534 = vperm.xlu0 %2765, %v466_v22  }
 0x2ea   :  { %v3293_v24 = vpop.permute.xlu1 %331  ;;  %v3361_v54 = vpop.permute.xlu0 %713 }
 0x2eb   :  { %2753 = vset.pattern.permute.xlu2 %v4247_v4  ;;  %v3296_v25 = vpop.permute.xlu2 %289 }
 0x2ec   :  { %2758 = vset.pattern.permute.xlu1 %v4249_v10  ;;  %494 = vperm.xlu2 %2753, %v465_v18  }
 0x2ed   :  { %554 = vperm.xlu1 %2758, %v465_v18   ;;  %2768 = vset.pattern.permute.xlu0 %v4249_v10 }
 0x2ee   :  { %745 = vperm.xlu0 %2768, %v3261_v16  }
 0x2f3   :  { %v3301_v26 = vpop.permute.xlu1 %345  ;;  %v3303_v28 = vpop.permute.xlu2 %303 }
 0x2f4   :  { %2754 = vset.pattern.permute.xlu2 %v4259_v7 }
 0x2f5   :  { %2760 = vset.pattern.permute.xlu1 %v4253_v50  ;;  %506 = vperm.xlu2 %2754, %v465_v18  }
 0x2f6   :  { %486 = vperm.xlu1 %2760, %v466_v22   ;;  %2770 = vset.pattern.permute.xlu0 %v4253_v50 }
 0x2fb   :  { %v3308_v29 = vpop.permute.xlu2 %359 }
 0x2fc   :  { %v3310_v30 = vpop.permute.xlu1 %657 }
 0x2fd   :  { %2755 = vset.pattern.permute.xlu2 %v4255_v49 }
 0x2fe   :  { %518 = vperm.xlu2 %2755, %v465_v18   ;;  %2761 = vset.pattern.permute.xlu1 %v4247_v4 }
 0x2ff   :  { %498 = vperm.xlu1 %2761, %v466_v22  }
 0x303   :  { %v3314_v31 = vpop.permute.xlu2 %642 }
 0x305   :  { %v3316_v32 = vpop.permute.xlu1 %671 }
 0x306   :  { %2756 = vset.pattern.permute.xlu2 %v4261_v2 }
 0x307   :  { %530 = vperm.xlu2 %2756, %v465_v18   ;;  %2762 = vset.pattern.permute.xlu1 %v4259_v7  ;;  %v2522_v18 = vld [vmem:[%s4243_s3 + $0xa0] sm:$0xf] }
 0x308   :  { %510 = vperm.xlu1 %2762, %v466_v22   ;;  %v2523_v62 = vor.u32 %v2678_v19, %v2522_v18 }
 0x30b   :  { %v3320_v33 = vpop.permute.xlu2 %727  ;;  %v3365_v57 = vpop.permute.xlu0 %265 }
 0x30e   :  { %v3322_v34 = vpop.permute.xlu1 %685 }
 0x30f   :  { %2759 = vset.pattern.permute.xlu2 %v4251_v51 }
 0x310   :  { %2763 = vset.pattern.permute.xlu1 %v4255_v49  ;;  %474 = vperm.xlu2 %2759, %v466_v22  }
 0x311   :  { %522 = vperm.xlu1 %2763, %v466_v22  }
 0x313   :  { %v3326_v35 = vpop.permute.xlu2 %279 }
 0x314   :  { %v3385_v9 = vpop.permute.xlu0 %349 }
 0x317   :  { %v3328_v36 = vpop.permute.xlu1 %699 }
 0x318   :  { %2766 = vset.pattern.permute.xlu2 %v4257_v3 }
 0x319   :  { %2764 = vset.pattern.permute.xlu1 %v4257_v3  ;;  %546 = vperm.xlu2 %2766, %v466_v22  }
 0x31a   :  { %731 = vperm.xlu1 %2764, %v3261_v16   ;;  %v2531_v16 = vor.u32 %v2680_v13, %v2530_v12  ;;  %v2514_v12 = vld [vmem:[%s4243_s3 + $0x90] sm:$0xf]  ;;  %v2676_v13 = vld [vmem:[%s4243_s3 + $0x94] sm:$0xf0] }
 0x31b   :  { %v3333_v37 = vpop.permute.xlu2 %321 }
 0x31c   :  { %930 = vmatpush.bf16.msra.mxu3 %v2531_v16  ;;  %v2466_v16 = vld [vmem:[%s4243_s3 + $0x30] sm:$0xf] }
 0x31d   :  { %v3415_v6 = vpop.permute.xlu0 %647 }
 0x320   :  { %v3335_v38 = vpop.permute.xlu1 %293  ;;  %931 = vmatpush.bf16.msra.mxu3 %v2523_v62  ;;  %v282_v62 = vperm.slane %v3152_v55, 1 }
 0x321   :  { %2767 = vset.pattern.permute.xlu2 %v4249_v10  ;;  %v2671_v10 = vld [vmem:[%s4243_s3 + $0x74] sm:$0xf] }
 0x322   :  { %558 = vperm.xlu2 %2767, %v466_v22   ;;  %2769 = vset.pattern.permute.xlu1 %v4251_v51  ;;  %v2483_v22 = vor.u32 %v2668_v17, %v2482_v14  ;;  %v2515_v14 = vor.u32 %v2676_v13, %v2514_v12  ;;  %v2664_v17 = vld [vmem:[%s4243_s3 + $0x34] sm:$0xf0]  ;;  %v2507_v13 = vor.u32 %v2674_v61, %v2506_v60  ;;  %v2500_v60 = vld [vmem:[%s4243_s3 + $0x78] sm:$0xf0]  ;;  %v4264_v51 = vperm.slane %v3152_v55, 3 }
 0x323   :  { %v3339_v40 = vpop.permute.xlu2 %335  ;;  %v2467_v18 = vor.u32 %v2664_v17, %v2466_v16  ;;  %v2662_v16 = vld [vmem:[%s4243_s3 + $0x24] sm:$0xf0]  ;;  %v2503_v49 = vor.u32 %v2671_v10, %v2500_v60  ;;  %v2450_v61 = vld [vmem:[%s4243_s3 + $0x10] sm:$0xf]  ;;  %v2660_v10 = vld [vmem:[%s4243_s3 + $0x14] sm:$0xf0] }
 0x324   :  { %914 = vmatpush.bf16.msra.mxu2 %v2483_v22  ;;  %932 = vmatpush.bf16.msra.mxu3 %v2515_v14  ;;  %v2458_v14 = vld [vmem:[%s4243_s3 + $0x20] sm:$0xf] }
 0x326   :  { %v483_v2 = vpop.permute.xlu0 %482 }
 0x327   :  { %v489_v7 = vmul.f32 %v483_v2, %v282_v62  ;;  %v2658_v2 = vld [vmem:[%s4243_s3 + $0x4] sm:$0xf0] }
 0x328   :  { %915 = vmatpush.bf16.msra.mxu2 %v2475_v0  ;;  %v268_v0 = vperm.slane %v3152_v55, 0  ;;  %933 = vmatpush.bf16.msra.mxu3 %v2507_v13  ;;  %v284_v13 = vmul.f32 %v282_v62, %v3285_v20  ;;  %v312_v20 = vmul.f32 %v4264_v51, %v3303_v28  ;;  %v311_v28 = vperm.slane %v3170_v5, 3 }
 0x329   :  { %v3341_v41 = vpop.permute.xlu1 %307  ;;  %v651_v62 = vperm.slane %v3176_v11, 0 }
 0x32a   :  { %741 = vperm.xlu2 %2767, %v3239_v1   ;;  %v270_v3 = vmul.f32 %v268_v0, %v3291_v23  ;;  %v2669_v23 = vld [vmem:[%s4243_s3 + $0x64] sm:$0xf] }
 0x32b   :  { %v3344_v42 = vpop.permute.xlu2 %675 }
 0x32c   :  { %916 = vmatpush.bf16.msra.mxu2 %v2467_v18  ;;  %v296_v18 = vperm.slane %v3152_v55, 2  ;;  %940 = vmatpush.bf16.msrb.mxu3 %v2503_v49  ;;  %v2492_v49 = vld [vmem:[%s4243_s3 + $0x68] sm:$0xf0] }
 0x32d   :  { %v2495_v22 = vor.u32 %v2669_v23, %v2492_v49  ;;  %v4265_v49 = vperm.slane %v3170_v5, 0 }
 0x32e   :  { %v298_v60 = vmul.f32 %v296_v18, %v3296_v25 }
 0x32f   :  { %v271_v50 = vmul.f32 %v4265_v49, %v3365_v57  ;;  %v313_v57 = vmul.f32 %v311_v28, %v3341_v41  ;;  %v706_v49 = vperm.slane %v3159_v59, 4 }
 0x330   :  { %941 = vmatpush.bf16.msrb.mxu3 %v2495_v22  ;;  %v664_v22 = vperm.slane %v3159_v59, 1 }
 0x332   :  { %v3346_v43 = vpop.permute.xlu1 %363  ;;  %2771 = vset.pattern.permute.xlu2 %v4247_v4  ;;  %v2459_v4 = vor.u32 %v2662_v16, %v2458_v14  ;;  %v4263_v16 = vperm.slane %v3170_v5, 1  ;;  %v286_v14 = vadd.f32 %v284_v13, %v270_v3  ;;  %v2667_v3 = vld [vmem:[%s4243_s3 + $0x54] sm:$0xf]  ;;  %v2484_v13 = vld [vmem:[%s4243_s3 + $0x58] sm:$0xf0] }
 0x333   :  { %v2487_v51 = vor.u32 %v2667_v3, %v2484_v13  ;;  %v2476_v3 = vld [vmem:[%s4243_s3 + $0x48] sm:$0xf0]  ;;  %v4267_v13 = vperm.slane %v3152_v55, 3 }
 0x334   :  { %v3349_v44 = vpop.permute.xlu2 %689  ;;  %917 = vmatpush.bf16.msra.mxu2 %v2459_v4  ;;  %v285_v25 = vmul.f32 %v4263_v16, %v3326_v35 }
 0x335   :  { %942 = vmatpush.bf16.msrb.mxu3 %v2487_v51 }
 0x33b   :  { %v3351_v45 = vpop.permute.xlu1 %661 }
 0x33d   :  { %v3355_v47 = vpop.permute.xlu2 %703 }
 0x344   :  { %v3357_v48 = vpop.permute.xlu1 %717 }
 0x346   :  { %v3359_v53 = vpop.permute.xlu2 %494 }
 0x34d   :  { %v3363_v56 = vpop.permute.xlu1 %469 }
 0x34e   :  { %v477_v17 = vmul.f32 %v3363_v56, %v268_v0  ;;  %v2451_v56 = vor.u32 %v2660_v10, %v2450_v61  ;;  %v297_v0 = vperm.slane %v3170_v5, 2  ;;  %v2442_v10 = vld [vmem:[%s4243_s3] sm:$0xf] }
 0x34f   :  { %v3367_v58 = vpop.permute.xlu2 %506  ;;  %v2443_v23 = vor.u32 %v2658_v2, %v2442_v10  ;;  %v501_v10 = vmul.f32 %v3359_v53, %v296_v18  ;;  %v287_v2 = vadd.f32 %v285_v25, %v271_v50  ;;  %v692_v53 = vperm.slane %v3159_v59, 3 }
 0x350   :  { %918 = vmatpush.bf16.msra.mxu2 %v2451_v56  ;;  %v491_v35 = vadd.f32 %v489_v7, %v477_v17  ;;  %v300_v56 = vadd.f32 %v298_v60, %v286_v14  ;;  %v299_v16 = vmul.f32 %v297_v0, %v3335_v38  ;;  %v650_v17 = vperm.slane %v3159_v59, 0  ;;  %v2665_v38 = vld [vmem:[%s4243_s3 + $0x44] sm:$0xf] }
 0x351   :  { %v678_v60 = vperm.slane %v3159_v59, 2  ;;  %v2479_v50 = vor.u32 %v2665_v38, %v2476_v3  ;;  %v513_v7 = vmul.f32 %v3367_v58, %v4267_v13  ;;  %v4269_v58 = vperm.slane %v3152_v55, 5 }
 0x352   :  { %v314_v14 = vadd.f32 %v312_v20, %v300_v56  ;;  %v503_v18 = vadd.f32 %v501_v10, %v491_v35  ;;  %v4266_v20 = vperm.slane %v3152_v55, 4  ;;  %v652_v25 = vmul.f32 %v650_v17, %v3314_v31  ;;  %v2468_v17 = vld [vmem:[%s4243_s3 + $0x38] sm:$0xf0] }
 0x353   :  { %v665_v56 = vperm.slane %v3176_v11, 1  ;;  %943 = vmatpush.bf16.msrb.mxu3 %v2479_v50  ;;  %v4271_v13 = vperm.slane %v3170_v5, 4 }
 0x354   :  { %919 = vmatpush.bf16.msra.mxu2 %v2443_v23  ;;  %v326_v41 = vmul.f32 %v4266_v20, %v3353_v46  ;;  %v301_v23 = vadd.f32 %v299_v16, %v287_v2  ;;  %v4268_v51 = vmov %v4266_v20  ;;  %v666_v46 = vmul.f32 %v664_v22, %v3310_v30  ;;  %v2663_v16 = vld [vmem:[%s4243_s3 + $0x34] sm:$0xf] }
 0x355   :  { %v667_v31 = vmul.f32 %v665_v56, %v3351_v45  ;;  %v340_v2 = vmul.f32 %v4269_v58, %v3293_v24  ;;  %v515_v3 = vadd.f32 %v513_v7, %v503_v18  ;;  %v2471_v45 = vor.u32 %v2663_v16, %v2468_v17  ;;  %v2661_v24 = vld [vmem:[%s4243_s3 + $0x24] sm:$0xf] }
 0x356   :  { %v3381_v1 = vpop.permute.xlu1 %542  ;;  %v328_v10 = vadd.f32 %v326_v41, %v314_v14  ;;  %v315_v38 = vadd.f32 %v313_v57, %v301_v23  ;;  %v668_v14 = vadd.f32 %v666_v46, %v652_v25  ;;  %v680_v57 = vmul.f32 %v678_v60, %v3316_v32 }
 0x357   :  { %v327_v20 = vmul.f32 %v4271_v13, %v3333_v37  ;;  %v653_v41 = vmul.f32 %v651_v62, %v3415_v6  ;;  %v679_v7 = vperm.slane %v3176_v11, 2  ;;  %v693_v18 = vperm.slane %v3176_v11, 3  ;;  %944 = vmatpush.bf16.msrb.mxu3 %v2471_v45 }
 0x358   :  { %v3383_v8 = vpop.permute.xlu2 %518  ;;  %v4272_v32 = vperm.slane %v3170_v5, 0  ;;  %v342_v6 = vadd.f32 %v340_v2, %v328_v10  ;;  %v694_v62 = vmul.f32 %v692_v53, %v3322_v34  ;;  %v682_v17 = vadd.f32 %v680_v57, %v668_v14 }
 0x359   :  { %v525_v35 = vmul.f32 %v3383_v8, %v4268_v51  ;;  %v4270_v8 = vmov %v4269_v58  ;;  %v329_v25 = vadd.f32 %v327_v20, %v315_v38  ;;  %v669_v23 = vadd.f32 %v667_v31, %v653_v41  ;;  %v2659_v38 = vld [vmem:[%s4243_s3 + $0x14] sm:$0xf] }
 0x35a   :  { %v4273_v51 = vperm.slane %v3170_v5, 1  ;;  %v4274_v10 = vperm.slane %v3170_v5, 5  ;;  %v681_v53 = vmul.f32 %v679_v7, %v3344_v42  ;;  %v696_v58 = vadd.f32 %v694_v62, %v682_v17 }
 0x35b   :  { %v527_v50 = vadd.f32 %v525_v35, %v515_v3 }
 0x35c   :  { %v341_v34 = vmul.f32 %v4274_v10, %v3339_v40  ;;  %v683_v3 = vadd.f32 %v681_v53, %v669_v23 }
 0x35e   :  { %v343_v2 = vadd.f32 %v341_v34, %v329_v25  ;;  %v4282_v25 = vperm.slane %v3170_v5, 7  ;;  %v4284_v34 = vperm.slane %v3159_v59, 6 }
 0x35f   :  { %v3405_v21 = vpop.permute.xlu1 %554 }
 0x360   :  { %v369_v23 = vmul.f32 %v4282_v25, %v3346_v43  ;;  %v736_v53 = vmul.f32 %v4284_v34, %v3320_v33 }
 0x361   :  { %v3413_v63 = vpop.permute.xlu2 %530 }
 0x362   :  { %v537_v30 = vmul.f32 %v3413_v63, %v4270_v8  ;;  %v2460_v63 = vld [vmem:[%s4243_s3 + $0x28] sm:$0xf0]  ;;  %v721_v8 = vperm.slane %v3176_v11, 5 }
 0x363   :  { %v2463_v16 = vor.u32 %v2661_v24, %v2460_v63  ;;  %v2444_v24 = vld [vmem:[%s4243_s3 + $0x8] sm:$0xf0]  ;;  %v4278_v63 = vperm.slane %v3152_v55, 7 }
 0x364   :  { %v539_v56 = vadd.f32 %v537_v30, %v527_v50  ;;  %v535_v30 = vpop.permute.xlu0 %534 }
 0x365   :  { %945 = vmatpush.bf16.msrb.mxu3 %v2463_v16  ;;  %v368_v7 = vmul.f32 %v4278_v63, %v3308_v29  ;;  %v4279_v50 = vmov %v4278_v63  ;;  %v4283_v29 = vmov %v4274_v10  ;;  %v2937_v16 = vld [vmem:[%s4245_s5] sm:$0xff]  ;;  %v748_v10 = vperm.slane %v3159_v59, 7 }
 0x366   :  { %v372_v17 = vperm.slane %v2937_v16, 6 }
 0x368   :  { %v3429_v19 = vpop.permute.xlu1 %486 }
 0x369   :  { %v490_v46 = vmul.f32 %v3429_v19, %v4273_v51  ;;  %v2452_v19 = vld [vmem:[%s4243_s3 + $0x18] sm:$0xf0]  ;;  %v538_v51 = vmul.f32 %v535_v30, %v4283_v29 }
 0x36a   :  { %v3440_v12 = vpop.permute.xlu2 %474  ;;  %v2455_v57 = vor.u32 %v2659_v38, %v2452_v19  ;;  %v2516_v29 = vld [vmem:[%s4243_s3 + $0x98] sm:$0xf0] }
 0x36b   :  { %v478_v60 = vmul.f32 %v3440_v12, %v4272_v32  ;;  %v708_v12 = vmul.f32 %v706_v49, %v3328_v36 }
 0x36c   :  { %946 = vmatpush.bf16.msrb.mxu3 %v2455_v57 }
 0x36d   :  { %v492_v49 = vadd.f32 %v490_v46, %v478_v60  ;;  %v4281_v60 = vperm.slane %v3159_v59, 5 }
 0x371   :  { %v3487_v61 = vpop.permute.xlu1 %498 }
 0x372   :  { %v502_v35 = vmul.f32 %v3487_v61, %v297_v0  ;;  %v707_v0 = vperm.slane %v3176_v11, 4  ;;  %v4275_v61 = vperm.slane %v3152_v55, 6 }
 0x373   :  { %v3509_v4 = vpop.permute.xlu2 %546 }
 0x374   :  { %v549_v36 = vmul.f32 %v3381_v1, %v4275_v61  ;;  %v4276_v42 = vmov %v4275_v61  ;;  %v504_v14 = vadd.f32 %v502_v35, %v492_v49  ;;  %v4277_v1 = vperm.slane %v3170_v5, 6 }
 0x375   :  { %v354_v31 = vmul.f32 %v4276_v42, %v3301_v26  ;;  %v2657_v26 = vld [vmem:[%s4243_s3 + $0x4] sm:$0xf] }
 0x376   :  { %v551_v45 = vadd.f32 %v549_v36, %v539_v56  ;;  %v355_v20 = vmul.f32 %v4277_v1, %v3385_v9  ;;  %v561_v9 = vmul.f32 %v3405_v21, %v4279_v50  ;;  %v2447_v35 = vor.u32 %v2657_v26, %v2444_v24 }
 0x377   :  { %v356_v13 = vadd.f32 %v354_v31, %v342_v6  ;;  %v722_v6 = vmul.f32 %v4281_v60, %v3361_v54  ;;  %v4285_v38 = vmov %v4277_v1 }
 0x378   :  { %v357_v62 = vadd.f32 %v355_v20, %v343_v2  ;;  %v563_v55 = vadd.f32 %v561_v9, %v551_v45  ;;  %v550_v19 = vmul.f32 %v3509_v4, %v4285_v38  ;;  %947 = vmatpush.bf16.msrb.mxu3 %v2447_v35  ;;  %v735_v2 = vperm.slane %v3176_v11, 6  ;;  %v2679_v9 = vld [vmem:[%s4243_s3 + $0xb4] sm:$0xf] }
 0x379   :  { %v370_v43 = vadd.f32 %v368_v7, %v356_v13 }
 0x37a   :  { %v511_v22 = vpop.permute.xlu1 %510  ;;  %v371_v36 = vadd.f32 %v369_v23, %v357_v62  ;;  %v570_v31 = vadd.f32 %v3184_v15, %v563_v55  ;;  %v2524_v62 = vld [vmem:[%s4243_s3 + $0xa8] sm:$0xf0]  ;;  %v2673_v55 = vld [vmem:[%s4243_s3 + $0x84] sm:$0xf] }
 0x37b   :  { %v514_v40 = vmul.f32 %v511_v22, %v311_v28  ;;  %v710_v28 = vadd.f32 %v708_v12, %v696_v58  ;;  %v695_v22 = vmul.f32 %v693_v18, %v3349_v44  ;;  %v4280_v44 = vperm.slane %v3170_v5, 4 }
 0x37c   :  { %v3570_v37 = vpop.permute.xlu2 %558  ;;  %v709_v12 = vmul.f32 %v707_v0, %v3355_v47  ;;  %v3641_v47 = vld [vmem:[%s4245_s5 + $0x10] sm:$0xff]  ;;  %v4286_v0 = vmov %v4282_v25  ;;  %v749_v5 = vperm.slane %v3176_v11, 7  ;;  %v374_v13 = vadd.f32 %v372_v17, %v371_v36 }
 0x37d   :  { %v516_v32 = vadd.f32 %v514_v40, %v504_v14  ;;  %v697_v56 = vadd.f32 %v695_v22, %v683_v3  ;;  %v724_v54 = vadd.f32 %v722_v6, %v710_v28  ;;  %v723_v40 = vmul.f32 %v721_v8, %v3357_v48  ;;  %v746_v3 = vpop.permute.xlu0 %745  ;;  %v2677_v6 = vld [vmem:[%s4243_s3 + $0xa4] sm:$0xf] }
 0x37e   :  { %v562_v59 = vmul.f32 %v3570_v37, %v4286_v0  ;;  %v1177_v4 = vperm.slane %v3641_v47, 4  ;;  %v373_v48 = vadd.f32 %v372_v17, %v370_v43  ;;  %v2862_v37 = vld [vmem:[%s4245_s5 + $0x8] ss:$0 sm:$0xff]  ;;  %v751_v28 = vmul.f32 %v749_v5, %v746_v3 }
 0x37f   :  { %v711_v49 = vadd.f32 %v709_v12, %v697_v56  ;;  %v738_v58 = vadd.f32 %v736_v53, %v724_v54  ;;  %v1156_v25 = vperm.slane %v3641_v47, 1  ;;  %v2527_v23 = vor.u32 %v2677_v6, %v2524_v62  ;;  %v2675_v56 = vld [vmem:[%s4243_s3 + $0x94] sm:$0xf] }
 0x380   :  { %1179 = vrot.lane.b32.xlu1 %v1177_v4, %s2994_s29  ;;  %v757_v20 = vsel %vm182_vm0, %v373_v48, %v570_v31  ;;  %v980_v16 = vperm.slane %v3641_v47, 3 }
 0x381   :  { %v725_v45 = vadd.f32 %v723_v40, %v711_v49  ;;  %v759_v63 = vmax.f32 %v757_v20, 0.0  ;;  %1158 = vrot.lane.b32.xlu2 %v1156_v25, %s2994_s29 }
 0x383   :  { %v523_v41 = vpop.permute.xlu1 %522 }
 0x384   :  { %v526_v18 = vmul.f32 %v523_v41, %v4280_v44  ;;  %v742_v21 = vpop.permute.xlu2 %741 }
 0x385   :  { %v750_v42 = vmul.f32 %v748_v10, %v742_v21 }
 0x386   :  { %v528_v46 = vadd.f32 %v526_v18, %v516_v32 }
 0x387   :  { %v752_v14 = vadd.f32 %v750_v42, %v738_v58 }
 0x388   :  { %v540_v61 = vadd.f32 %v538_v51, %v528_v46  ;;  %v2519_v51 = vor.u32 %v2675_v56, %v2516_v29  ;;  %v2508_v46 = vld [vmem:[%s4243_s3 + $0x88] sm:$0xf0] }
 0x389   :  { %v755_v26 = vadd.f32 %v2862_v37, %v752_v14  ;;  %v2511_v21 = vor.u32 %v2673_v55, %v2508_v46 }
 0x38a   :  { %v552_v33 = vadd.f32 %v550_v19, %v540_v61 }
 0x38b   :  { %v760_v32 = vmax.f32 %v755_v26, 0.0 }
 0x38c   :  { %v564_v8 = vadd.f32 %v562_v59, %v552_v33  ;;  %v732_v30 = vpop.permute.xlu1 %731  ;;  %v1362_v59 = vperm.slane %v3641_v47, 5 }
 0x38d   :  { %v737_v57 = vmul.f32 %v735_v2, %v732_v30  ;;  %v1353_v2 = vperm.slane %v3641_v47, 2 }
 0x38e   :  { %v571_v1 = vadd.f32 %v3184_v15, %v564_v8  ;;  %v2532_v15 = vld [vmem:[%s4243_s3 + $0xb8] sm:$0xf0] }
 0x38f   :  { %v739_v22 = vadd.f32 %v737_v57, %v725_v45  ;;  %v2535_v18 = vor.u32 %v2679_v9, %v2532_v15 }
 0x390   :  { %v758_v41 = vsel %vm182_vm0, %v374_v13, %v571_v1 }
 0x391   :  { %v753_v24 = vadd.f32 %v751_v28, %v739_v22  ;;  %v761_v7 = vmax.f32 %v758_v41, 0.0 }
 0x393   :  { %v763_v11 = vpack.c.bf16 %v761_v7, %v759_v63  ;;  %v756_v50 = vadd.f32 %v2862_v37, %v753_v24  ;;  %v971_v37 = vperm.slane %v3641_v47, 0 }
 0x395   :  { %920 = vmatmul.bf16.vlgmr.msra.gmra.mxu2 %v763_v11  ;;  %v762_v44 = vmax.f32 %v756_v50, 0.0 }
 0x397   :  { %v764_v60 = vpack.c.bf16 %v762_v44, %v760_v32 }
 0x399   :  { %2536 = vmatmul.msk.bf16.vlgmr.msra.gmra.mxu3 %vm182_vm0, %v764_v60 }
 0x39a   :  { %958 = vmatpush.bf16.msra.mxu3 %v2535_v18 }
 0x39e   :  { %959 = vmatpush.bf16.msra.mxu3 %v2527_v23 }
 0x3a2   :  { %960 = vmatpush.bf16.msra.mxu3 %v2519_v51 }
 0x3a6   :  { %961 = vmatpush.bf16.msra.mxu3 %v2511_v21 }
 0x3a9   :  { %948 = vmatmul.bf16.vlgmr.msrb.gmra.mxu3 %v763_v11 }
 0x3b9   :  { %2537 = vmatmul.msk.bf16.vlgmr.msra.gmra.mxu3 %vm182_vm0, %v764_v60 }
 0x3db   :  { %v1159_v54 = vpop.permute.xlu2 %1158 }
 0x3f2   :  { %v1180_v53 = vpop.permute.xlu1 %1179 }
 0x418   :  { %v921_v35 = vpop.f32.mrf.mxu2 }
 0x41c   :  { %v935_v17 = vpop.f32.mrf.mxu3 }
 0x41d   :  { %v3686_v12 = vadd.f32 %v935_v17, %v921_v35 }
 0x41f   :  { %v1161_v10 = vmul.f32 %v1159_v54, %v3686_v12  ;;  %v981_v43 = vmul.f32 %v980_v16, %v3686_v12  ;;  %v1182_v36 = vmul.f32 %v1180_v53, %v3686_v12  ;;  %v972_v57 = vmul.f32 %v971_v37, %v3686_v12 }
 0x420   :  { %v923_v38 = vpop.f32.mrf.mxu2 }
 0x421   :  { %1165 = vrot.lane.b32.xlu1 %v1161_v10, %s2994_s29  ;;  %v983_v34 = vsel %vm182_vm0, %v981_v43, 0.0  ;;  %v974_v1 = vsel %vm182_vm0, %v972_v57, 0.0 }
 0x422   :  { %984 = vadd.xlane.f32.xlu0 %v983_v34 }
 0x424   :  { %v937_v19 = vpop.f32.mrf.mxu3 }
 0x425   :  { %v3692_v61 = vadd.f32 %v937_v19, %v923_v38 }
 0x427   :  { %v1162_v49 = vmul.f32 %v1159_v54, %v3692_v61  ;;  %v982_v40 = vmul.f32 %v980_v16, %v3692_v61  ;;  %v973_v14 = vmul.f32 %v971_v37, %v3692_v61  ;;  %v1183_v20 = vmul.f32 %v1180_v53, %v3692_v61 }
 0x429   :  { %1167 = vrot.lane.b32.xlu2 %v1162_v49, %s2994_s29  ;;  %1186 = vrot.lane.b32.xlu1 %v1182_v36, %s2994_s29  ;;  %v977_v13 = vsel %vm182_vm0, %v973_v14, 0.0  ;;  %v986_v24 = vsel %vm182_vm0, %v982_v40, 0.0 }
 0x42c   :  { %v949_v42 = vpop.f32.mrf.mxu3 }
 0x434   :  { %v951_v0 = vpop.f32.mrf.mxu3 }
 0x43c   :  { %v963_v33 = vpop.f32.mrf.mxu3 }
 0x43d   :  { %v3700_v31 = vadd.f32 %v963_v33, %v949_v42 }
 0x43f   :  { %v1363_v4 = vmul.f32 %v1362_v59, %v3700_v31  ;;  %v1354_v8 = vmul.f32 %v1353_v2, %v3700_v31 }
 0x441   :  { %v1365_v58 = vsel %vm182_vm0, %v1363_v4, 0.0  ;;  %v1356_v5 = vsel %vm182_vm0, %v1354_v8, 0.0 }
 0x442   :  { %1366 = vadd.xlane.f32.xlu0 %v1365_v58 }
 0x444   :  { %v965_v48 = vpop.f32.mrf.mxu3 }
 0x445   :  { %v3705_v3 = vadd.f32 %v965_v48, %v951_v0 }
 0x447   :  { %v1364_v30 = vmul.f32 %v1362_v59, %v3705_v3  ;;  %v1355_v45 = vmul.f32 %v1353_v2, %v3705_v3 }
 0x449   :  { %v1368_v63 = vsel %vm182_vm0, %v1364_v30, 0.0  ;;  %v1359_v7 = vsel %vm182_vm0, %v1355_v45, 0.0 }
 0x44a   :  { %1357 = vadd.xlane.f32.xlu0 %v1356_v5 }
 0x452   :  { %978 = vadd.xlane.f32.xlu2 %v977_v13 }
 0x453   :  { %975 = vadd.xlane.f32.xlu1 %v974_v1 }
 0x46c   :  { %1188 = vrot.lane.b32.xlu1 %v1183_v20, %s2994_s29 }
 0x483   :  { %v1168_v28 = vpop.permute.xlu2 %1167 }
 0x484   :  { %v1174_v22 = vsel %vm182_vm0, %v1168_v28, 0.0 }
 0x485   :  { %1175 = vadd.xlane.f32.xlu2 %v1174_v22 }
 0x493   :  { %v1166_v41 = vpop.permute.xlu1 %1165 }
 0x494   :  { %v1171_v26 = vsel %vm182_vm0, %v1166_v41, 0.0 }
 0x495   :  { %1172 = vadd.xlane.f32.xlu0 %v1171_v26  ;;  %v985_v9 = vpop.xlane.xlu0 %984 }
 0x496   :  { %987 = vadd.xlane.f32.xlu1 %v986_v24  ;;  %v991_v44 = vperm.slane %v985_v9, %v3192_v27 }
 0x49b   :  { %v1187_v11 = vpop.permute.xlu1 %1186 }
 0x49c   :  { %v1192_v50 = vsel %vm182_vm0, %v1187_v11, 0.0 }
 0x49e   :  { %1369 = vadd.xlane.f32.xlu1 %v1368_v63 }
 0x4a6   :  { %1360 = vadd.xlane.f32.xlu1 %v1359_v7 }
 0x4ae   :  { %1193 = vadd.xlane.f32.xlu1 %v1192_v50 }
 0x4b5   :  { %v1367_v15 = vpop.xlane.xlu0 %1366 }
 0x4b6   :  { %v1373_v18 = vperm.slane %v1367_v15, %v3192_v27 }
 0x4bd   :  { %v1358_v32 = vpop.xlane.xlu0 %1357 }
 0x4be   :  { %v1389_v6 = vadd.f32 %v1373_v18, %v1358_v32 }
 0x4c0   :  { %v1393_v23 = vmul.f32 0.2, %v1389_v6  ;;  %vm1391_vm9 = vcmp.gt.f32.partialorder %v1389_v6, 0.0 }
 0x4c2   :  { %v1395_v55 = vsel %vm1391_vm9, %v1389_v6, %v1393_v23 }
 0x4c3   :  { %v1397_v46 = vadd.f32 %v3201_v39, %v1395_v55 }
 0x4c5   :  { %v1399_v21 = vsel %vm235_vm2, %v1397_v46, -inf  ;;  %v979_v10 = vpop.xlane.xlu2 %978 }
 0x4c6   :  { %v976_v60 = vpop.xlane.xlu1 %975 }
 0x4c7   :  { %v1007_v62 = vadd.f32 %v991_v44, %v976_v60 }
 0x4c9   :  { %v1011_v25 = vmul.f32 0.2, %v1007_v62  ;;  %vm1009_vm8 = vcmp.gt.f32.partialorder %v1007_v62, 0.0 }
 0x4cb   :  { %v1013_v56 = vsel %vm1009_vm8, %v1007_v62, %v1011_v25 }
 0x4cc   :  { %v1015_v29 = vadd.f32 %v3201_v39, %v1013_v56 }
 0x4ce   :  { %v1017_v51 = vsel %vm235_vm2, %v1015_v29, -inf }
 0x4cf   :  { %1018 = vmax.xlane.f32.xlu2 %v1017_v51 }
 0x4d7   :  { %1400 = vmax.xlane.f32.xlu2 %v1399_v21 }
 0x4de   :  { %v1189_v35 = vpop.permute.xlu1 %1188 }
 0x4df   :  { %v1195_v16 = vsel %vm182_vm0, %v1189_v35, 0.0 }
 0x4e0   :  { %1196 = vadd.xlane.f32.xlu0 %v1195_v16 }
 0x4f8   :  { %v1176_v14 = vpop.xlane.xlu2 %1175 }
 0x508   :  { %v1173_v48 = vpop.xlane.xlu0 %1172 }
 0x509   :  { %v988_v17 = vpop.xlane.xlu1 %987 }
 0x50a   :  { %v992_v54 = vperm.slane %v988_v17, %v3192_v27 }
 0x50c   :  { %v1008_v43 = vadd.f32 %v992_v54, %v979_v10 }
 0x50e   :  { %vm1010_vm10 = vcmp.gt.f32.partialorder %v1008_v43, 0.0  ;;  %v1012_v34 = vmul.f32 0.2, %v1008_v43 }
 0x510   :  { %v1014_v53 = vsel %vm1010_vm10, %v1008_v43, %v1012_v34 }
 0x511   :  { %v1370_v38 = vpop.xlane.xlu1 %1369  ;;  %v1016_v19 = vadd.f32 %v3208_v52, %v1014_v53 }
 0x512   :  { %v1374_v49 = vperm.slane %v1370_v38, %v3192_v27 }
 0x513   :  { %v1020_v36 = vsel %vm235_vm2, %v1016_v19, -inf }
 0x514   :  { %1021 = vmax.xlane.f32.xlu1 %v1020_v36  ;;  %v4288_v36 = vmov 3  }
 0x519   :  { %v1361_v40 = vpop.xlane.xlu1 %1360 }
 0x51a   :  { %v1390_v42 = vadd.f32 %v1374_v49, %v1361_v40  ;;  %v4289_v40 = vmov 6  }
 0x51c   :  { %v1394_v0 = vmul.f32 0.2, %v1390_v42  ;;  %vm1392_vm11 = vcmp.gt.f32.partialorder %v1390_v42, 0.0 }
 0x51e   :  { %v1396_v59 = vsel %vm1392_vm11, %v1390_v42, %v1394_v0  ;;  %v4290_v42 = vmov 4  }
 0x51f   :  { %v1398_v33 = vadd.f32 %v3208_v52, %v1396_v59  ;;  %v4291_v59 = vmov 1  }
 0x521   :  { %v1194_v4 = vpop.xlane.xlu1 %1193  ;;  %v1402_v58 = vsel %vm235_vm2, %v1398_v33, -inf }
 0x522   :  { %v1200_v2 = vperm.slane %v1194_v4, %v3192_v27  ;;  %1403 = vmax.xlane.f32.xlu1 %v1402_v58  ;;  %v4293_v4 = vmov 7  }
 0x524   :  { %v1216_v8 = vadd.f32 %v1200_v2, %v1173_v48 }
 0x526   :  { %vm1218_vm12 = vcmp.gt.f32.partialorder %v1216_v8, 0.0  ;;  %v1220_v30 = vmul.f32 0.2, %v1216_v8 }
 0x528   :  { %v1222_v45 = vsel %vm1218_vm12, %v1216_v8, %v1220_v30 }
 0x529   :  { %v1224_v5 = vadd.f32 %v3201_v39, %v1222_v45 }
 0x52b   :  { %v1226_v37 = vsel %vm235_vm2, %v1224_v5, -inf }
 0x52c   :  { %1227 = vmax.xlane.f32.xlu2 %v1226_v37  ;;  %v4294_v37 = vmov 2  }
 0x542   :  { %v1019_v57 = vpop.xlane.xlu2 %1018 }
 0x543   :  { %v1023_v13 = vsub.f32 %v1015_v29, %v1019_v57 }
 0x545   :  { %v1025_v1 = vmul.f32 1.442695, %v1023_v13 }
 0x547   :  { %2889 = vpow2.f32 %v1025_v1 }
 0x54a   :  { %v1401_v50 = vpop.xlane.xlu2 %1400 }
 0x54b   :  { %v1405_v32 = vsub.f32 %v1397_v46, %v1401_v50 }
 0x54d   :  { %v2890_v20 = vpop.eup %2889  ;;  %v1407_v18 = vmul.f32 1.442695, %v1405_v32 }
 0x54e   :  { %v1029_v28 = vsel %vm235_vm2, %v2890_v20, 0.0 }
 0x54f   :  { %1030 = vadd.xlane.f32.xlu2 %v1029_v28 }
 0x553   :  { %v1197_v22 = vpop.xlane.xlu0 %1196 }
 0x554   :  { %v1201_v41 = vperm.slane %v1197_v22, %v3192_v27 }
 0x556   :  { %v1217_v26 = vadd.f32 %v1201_v41, %v1176_v14 }
 0x558   :  { %v1221_v24 = vmul.f32 0.2, %v1217_v26  ;;  %vm1219_vm13 = vcmp.gt.f32.partialorder %v1217_v26, 0.0 }
 0x55a   :  { %v1223_v63 = vsel %vm1219_vm13, %v1217_v26, %v1221_v24  ;;  %v1091_v26 = vperm.slane %v3686_v12, 3 }
 0x55b   :  { %v1225_v7 = vadd.f32 %v3208_v52, %v1223_v63 }
 0x55d   :  { %v1229_v11 = vsel %vm235_vm2, %v1225_v7, -inf }
 0x55e   :  { %1230 = vmax.xlane.f32.xlu0 %v1229_v11 }
 0x587   :  { %v1022_v9 = vpop.xlane.xlu1 %1021 }
 0x588   :  { %v1024_v15 = vsub.f32 %v1016_v19, %v1022_v9  ;;  %v4287_v19 = vmov 5  }
 0x58a   :  { %v1027_v44 = vmul.f32 1.442695, %v1024_v15 }
 0x58c   :  { %2891 = vpow2.f32 %v1027_v44 }
 0x58d   :  { %2893 = vpow2.f32 %v1407_v18 }
 0x592   :  { %v2892_v60 = vpop.eup %2891 }
 0x593   :  { %v1032_v6 = vsel %vm235_vm2, %v2892_v60, 0.0  ;;  %v2894_v23 = vpop.eup %2893 }
 0x594   :  { %1033 = vadd.xlane.f32.xlu0 %v1032_v6  ;;  %v1411_v29 = vsel %vm235_vm2, %v2894_v23, 0.0  ;;  %v1063_v6 = vperm.slane %v3686_v12, 1 }
 0x595   :  { %v1404_v62 = vpop.xlane.xlu1 %1403 }
 0x596   :  { %v1406_v25 = vsub.f32 %v1398_v33, %v1404_v62  ;;  %v4292_v33 = vmov 0  }
 0x598   :  { %v1409_v56 = vmul.f32 1.442695, %v1406_v25 }
 0x59a   :  { %2895 = vpow2.f32 %v1409_v56 }
 0x59c   :  { %1412 = vadd.xlane.f32.xlu0 %v1411_v29 }
 0x59f   :  { %v1228_v51 = vpop.xlane.xlu2 %1227 }
 0x5a0   :  { %v2896_v55 = vpop.eup %2895  ;;  %v1232_v21 = vsub.f32 %v1224_v5, %v1228_v51  ;;  %v1119_v51 = vperm.slane %v3686_v12, 5 }
 0x5a1   :  { %v1414_v46 = vsel %vm235_vm2, %v2896_v55, 0.0 }
 0x5a2   :  { %v1234_v35 = vmul.f32 1.442695, %v1232_v21  ;;  %1415 = vadd.xlane.f32.xlu2 %v1414_v46  ;;  %v1050_v21 = vperm.slane %v3692_v61, 0 }
 0x5a4   :  { %2897 = vpow2.f32 %v1234_v35 }
 0x5aa   :  { %v2898_v16 = vpop.eup %2897 }
 0x5ab   :  { %v1238_v17 = vsel %vm235_vm2, %v2898_v16, 0.0 }
 0x5ac   :  { %1239 = vadd.xlane.f32.xlu2 %v1238_v17 }
 0x5c2   :  { %v1031_v54 = vpop.xlane.xlu2 %1030 }
 0x5c3   :  { %2899 = vrcp.f32 %v1031_v54  ;;  %v1133_v54 = vperm.slane %v3686_v12, 6 }
 0x5c9   :  { %v2900_v10 = vpop.eup %2899 }
 0x5ca   :  { %v1037_v43 = vmul.f32 %v2900_v10, %v2890_v20  ;;  %v1077_v20 = vperm.slane %v3686_v12, 2 }
 0x5cc   :  { %1041 = vperm.xlu1 %2769, %v1037_v43   ;;  %1070 = vperm.xlu2 %2771, %v1037_v43  }
 0x5d1   :  { %v1231_v34 = vpop.xlane.xlu0 %1230 }
 0x5d2   :  { %v1233_v53 = vsub.f32 %v1225_v7, %v1231_v34  ;;  %v1105_v7 = vperm.slane %v3686_v12, 4 }
 0x5d4   :  { %v1236_v38 = vmul.f32 1.442695, %v1233_v53  ;;  %2774 = vset.pattern.permute.xlu1 %v4287_v19  ;;  %2772 = vset.pattern.permute.xlu2 %v4288_v36 }
 0x5d5   :  { %1112 = vperm.xlu1 %2774, %v1037_v43   ;;  %1084 = vperm.xlu2 %2772, %v1037_v43  }
 0x5d6   :  { %2901 = vpow2.f32 %v1236_v38 }
 0x5dc   :  { %v3750_v49 = vpop.eup %2901 }
 0x5dd   :  { %2775 = vset.pattern.permute.xlu1 %v4289_v40  ;;  %2773 = vset.pattern.permute.xlu2 %v4290_v42  ;;  %v1241_v0 = vsel %vm235_vm2, %v3750_v49, 0.0 }
 0x5de   :  { %1126 = vperm.xlu1 %2775, %v1037_v43   ;;  %1242 = vadd.xlane.f32.xlu0 %v1241_v0 }
 0x5df   :  { %1098 = vperm.xlu2 %2773, %v1037_v43  }
 0x5e6   :  { %2778 = vset.pattern.permute.xlu1 %v4291_v59 }
 0x5e7   :  { %2777 = vset.pattern.permute.xlu2 %v4292_v33 }
 0x5f2   :  { %1056 = vperm.xlu0 %2770, %v1037_v43  }
 0x5fa   :  { %2776 = vset.pattern.permute.xlu0 %v4293_v4 }
 0x5fb   :  { %1140 = vperm.xlu0 %2776, %v1037_v43  }
 0x603   :  { %2781 = vset.pattern.permute.xlu0 %v4290_v42 }
 0x607   :  { %v1034_v58 = vpop.xlane.xlu0 %1033 }
 0x608   :  { %2903 = vrcp.f32 %v1034_v58 }
 0x60e   :  { %v2904_v2 = vpop.eup %2903 }
 0x60f   :  { %v1038_v48 = vmul.f32 %v2904_v2, %v2892_v60  ;;  %v1413_v8 = vpop.xlane.xlu0 %1412  ;;  %v1049_v60 = vperm.slane %v3686_v12, 0  ;;  %v1120_v2 = vperm.slane %v3692_v61, 5 }
 0x610   :  { %2905 = vrcp.f32 %v1413_v8 }
 0x611   :  { %1102 = vperm.xlu0 %2781, %v1038_v48   ;;  %1060 = vperm.xlu1 %2778, %v1038_v48  }
 0x612   :  { %1046 = vperm.xlu2 %2777, %v1038_v48  }
 0x615   :  { %v1416_v30 = vpop.xlane.xlu2 %1415 }
 0x616   :  { %v2906_v45 = vpop.eup %2905  ;;  %2907 = vrcp.f32 %v1416_v30  ;;  %v1134_v30 = vperm.slane %v3692_v61, 6 }
 0x617   :  { %v1419_v5 = vmul.f32 %v2906_v45, %v2894_v23 }
 0x619   :  { %2779 = vset.pattern.permute.xlu1 %v4294_v37  ;;  %1480 = vperm.xlu0 %2781, %v1419_v5  }
 0x61a   :  { %2782 = vset.pattern.permute.xlu2 %v4287_v19  ;;  %1074 = vperm.xlu1 %2779, %v1038_v48  }
 0x61b   :  { %1116 = vperm.xlu2 %2782, %v1038_v48  }
 0x61c   :  { %v2908_v14 = vpop.eup %2907 }
 0x61d   :  { %v3762_v13 = vmul.f32 %v2908_v14, %v2896_v55  ;;  %v1106_v14 = vperm.slane %v3692_v61, 4 }
 0x61f   :  { %v1240_v57 = vpop.xlane.xlu2 %1239 }
 0x620   :  { %2909 = vrcp.f32 %v1240_v57  ;;  %v1064_v57 = vperm.slane %v3692_v61, 1 }
 0x621   :  { %2798 = vset.pattern.permute.xlu0 %v4289_v40 }
 0x622   :  { %2780 = vset.pattern.permute.xlu1 %v4288_v36  ;;  %1512 = vperm.xlu0 %2798, %v3762_v13  }
 0x623   :  { %2783 = vset.pattern.permute.xlu2 %v4289_v40  ;;  %1088 = vperm.xlu1 %2780, %v1038_v48  }
 0x624   :  { %1130 = vperm.xlu2 %2783, %v1038_v48  }
 0x626   :  { %v2910_v1 = vpop.eup %2909 }
 0x627   :  { %v1071_v28 = vpop.permute.xlu2 %1070  ;;  %v3771_v41 = vmul.f32 %v2910_v1, %v2898_v16  ;;  %v1147_v16 = vperm.slane %v3686_v12, 7 }
 0x628   :  { %v1079_v22 = vmul.f32 %v1077_v20, %v1071_v28 }
 0x62a   :  { %2802 = vset.pattern.permute.xlu0 %v4294_v37 }
 0x62b   :  { %2784 = vset.pattern.permute.xlu1 %v4293_v4  ;;  %1275 = vperm.xlu0 %2802, %v3771_v41  }
 0x62c   :  { %2785 = vset.pattern.permute.xlu2 %v4292_v33  ;;  %1144 = vperm.xlu1 %2784, %v1038_v48  }
 0x62d   :  { %1423 = vperm.xlu2 %2785, %v1419_v5  }
 0x62f   :  { %v1085_v24 = vpop.permute.xlu2 %1084 }
 0x630   :  { %v1093_v63 = vmul.f32 %v1091_v26, %v1085_v24 }
 0x633   :  { %2803 = vset.pattern.permute.xlu0 %v4288_v36 }
 0x634   :  { %2786 = vset.pattern.permute.xlu1 %v4291_v59  ;;  %1287 = vperm.xlu0 %2803, %v3771_v41  }
 0x635   :  { %2787 = vset.pattern.permute.xlu2 %v4294_v37  ;;  %1438 = vperm.xlu1 %2786, %v1419_v5  }
 0x636   :  { %1452 = vperm.xlu2 %2787, %v1419_v5  }
 0x639   :  { %v1099_v11 = vpop.permute.xlu2 %1098 }
 0x63a   :  { %v1107_v50 = vmul.f32 %v1105_v7, %v1099_v11 }
 0x63c   :  { %2806 = vset.pattern.permute.xlu0 %v4292_v33 }
 0x63d   :  { %2789 = vset.pattern.permute.xlu1 %v4287_v19 }
 0x63e   :  { %2788 = vset.pattern.permute.xlu2 %v4288_v36  ;;  %1494 = vperm.xlu1 %2789, %v1419_v5   ;;  %v1042_v32 = vpop.permute.xlu1 %1041 }
 0x63f   :  { %1466 = vperm.xlu2 %2788, %v1419_v5   ;;  %v1051_v25 = vmul.f32 %v1049_v60, %v1042_v32 }
 0x646   :  { %2790 = vset.pattern.permute.xlu1 %v4289_v40 }
 0x647   :  { %2791 = vset.pattern.permute.xlu2 %v4293_v4  ;;  %1508 = vperm.xlu1 %2790, %v1419_v5   ;;  %v1113_v18 = vpop.permute.xlu1 %1112 }
 0x648   :  { %1522 = vperm.xlu2 %2791, %v1419_v5   ;;  %v1121_v17 = vmul.f32 %v1119_v51, %v1113_v18 }
 0x64f   :  { %2792 = vset.pattern.permute.xlu1 %v4292_v33 }
 0x650   :  { %2796 = vset.pattern.permute.xlu2 %v4290_v42  ;;  %1428 = vperm.xlu1 %2792, %v3762_v13   ;;  %v1127_v46 = vpop.permute.xlu1 %1126 }
 0x651   :  { %1484 = vperm.xlu2 %2796, %v3762_v13   ;;  %v1243_v9 = vpop.xlane.xlu0 %1242  ;;  %v1135_v38 = vmul.f32 %v1133_v54, %v1127_v46 }
 0x652   :  { %2911 = vrcp.f32 %v1243_v9 }
 0x658   :  { %v2912_v15 = vpop.eup %2911  ;;  %2793 = vset.pattern.permute.xlu1 %v4291_v59 }
 0x659   :  { %v3798_v44 = vmul.f32 %v2912_v15, %v3750_v49  ;;  %2797 = vset.pattern.permute.xlu2 %v4287_v19  ;;  %1442 = vperm.xlu1 %2793, %v3762_v13   ;;  %v1092_v15 = vperm.slane %v3692_v61, 3 }
 0x65a   :  { %1498 = vperm.xlu2 %2797, %v3762_v13  }
 0x65b   :  { %1255 = vperm.xlu0 %2806, %v3798_v44  }
 0x661   :  { %2794 = vset.pattern.permute.xlu1 %v4294_v37 }
 0x662   :  { %2800 = vset.pattern.permute.xlu2 %v4292_v33  ;;  %1456 = vperm.xlu1 %2794, %v3762_v13  }
 0x663   :  { %1250 = vperm.xlu2 %2800, %v3771_v41   ;;  %2812 = vset.pattern.permute.xlu0 %v4287_v19 }
 0x664   :  { %v1057_v62 = vpop.permute.xlu0 %1056  ;;  %1315 = vperm.xlu0 %2812, %v3798_v44  }
 0x665   :  { %v1065_v23 = vmul.f32 %v1063_v6, %v1057_v62 }
 0x667   :  { %v1067_v56 = vadd.f32 %v1065_v23, %v1051_v25 }
 0x669   :  { %v1081_v29 = vadd.f32 %v1079_v22, %v1067_v56  ;;  %v1148_v56 = vperm.slane %v3692_v61, 7 }
 0x66a   :  { %2795 = vset.pattern.permute.xlu1 %v4288_v36 }
 0x66b   :  { %v1095_v55 = vadd.f32 %v1093_v63, %v1081_v29  ;;  %2807 = vset.pattern.permute.xlu2 %v4291_v59  ;;  %1470 = vperm.xlu1 %2795, %v3762_v13   ;;  %v1078_v63 = vperm.slane %v3692_v61, 2 }
 0x66c   :  { %1267 = vperm.xlu2 %2807, %v3798_v44   ;;  %v1047_v35 = vpop.permute.xlu2 %1046  ;;  %2813 = vset.pattern.permute.xlu0 %v4293_v4 }
 0x66d   :  { %v1052_v10 = vmul.f32 %v1050_v21, %v1047_v35  ;;  %v1141_v43 = vpop.permute.xlu0 %1140  ;;  %v1109_v34 = vadd.f32 %v1107_v50, %v1095_v55  ;;  %1335 = vperm.xlu0 %2813, %v3771_v41  }
 0x66e   :  { %v1149_v53 = vmul.f32 %v1147_v16, %v1141_v43 }
 0x66f   :  { %v1123_v49 = vadd.f32 %v1121_v17, %v1109_v34 }
 0x671   :  { %v1137_v0 = vadd.f32 %v1135_v38, %v1123_v49 }
 0x673   :  { %v3834_v58 = vadd.f32 %v1149_v53, %v1137_v0  ;;  %2799 = vset.pattern.permute.xlu1 %v4293_v4  ;;  %v2630_v0 = vld [vmem:[#allocation2 + $0xb0] sm:$0xf] }
 0x674   :  { %2808 = vset.pattern.permute.xlu2 %v4294_v37  ;;  %1526 = vperm.xlu1 %2799, %v3762_v13  }
 0x675   :  { %1279 = vperm.xlu2 %2808, %v3798_v44   ;;  %v1117_v48 = vpop.permute.xlu2 %1116  ;;  %2816 = vset.pattern.permute.xlu0 %v4292_v33 }
 0x676   :  { %v1122_v8 = vmul.f32 %v1120_v2, %v1117_v48  ;;  %v2704_v48 = vld [vmem:[#allocation2 + $0xb4] sm:$0xf0] }
 0x67c   :  { %2801 = vset.pattern.permute.xlu1 %v4291_v59 }
 0x67d   :  { %2809 = vset.pattern.permute.xlu2 %v4289_v40  ;;  %1263 = vperm.xlu1 %2801, %v3771_v41  }
 0x67e   :  { %1323 = vperm.xlu2 %2809, %v3771_v41   ;;  %v1131_v45 = vpop.permute.xlu2 %1130 }
 0x67f   :  { %v1136_v5 = vmul.f32 %v1134_v30, %v1131_v45  ;;  %v2622_v45 = vld [vmem:[#allocation2 + $0xa0] sm:$0xf] }
 0x683   :  { %v1103_v13 = vpop.permute.xlu0 %1102  ;;  %v1061_v1 = vpop.permute.xlu1 %1060 }
 0x684   :  { %v1108_v28 = vmul.f32 %v1106_v14, %v1103_v13  ;;  %v1066_v22 = vmul.f32 %v1064_v57, %v1061_v1  ;;  %v2700_v1 = vld [vmem:[#allocation2 + $0x94] sm:$0xf0] }
 0x685   :  { %2804 = vset.pattern.permute.xlu1 %v4290_v42 }
 0x686   :  { %v1068_v24 = vadd.f32 %v1066_v22, %v1052_v10  ;;  %2815 = vset.pattern.permute.xlu2 %v4293_v4  ;;  %1299 = vperm.xlu1 %2804, %v3771_v41   ;;  %v1346_v10 = vperm.slane %v3641_v47, 7  ;;  %v2614_v47 = vld [vmem:[#allocation2 + $0x90] sm:$0xf] }
 0x687   :  { %1339 = vperm.xlu2 %2815, %v3798_v44   ;;  %v1424_v17 = vpop.permute.xlu2 %1423 }
 0x68c   :  { %v1075_v11 = vpop.permute.xlu1 %1074 }
 0x68d   :  { %v1080_v50 = vmul.f32 %v1078_v63, %v1075_v11 }
 0x68e   :  { %2805 = vset.pattern.permute.xlu1 %v4287_v19 }
 0x68f   :  { %v1082_v9 = vadd.f32 %v1080_v50, %v1068_v24  ;;  %1311 = vperm.xlu1 %2805, %v3771_v41   ;;  %v2615_v50 = vor.u32 %v2700_v1, %v2614_v47  ;;  %v1446_v47 = vperm.slane %v3705_v3, 1  ;;  %v1487_v1 = vperm.slane %v3700_v31, 4 }
 0x690   :  { %v1453_v34 = vpop.permute.xlu2 %1452 }
 0x695   :  { %v1089_v32 = vpop.permute.xlu1 %1088 }
 0x696   :  { %v1094_v18 = vmul.f32 %v1092_v15, %v1089_v32  ;;  %v2606_v32 = vld [vmem:[#allocation2 + $0x80] sm:$0xf] }
 0x697   :  { %2810 = vset.pattern.permute.xlu1 %v4288_v36 }
 0x698   :  { %v1096_v62 = vadd.f32 %v1094_v18, %v1082_v9  ;;  %1291 = vperm.xlu1 %2810, %v3798_v44   ;;  %v2698_v18 = vld [vmem:[#allocation2 + $0x84] sm:$0xf0] }
 0x699   :  { %v1467_v38 = vpop.permute.xlu2 %1466 }
 0x69a   :  { %v1110_v25 = vadd.f32 %v1108_v28, %v1096_v62  ;;  %v1431_v28 = vperm.slane %v3700_v31, 0  ;;  %v1459_v62 = vperm.slane %v3700_v31, 2 }
 0x69c   :  { %v1124_v23 = vadd.f32 %v1122_v8, %v1110_v25  ;;  %v2631_v8 = vor.u32 %v2704_v48, %v2630_v0  ;;  %v1433_v9 = vmul.f32 %v1431_v28, %v1424_v17  ;;  %v1432_v28 = vperm.slane %v3705_v3, 0 }
 0x69e   :  { %v1138_v29 = vadd.f32 %v1136_v5, %v1124_v23  ;;  %v1145_v55 = vpop.permute.xlu1 %1144  ;;  %v2702_v5 = vld [vmem:[#allocation2 + $0xa4] sm:$0xf0]  ;;  %1711 = vmatpush.bf16.msrb.mxu2 %v2631_v8  ;;  %v2607_v23 = vor.u32 %v2698_v18, %v2606_v32  ;;  %v1501_v32 = vperm.slane %v3700_v31, 5 }
 0x69f   :  { %v1150_v41 = vmul.f32 %v1148_v56, %v1145_v55  ;;  %v2623_v13 = vor.u32 %v2702_v5, %v2622_v45  ;;  %v2703_v55 = vld [vmem:[#allocation2 + $0xb4] sm:$0xf]  ;;  %v2624_v45 = vld [vmem:[#allocation2 + $0xa8] sm:$0xf0] }
 0x6a0   :  { %2811 = vset.pattern.permute.xlu1 %v4290_v42 }
 0x6a1   :  { %v3875_v46 = vadd.f32 %v1150_v41, %v1138_v29  ;;  %1303 = vperm.xlu1 %2811, %v3798_v44   ;;  %v1461_v29 = vmul.f32 %v1459_v62, %v1453_v34  ;;  %v2632_v41 = vld [vmem:[#allocation2 + $0xb8] sm:$0xf0]  ;;  %v2699_v62 = vld [vmem:[#allocation2 + $0x94] sm:$0xf] }
 0x6a2   :  { %1712 = vmatpush.bf16.msrb.mxu2 %v2623_v13  ;;  %v3885_v22 = vpop.permute.xlu2 %1522  ;;  %v2635_v48 = vor.u32 %v2703_v55, %v2632_v41  ;;  %v1515_v55 = vperm.slane %v3700_v31, 6 }
 0x6a6   :  { %1713 = vmatpush.bf16.msrb.mxu2 %v2615_v50  ;;  %v1460_v50 = vperm.slane %v3705_v3, 2 }
 0x6a7   :  { %v1439_v35 = vpop.permute.xlu1 %1438 }
 0x6a9   :  { %2814 = vset.pattern.permute.xlu1 %v4289_v40 }
 0x6aa   :  { %1327 = vperm.xlu1 %2814, %v3798_v44   ;;  %v1445_v44 = vperm.slane %v3700_v31, 1  ;;  %1714 = vmatpush.bf16.msrb.mxu2 %v2607_v23 }
 0x6ab   :  { %v1485_v17 = vpop.permute.xlu2 %1484 }
 0x6ac   :  { %v1447_v24 = vmul.f32 %v1445_v44, %v1439_v35  ;;  %v2701_v35 = vld [vmem:[#allocation2 + $0xa4] sm:$0xf]  ;;  %v1481_v44 = vpop.permute.xlu0 %1480 }
 0x6ad   :  { %v2627_v13 = vor.u32 %v2701_v35, %v2624_v45 }
 0x6ae   :  { %v1449_v25 = vadd.f32 %v1447_v24, %v1433_v9  ;;  %1739 = vmatpush.bf16.msra.mxu2 %v2635_v48  ;;  %v1489_v9 = vmul.f32 %v1487_v1, %v1481_v44 }
 0x6b0   :  { %v1495_v43 = vpop.permute.xlu1 %1494  ;;  %v1463_v0 = vadd.f32 %v1461_v29, %v1449_v25  ;;  %v2616_v25 = vld [vmem:[#allocation2 + $0x98] sm:$0xf0] }
 0x6b1   :  { %v1503_v29 = vmul.f32 %v1501_v32, %v1495_v43  ;;  %v2619_v41 = vor.u32 %v2699_v62, %v2616_v25  ;;  %v1502_v43 = vperm.slane %v3705_v3, 5 }
 0x6b2   :  { %1348 = vrot.lane.b32.xlu1 %v1346_v10, %s2994_s29  ;;  %v1473_v10 = vperm.slane %v3700_v31, 3  ;;  %1740 = vmatpush.bf16.msra.mxu2 %v2627_v13  ;;  %v1488_v13 = vperm.slane %v3705_v3, 4 }
 0x6b3   :  { %2817 = vset.pattern.permute.xlu1 %v4291_v59 }
 0x6b4   :  { %v1475_v5 = vmul.f32 %v1473_v10, %v1467_v38  ;;  %v2697_v10 = vld [vmem:[#allocation2 + $0x84] sm:$0xf]  ;;  %v1490_v1 = vmul.f32 %v1488_v13, %v1485_v17  ;;  %v2863_v17 = vld [vmem:[%s4245_s5 + $0x18] ss:$0 sm:$0xff]  ;;  %v2600_v13 = vld [vmem:[#allocation2 + $0x78] sm:$0xf0] }
 0x6b6   :  { %v1477_v34 = vadd.f32 %v1475_v5, %v1463_v0  ;;  %v2608_v0 = vld [vmem:[#allocation2 + $0x88] sm:$0xf0]  ;;  %1741 = vmatpush.bf16.msra.mxu2 %v2619_v41 }
 0x6b7   :  { %v2611_v5 = vor.u32 %v2697_v10, %v2608_v0 }
 0x6b8   :  { %v1491_v23 = vadd.f32 %v1489_v9, %v1477_v34 }
 0x6b9   :  { %v1509_v53 = vpop.permute.xlu1 %1508 }
 0x6ba   :  { %v1517_v35 = vmul.f32 %v1515_v55, %v1509_v53  ;;  %v1505_v44 = vadd.f32 %v1503_v29, %v1491_v23  ;;  %1742 = vmatpush.bf16.msra.mxu2 %v2611_v5  ;;  %v1516_v53 = vperm.slane %v3705_v3, 6  ;;  %v1530_v23 = vperm.slane %v3705_v3, 7  ;;  %v2695_v5 = vld [vmem:[#allocation2 + $0x74] sm:$0xf] }
 0x6c2   :  { %v1429_v49 = vpop.permute.xlu1 %1428 }
 0x6c3   :  { %v1434_v18 = vmul.f32 %v1432_v28, %v1429_v49  ;;  %v1513_v28 = vpop.permute.xlu0 %1512 }
 0x6c4   :  { %v1518_v62 = vmul.f32 %v1516_v53, %v1513_v28  ;;  %v2691_v53 = vld [vmem:[#allocation2 + $0x54] sm:$0xf] }
 0x6cb   :  { %v1443_v11 = vpop.permute.xlu1 %1442 }
 0x6cc   :  { %v1448_v24 = vmul.f32 %v1446_v47, %v1443_v11  ;;  %v1474_v11 = vperm.slane %v3705_v3, 3  ;;  %v1499_v47 = vpop.permute.xlu2 %1498  ;;  %v2693_v3 = vld [vmem:[#allocation2 + $0x64] sm:$0xf] }
 0x6cd   :  { %v1504_v9 = vmul.f32 %v1502_v43, %v1499_v47  ;;  %v2603_v47 = vor.u32 %v2695_v5, %v2600_v13  ;;  %v2592_v43 = vld [vmem:[#allocation2 + $0x68] sm:$0xf0]  ;;  %v2686_v5 = vld [vmem:[#allocation2 + $0x24] sm:$0xf0]  ;;  %v2685_v13 = vld [vmem:[#allocation2 + $0x24] sm:$0xf] }
 0x6ce   :  { %v1450_v48 = vadd.f32 %v1448_v24, %v1434_v18  ;;  %v1519_v24 = vadd.f32 %v1517_v35, %v1505_v44  ;;  %v2598_v35 = vld [vmem:[#allocation2 + $0x70] sm:$0xf]  ;;  %v2595_v28 = vor.u32 %v2693_v3, %v2592_v43 }
 0x6cf   :  { %1721 = vmatpush.bf16.msrb.mxu0 %v2603_v47 }
 0x6d3   :  { %1722 = vmatpush.bf16.msrb.mxu0 %v2595_v28  ;;  %v2550_v28 = vld [vmem:[#allocation2 + $0x10] sm:$0xf] }
 0x6d4   :  { %v1457_v8 = vpop.permute.xlu1 %1456 }
 0x6d5   :  { %v1462_v38 = vmul.f32 %v1460_v50, %v1457_v8  ;;  %v1529_v50 = vperm.slane %v3700_v31, 7 }
 0x6d7   :  { %v1464_v49 = vadd.f32 %v1462_v38, %v1450_v48  ;;  %v1531_v18 = vmul.f32 %v1529_v50, %v3885_v22  ;;  %v2582_v50 = vld [vmem:[#allocation2 + $0x50] sm:$0xf] }
 0x6d9   :  { %v1533_v25 = vadd.f32 %v1531_v18, %v1519_v24  ;;  %v2692_v24 = vld [vmem:[#allocation2 + $0x54] sm:$0xf0]  ;;  %v2584_v18 = vld [vmem:[#allocation2 + $0x58] sm:$0xf0] }
 0x6db   :  { %v1536_v41 = vadd.f32 %v2863_v17, %v1533_v25  ;;  %v2587_v25 = vor.u32 %v2691_v53, %v2584_v18  ;;  %v2542_v18 = vld [vmem:[#allocation2] sm:$0xf] }
 0x6dd   :  { %v1471_v45 = vpop.permute.xlu1 %1470  ;;  %v1541_v48 = vmax.f32 %v1536_v41, 0.0  ;;  %1723 = vmatpush.bf16.msrb.mxu0 %v2587_v25  ;;  %v2681_v25 = vld [vmem:[#allocation2 + $0x4] sm:$0xf] }
 0x6de   :  { %v1476_v8 = vmul.f32 %v1474_v11, %v1471_v45  ;;  %v2696_v45 = vld [vmem:[#allocation2 + $0x74] sm:$0xf0] }
 0x6df   :  { %v2599_v22 = vor.u32 %v2696_v45, %v2598_v35  ;;  %v2568_v35 = vld [vmem:[#allocation2 + $0x38] sm:$0xf0] }
 0x6e0   :  { %v1478_v34 = vadd.f32 %v1476_v8, %v1464_v49  ;;  %v2590_v49 = vld [vmem:[#allocation2 + $0x60] sm:$0xf] }
 0x6e1   :  { %1693 = vmatpush.bf16.msrb.mxu1 %v2599_v22  ;;  %v2558_v22 = vld [vmem:[#allocation2 + $0x20] sm:$0xf] }
 0x6e2   :  { %v1492_v32 = vadd.f32 %v1490_v1, %v1478_v34  ;;  %v2694_v1 = vld [vmem:[#allocation2 + $0x64] sm:$0xf0]  ;;  %v2559_v47 = vor.u32 %v2686_v5, %v2558_v22 }
 0x6e3   :  { %v2591_v34 = vor.u32 %v2694_v1, %v2590_v49  ;;  %v2560_v1 = vld [vmem:[#allocation2 + $0x28] sm:$0xf0] }
 0x6e4   :  { %v1506_v38 = vadd.f32 %v1504_v9, %v1492_v32  ;;  %v1251_v9 = vpop.permute.xlu2 %1250  ;;  %v2583_v32 = vor.u32 %v2692_v24, %v2582_v50  ;;  %v2684_v50 = vld [vmem:[#allocation2 + $0x14] sm:$0xf0]  ;;  %v2683_v24 = vld [vmem:[#allocation2 + $0x14] sm:$0xf] }
 0x6e5   :  { %1694 = vmatpush.bf16.msrb.mxu1 %v2591_v34  ;;  %v2563_v34 = vor.u32 %v2685_v13, %v2560_v1  ;;  %v2551_v53 = vor.u32 %v2684_v50, %v2550_v28 }
 0x6e6   :  { %v1520_v29 = vadd.f32 %v1518_v62, %v1506_v38  ;;  %v1527_v55 = vpop.permute.xlu1 %1526  ;;  %v2574_v62 = vld [vmem:[#allocation2 + $0x40] sm:$0xf]  ;;  %v2690_v38 = vld [vmem:[#allocation2 + $0x44] sm:$0xf0] }
 0x6e7   :  { %v1532_v31 = vmul.f32 %v1530_v23, %v1527_v55  ;;  %v2689_v23 = vld [vmem:[#allocation2 + $0x44] sm:$0xf] }
 0x6e9   :  { %v1534_v10 = vadd.f32 %v1532_v31, %v1520_v29  ;;  %v2576_v29 = vld [vmem:[#allocation2 + $0x48] sm:$0xf0]  ;;  %1695 = vmatpush.bf16.msrb.mxu1 %v2583_v32  ;;  %v2575_v31 = vor.u32 %v2690_v38, %v2574_v62  ;;  %v2552_v32 = vld [vmem:[#allocation2 + $0x18] sm:$0xf0]  ;;  %v2682_v62 = vld [vmem:[#allocation2 + $0x4] sm:$0xf0] }
 0x6ea   :  { %v2579_v41 = vor.u32 %v2689_v23, %v2576_v29  ;;  %v2555_v38 = vor.u32 %v2683_v24, %v2552_v32  ;;  %v2544_v23 = vld [vmem:[#allocation2 + $0x8] sm:$0xf0]  ;;  %v2543_v29 = vor.u32 %v2682_v62, %v2542_v18 }
 0x6eb   :  { %v1537_v0 = vadd.f32 %v2863_v17, %v1534_v10  ;;  %v1276_v17 = vpop.permute.xlu0 %1275  ;;  %v2566_v10 = vld [vmem:[#allocation2 + $0x30] sm:$0xf] }
 0x6ec   :  { %1724 = vmatpush.bf16.msrb.mxu0 %v2579_v41  ;;  %v1268_v49 = vpop.permute.xlu2 %1267  ;;  %v1282_v5 = vmul.f32 %v1276_v17, %v1077_v20 }
 0x6ed   :  { %v1543_v11 = vmax.f32 %v1537_v0, 0.0  ;;  %1696 = vmatpush.bf16.msrb.mxu1 %v2575_v31  ;;  %v2688_v0 = vld [vmem:[#allocation2 + $0x34] sm:$0xf0] }
 0x6ef   :  { %v1545_v8 = vpack.c.bf16 %v1543_v11, %v1541_v48  ;;  %v3905_v44 = vpop.permute.xlu1 %1263  ;;  %v2687_v48 = vld [vmem:[#allocation2 + $0x34] sm:$0xf]  ;;  %v2567_v11 = vor.u32 %v2688_v0, %v2566_v10 }
 0x6f0   :  { %v2571_v45 = vor.u32 %v2687_v48, %v2568_v35  ;;  %v1270_v0 = vmul.f32 %v3905_v44, %v1063_v6  ;;  %v3917_v48 = vld [vmem:[%s4245_s5 + $0x20] sm:$0xff]  ;;  %v1271_v6 = vmul.f32 %v1268_v49, %v1064_v57 }
 0x6f1   :  { %2636 = vmatmul.msk.bf16.vlgmr.msrb.gmra.mxu2 %vm182_vm0, %v1545_v8  ;;  %1697 = vmatpush.bf16.msrb.mxu1 %v2567_v11  ;;  %v1258_v11 = vmul.f32 %v1251_v9, %v1049_v60  ;;  %v1958_v22 = vperm.slane %v3917_v48, 4  ;;  %v2127_v61 = vperm.slane %v3917_v48, 7 }
 0x6f2   :  { %1725 = vmatpush.bf16.msrb.mxu0 %v2571_v45  ;;  %v1937_v45 = vperm.slane %v3917_v48, 1 }
 0x6f3   :  { %v1288_v3 = vpop.permute.xlu0 %1287  ;;  %v1272_v44 = vadd.f32 %v1270_v0, %v1258_v11  ;;  %1960 = vrot.lane.b32.xlu2 %v1958_v22, %s2994_s29  ;;  %v1761_v22 = vperm.slane %v3917_v48, 3 }
 0x6f4   :  { %v1280_v41 = vpop.permute.xlu2 %1279  ;;  %1939 = vrot.lane.b32.xlu1 %v1937_v45, %s2994_s29  ;;  %v1294_v57 = vmul.f32 %v1288_v3, %v1091_v26 }
 0x6f5   :  { %1698 = vmatpush.bf16.msrb.mxu1 %v2559_v47  ;;  %v1284_v9 = vadd.f32 %v1282_v5, %v1272_v44 }
 0x6f6   :  { %1726 = vmatpush.bf16.msrb.mxu0 %v2563_v34 }
 0x6f7   :  { %v1296_v17 = vadd.f32 %v1294_v57, %v1284_v9 }
 0x6f8   :  { %v3908_v55 = vpop.permute.xlu1 %1299 }
 0x6f9   :  { %1699 = vmatpush.bf16.msrb.mxu1 %v2551_v53  ;;  %v1306_v28 = vmul.f32 %v3908_v55, %v1105_v7 }
 0x6fa   :  { %1727 = vmatpush.bf16.msrb.mxu0 %v2555_v38 }
 0x6fb   :  { %v1256_v31 = vpop.permute.xlu0 %1255  ;;  %2129 = vrot.lane.b32.xlu2 %v2127_v61, %s2994_s29 }
 0x6fc   :  { %v1259_v35 = vmul.f32 %v1256_v31, %v1050_v21  ;;  %v1283_v21 = vmul.f32 %v1280_v41, %v1078_v63  ;;  %v1324_v34 = vpop.permute.xlu2 %1323 }
 0x6fd   :  { %1700 = vmatpush.bf16.msrb.mxu1 %v2543_v29  ;;  %v1330_v3 = vmul.f32 %v1324_v34, %v1133_v54  ;;  %v2134_v34 = vperm.slane %v3917_v48, 2 }
 0x6fe   :  { %v1273_v60 = vadd.f32 %v1271_v6, %v1259_v35 }
 0x700   :  { %v1285_v49 = vadd.f32 %v1283_v21, %v1273_v60 }
 0x701   :  { %2637 = vmatmul.msk.bf16.vlgmr.msra.gmra.mxu2 %vm182_vm0, %v1545_v8  ;;  %v1312_v43 = vpop.permute.xlu1 %1311  ;;  %v2547_v8 = vor.u32 %v2681_v25, %v2544_v23 }
 0x702   :  { %v1318_v63 = vmul.f32 %v1312_v43, %v1119_v51  ;;  %v2938_v51 = vld [vmem:[%s4245_s5 + $0x10] sm:$0xff] }
 0x703   :  { %1728 = vmatpush.bf16.msrb.mxu0 %v2547_v8  ;;  %v1316_v1 = vpop.permute.xlu0 %1315  ;;  %v1153_v43 = vperm.slane %v2938_v51, 6 }
 0x704   :  { %v1319_v53 = vmul.f32 %v1316_v1, %v1120_v2  ;;  %v1340_v55 = vpop.permute.xlu2 %1339 }
 0x705   :  { %v1343_v25 = vmul.f32 %v1340_v55, %v1148_v56  ;;  %v1155_v31 = vadd.f32 %v1153_v43, %v3875_v46  ;;  %v2143_v46 = vperm.slane %v3917_v48, 5 }
 0x70a   :  { %v1292_v10 = vpop.permute.xlu1 %1291 }
 0x70b   :  { %v1295_v13 = vmul.f32 %v1292_v10, %v1092_v15  ;;  %v1308_v15 = vadd.f32 %v1306_v28, %v1296_v17 }
 0x70d   :  { %v1297_v50 = vadd.f32 %v1295_v13, %v1285_v49  ;;  %v1320_v32 = vadd.f32 %v1318_v63, %v1308_v15 }
 0x70f   :  { %v1332_v62 = vadd.f32 %v1330_v3, %v1320_v32 }
 0x713   :  { %v1304_v47 = vpop.permute.xlu1 %1303 }
 0x714   :  { %v1307_v20 = vmul.f32 %v1304_v47, %v1106_v14  ;;  %v1336_v14 = vpop.permute.xlu0 %1335 }
 0x715   :  { %v1342_v2 = vmul.f32 %v1336_v14, %v1147_v16 }
 0x716   :  { %v1309_v24 = vadd.f32 %v1307_v20, %v1297_v50 }
 0x717   :  { %v1344_v54 = vadd.f32 %v1342_v2, %v1332_v62 }
 0x718   :  { %v1321_v18 = vadd.f32 %v1319_v53, %v1309_v24  ;;  %v1752_v24 = vperm.slane %v3917_v48, 0 }
 0x71c   :  { %v1328_v26 = vpop.permute.xlu1 %1327 }
 0x71d   :  { %v1331_v7 = vmul.f32 %v1328_v26, %v1134_v30  ;;  %v1154_v30 = vadd.f32 %v1153_v43, %v3834_v58 }
 0x71f   :  { %v1333_v38 = vadd.f32 %v1331_v7, %v1321_v18 }
 0x721   :  { %v1345_v23 = vadd.f32 %v1343_v25, %v1333_v38 }
 0x724   :  { %v1349_v29 = vpop.permute.xlu1 %1348 }
 0x725   :  { %v1351_v8 = vadd.f32 %v1349_v29, %v1344_v54  ;;  %v1352_v41 = vadd.f32 %v1349_v29, %v1345_v23 }
 0x727   :  { %v1538_v10 = vsel %vm182_vm0, %v1154_v30, %v1351_v8  ;;  %v1539_v0 = vsel %vm182_vm0, %v1155_v31, %v1352_v41 }
 0x728   :  { %v1540_v11 = vmax.f32 %v1538_v10, 0.0  ;;  %v1542_v35 = vmax.f32 %v1539_v0, 0.0 }
 0x72a   :  { %v1544_v12 = vpack.c.bf16 %v1542_v35, %v1540_v11 }
 0x72c   :  { %1701 = vmatmul.bf16.vlgmr.msrb.gmra.mxu1 %v1544_v12  ;;  %1729 = vmatmul.bf16.vlgmr.msrb.gmra.mxu0 %v1544_v12 }
 0x74d   :  { %v1961_v45 = vpop.permute.xlu2 %1960 }
 0x755   :  { %v3996_v51 = vpop.permute.xlu2 %2129 }
 0x766   :  { %v1940_v57 = vpop.permute.xlu1 %1939 }
 0x774   :  { %v1716_v16 = vpop.f32.mrf.mxu2 }
 0x77c   :  { %v1718_v56 = vpop.f32.mrf.mxu2 }
 0x784   :  { %v1744_v58 = vpop.f32.mrf.mxu2 }
 0x78c   :  { %v1746_v18 = vpop.f32.mrf.mxu2 }
 0x7a9   :  { %v1702_v6 = vpop.f32.mrf.mxu1  ;;  %v1730_v44 = vpop.f32.mrf.mxu0 }
 0x7aa   :  { %v3965_v5 = vadd.f32 %v1716_v16, %v1702_v6  ;;  %v3967_v60 = vadd.f32 %v1744_v58, %v1730_v44 }
 0x7ac   :  { %v1963_v21 = vmul.f32 %v1961_v45, %v3965_v5  ;;  %v2144_v9 = vmul.f32 %v2143_v46, %v3967_v60  ;;  %v1762_v13 = vmul.f32 %v1761_v22, %v3965_v5  ;;  %v2135_v49 = vmul.f32 %v2134_v34, %v3967_v60 }
 0x7ad   :  { %v1942_v28 = vmul.f32 %v1940_v57, %v3965_v5  ;;  %v1753_v53 = vmul.f32 %v1752_v24, %v3965_v5 }
 0x7ae   :  { %1967 = vrot.lane.b32.xlu2 %v1963_v21, %s2994_s29  ;;  %v2146_v47 = vsel %vm182_vm0, %v2144_v9, 0.0  ;;  %v1764_v1 = vsel %vm182_vm0, %v1762_v13, 0.0  ;;  %v2137_v20 = vsel %vm182_vm0, %v2135_v49, 0.0 }
 0x7af   :  { %2147 = vadd.xlane.f32.xlu1 %v2146_v47  ;;  %1765 = vadd.xlane.f32.xlu0 %v1764_v1  ;;  %v1755_v32 = vsel %vm182_vm0, %v1753_v53, 0.0 }
 0x7b1   :  { %v1704_v17 = vpop.f32.mrf.mxu1  ;;  %v1732_v3 = vpop.f32.mrf.mxu0 }
 0x7b2   :  { %v3980_v63 = vadd.f32 %v1718_v56, %v1704_v17  ;;  %v3990_v7 = vadd.f32 %v1746_v18, %v1732_v3 }
 0x7b4   :  { %v1964_v50 = vmul.f32 %v1961_v45, %v3980_v63  ;;  %v1943_v15 = vmul.f32 %v1940_v57, %v3980_v63  ;;  %v1763_v26 = vmul.f32 %v1761_v22, %v3980_v63  ;;  %v2136_v55 = vmul.f32 %v2134_v34, %v3990_v7 }
 0x7b5   :  { %v1754_v38 = vmul.f32 %v1752_v24, %v3980_v63  ;;  %v2145_v2 = vmul.f32 %v2143_v46, %v3990_v7 }
 0x7b6   :  { %1946 = vrot.lane.b32.xlu2 %v1942_v28, %s2994_s29  ;;  %v1767_v14 = vsel %vm182_vm0, %v1763_v26, 0.0  ;;  %v2140_v62 = vsel %vm182_vm0, %v2136_v55, 0.0 }
 0x7b7   :  { %2138 = vadd.xlane.f32.xlu1 %v2137_v20  ;;  %v1758_v43 = vsel %vm182_vm0, %v1754_v38, 0.0  ;;  %v2149_v54 = vsel %vm182_vm0, %v2145_v2, 0.0 }
 0x7d0   :  { %1969 = vrot.lane.b32.xlu1 %v1964_v50, %s2994_s29 }
 0x7d8   :  { %1948 = vrot.lane.b32.xlu1 %v1943_v15, %s2994_s29 }
 0x7df   :  { %1756 = vadd.xlane.f32.xlu2 %v1755_v32 }
 0x7e7   :  { %1768 = vadd.xlane.f32.xlu2 %v1767_v14 }
 0x7ef   :  { %2141 = vadd.xlane.f32.xlu2 %v2140_v62 }
 0x802   :  { %1759 = vadd.xlane.f32.xlu1 %v1758_v43 }
 0x808   :  { %v1968_v25 = vpop.permute.xlu2 %1967 }
 0x809   :  { %v1973_v29 = vsel %vm182_vm0, %v1968_v25, 0.0 }
 0x80a   :  { %2150 = vadd.xlane.f32.xlu1 %v2149_v54 }
 0x810   :  { %v1947_v23 = vpop.permute.xlu2 %1946 }
 0x811   :  { %v1952_v30 = vsel %vm182_vm0, %v1947_v23, 0.0 }
 0x812   :  { %1974 = vadd.xlane.f32.xlu1 %v1973_v29  ;;  %1953 = vadd.xlane.f32.xlu2 %v1952_v30 }
 0x822   :  { %v2148_v31 = vpop.xlane.xlu1 %2147  ;;  %v1766_v45 = vpop.xlane.xlu0 %1765 }
 0x823   :  { %v2154_v41 = vperm.slane %v2148_v31, %v3192_v27  ;;  %v1772_v46 = vperm.slane %v1766_v45, %v3192_v27 }
 0x82a   :  { %v2139_v8 = vpop.xlane.xlu1 %2138 }
 0x82b   :  { %v2170_v10 = vadd.f32 %v2154_v41, %v2139_v8 }
 0x82d   :  { %v2174_v0 = vmul.f32 0.2, %v2170_v10  ;;  %vm2172_vm14 = vcmp.gt.f32.partialorder %v2170_v10, 0.0 }
 0x82f   :  { %v2176_v12 = vsel %vm2172_vm14, %v2170_v10, %v2174_v0 }
 0x830   :  { %v2178_v61 = vadd.f32 %v3201_v39, %v2176_v12 }
 0x832   :  { %v2180_v58 = vsel %vm235_vm2, %v2178_v61, -inf }
 0x842   :  { %v1970_v11 = vpop.permute.xlu1 %1969 }
 0x843   :  { %v1976_v35 = vsel %vm182_vm0, %v1970_v11, 0.0 }
 0x844   :  { %1977 = vadd.xlane.f32.xlu0 %v1976_v35 }
 0x84a   :  { %v1949_v16 = vpop.permute.xlu1 %1948 }
 0x84b   :  { %v1955_v56 = vsel %vm182_vm0, %v1949_v16, 0.0 }
 0x84c   :  { %2181 = vmax.xlane.f32.xlu0 %v2180_v58  ;;  %1956 = vadd.xlane.f32.xlu1 %v1955_v56 }
 0x852   :  { %v1757_v22 = vpop.xlane.xlu2 %1756 }
 0x853   :  { %v1788_v6 = vadd.f32 %v1772_v46, %v1757_v22 }
 0x855   :  { %vm1790_vm15 = vcmp.gt.f32.partialorder %v1788_v6, 0.0  ;;  %v1792_v44 = vmul.f32 0.2, %v1788_v6 }
 0x857   :  { %v1794_v21 = vsel %vm1790_vm15, %v1788_v6, %v1792_v44 }
 0x858   :  { %v1796_v9 = vadd.f32 %v3201_v39, %v1794_v21 }
 0x85a   :  { %v1798_v13 = vsel %vm235_vm2, %v1796_v9, -inf  ;;  %v1769_v47 = vpop.xlane.xlu2 %1768 }
 0x85b   :  { %1799 = vmax.xlane.f32.xlu1 %v1798_v13  ;;  %v1773_v1 = vperm.slane %v1769_v47, %v3192_v27 }
 0x862   :  { %v2142_v24 = vpop.xlane.xlu2 %2141 }
 0x875   :  { %v1760_v34 = vpop.xlane.xlu1 %1759 }
 0x876   :  { %v1789_v57 = vadd.f32 %v1773_v1, %v1760_v34 }
 0x878   :  { %vm1791_vm1 = vcmp.gt.f32.partialorder %v1789_v57, 0.0  ;;  %v1793_v49 = vmul.f32 0.2, %v1789_v57 }
 0x87a   :  { %v1795_v28 = vsel %vm1791_vm1, %v1789_v57, %v1793_v49 }
 0x87b   :  { %v1797_v20 = vadd.f32 %v3208_v52, %v1795_v28 }
 0x87d   :  { %v2151_v17 = vpop.xlane.xlu1 %2150  ;;  %v1801_v50 = vsel %vm235_vm2, %v1797_v20, -inf }
 0x87e   :  { %v2155_v15 = vperm.slane %v2151_v17, %v3192_v27  ;;  %1802 = vmax.xlane.f32.xlu0 %v1801_v50 }
 0x880   :  { %v2171_v53 = vadd.f32 %v2155_v15, %v2142_v24 }
 0x882   :  { %v2175_v32 = vmul.f32 0.2, %v2171_v53  ;;  %vm2173_vm3 = vcmp.gt.f32.partialorder %v2171_v53, 0.0 }
 0x884   :  { %v2177_v26 = vsel %vm2173_vm3, %v2171_v53, %v2175_v32 }
 0x885   :  { %v1975_v3 = vpop.xlane.xlu1 %1974  ;;  %v2179_v18 = vadd.f32 %v3208_v52, %v2177_v26  ;;  %v1954_v55 = vpop.xlane.xlu2 %1953 }
 0x886   :  { %v1981_v14 = vperm.slane %v1975_v3, %v3192_v27 }
 0x887   :  { %v2183_v62 = vsel %vm235_vm2, %v2179_v18, -inf }
 0x888   :  { %v1997_v38 = vadd.f32 %v1981_v14, %v1954_v55  ;;  %2184 = vmax.xlane.f32.xlu2 %v2183_v62 }
 0x88a   :  { %v2001_v43 = vmul.f32 0.2, %v1997_v38  ;;  %vm1999_vm4 = vcmp.gt.f32.partialorder %v1997_v38, 0.0 }
 0x88c   :  { %v2003_v2 = vsel %vm1999_vm4, %v1997_v38, %v2001_v43 }
 0x88d   :  { %v2005_v25 = vadd.f32 %v3201_v39, %v2003_v2 }
 0x88f   :  { %v2007_v54 = vsel %vm235_vm2, %v2005_v25, -inf }
 0x890   :  { %2008 = vmax.xlane.f32.xlu1 %v2007_v54 }
 0x8b7   :  { %v1978_v23 = vpop.xlane.xlu0 %1977 }
 0x8b8   :  { %v1982_v29 = vperm.slane %v1978_v23, %v3192_v27 }
 0x8bf   :  { %v1957_v30 = vpop.xlane.xlu1 %1956  ;;  %v2182_v11 = vpop.xlane.xlu0 %2181 }
 0x8c0   :  { %v1998_v31 = vadd.f32 %v1982_v29, %v1957_v30  ;;  %v2186_v39 = vsub.f32 %v2178_v61, %v2182_v11 }
 0x8c2   :  { %vm2000_vm5 = vcmp.gt.f32.partialorder %v1998_v31, 0.0  ;;  %v2002_v8 = vmul.f32 0.2, %v1998_v31  ;;  %v2188_v56 = vmul.f32 1.442695, %v2186_v39 }
 0x8c4   :  { %v2004_v41 = vsel %vm2000_vm5, %v1998_v31, %v2002_v8 }
 0x8c5   :  { %v2006_v10 = vadd.f32 %v3208_v52, %v2004_v41  ;;  %v1830_v41 = vperm.slane %v3965_v5, 0 }
 0x8c7   :  { %v2010_v0 = vsel %vm235_vm2, %v2006_v10, -inf }
 0x8c8   :  { %2011 = vmax.xlane.f32.xlu1 %v2010_v0 }
 0x8ce   :  { %v1800_v35 = vpop.xlane.xlu1 %1799 }
 0x8cf   :  { %v1804_v12 = vsub.f32 %v1796_v9, %v1800_v35 }
 0x8d1   :  { %v1806_v16 = vmul.f32 1.442695, %v1804_v12 }
 0x8d3   :  { %2913 = vpow2.f32 %v1806_v16 }
 0x8d4   :  { %2915 = vpow2.f32 %v2188_v56 }
 0x8d9   :  { %v2914_v58 = vpop.eup %2913 }
 0x8da   :  { %v1810_v27 = vsel %vm235_vm2, %v2914_v58, 0.0  ;;  %v2916_v45 = vpop.eup %2915 }
 0x8db   :  { %1811 = vadd.xlane.f32.xlu2 %v1810_v27  ;;  %v2192_v46 = vsel %vm235_vm2, %v2916_v45, 0.0 }
 0x8e3   :  { %2193 = vadd.xlane.f32.xlu2 %v2192_v46 }
 0x8f1   :  { %v1803_v52 = vpop.xlane.xlu0 %1802 }
 0x8f2   :  { %v1805_v22 = vsub.f32 %v1797_v20, %v1803_v52 }
 0x8f4   :  { %v1808_v6 = vmul.f32 1.442695, %v1805_v22 }
 0x8f6   :  { %2917 = vpow2.f32 %v1808_v6 }
 0x8fb   :  { %v2185_v44 = vpop.xlane.xlu2 %2184 }
 0x8fc   :  { %v2918_v21 = vpop.eup %2917  ;;  %v2187_v9 = vsub.f32 %v2179_v18, %v2185_v44 }
 0x8fd   :  { %v1813_v61 = vsel %vm235_vm2, %v2918_v21, 0.0 }
 0x8fe   :  { %v2190_v13 = vmul.f32 1.442695, %v2187_v9  ;;  %1814 = vadd.xlane.f32.xlu1 %v1813_v61  ;;  %v1886_v61 = vperm.slane %v3965_v5, 4 }
 0x900   :  { %2919 = vpow2.f32 %v2190_v13 }
 0x903   :  { %v2009_v47 = vpop.xlane.xlu1 %2008 }
 0x904   :  { %v2013_v1 = vsub.f32 %v2005_v25, %v2009_v47 }
 0x906   :  { %v4026_v34 = vpop.eup %2919  ;;  %v2015_v57 = vmul.f32 1.442695, %v2013_v1  ;;  %v1845_v1 = vperm.slane %v3980_v63, 1 }
 0x907   :  { %v2195_v49 = vsel %vm235_vm2, %v4026_v34, 0.0 }
 0x908   :  { %2921 = vpow2.f32 %v2015_v57  ;;  %2196 = vadd.xlane.f32.xlu0 %v2195_v49 }
 0x90e   :  { %v2922_v28 = vpop.eup %2921 }
 0x90f   :  { %v2019_v20 = vsel %vm235_vm2, %v2922_v28, 0.0 }
 0x910   :  { %2020 = vadd.xlane.f32.xlu1 %v2019_v20 }
 0x93b   :  { %v2012_v17 = vpop.xlane.xlu1 %2011 }
 0x93c   :  { %v2014_v50 = vsub.f32 %v2006_v10, %v2012_v17  ;;  %v1844_v10 = vperm.slane %v3965_v5, 1 }
 0x93e   :  { %v2017_v15 = vmul.f32 1.442695, %v2014_v50 }
 0x940   :  { %2923 = vpow2.f32 %v2017_v15  ;;  %v2212_v15 = vperm.slane %v3967_v60, 0 }
 0x946   :  { %v4031_v24 = vpop.eup %2923 }
 0x947   :  { %v2022_v53 = vsel %vm235_vm2, %v4031_v24, 0.0  ;;  %vm204_vm2 = vcmask 1041409  }
 0x948   :  { %2023 = vadd.xlane.f32.xlu2 %v2022_v53 }
 0x94e   :  { %v1812_v32 = vpop.xlane.xlu2 %1811 }
 0x94f   :  { %2925 = vrcp.f32 %v1812_v32 }
 0x955   :  { %v2926_v26 = vpop.eup %2925 }
 0x956   :  { %v4035_v3 = vmul.f32 %v2926_v26, %v2914_v58  ;;  %v2194_v18 = vpop.xlane.xlu2 %2193  ;;  %v1872_v58 = vperm.slane %v3965_v5, 3  ;;  %v1859_v26 = vperm.slane %v3980_v63, 2 }
 0x957   :  { %2927 = vrcp.f32 %v2194_v18  ;;  %v1873_v18 = vperm.slane %v3980_v63, 3 }
 0x958   :  { %1822 = vperm.xlu0 %2816, %v4035_v3   ;;  %1837 = vperm.xlu1 %2817, %v4035_v3  }
 0x95d   :  { %v2928_v14 = vpop.eup %2927 }
 0x95e   :  { %v4049_v62 = vmul.f32 %v2928_v14, %v2916_v45  ;;  %v1858_v45 = vperm.slane %v3965_v5, 2 }
 0x960   :  { %2819 = vset.pattern.permute.xlu0 %v4288_v36  ;;  %2818 = vset.pattern.permute.xlu1 %v4294_v37 }
 0x961   :  { %1921 = vperm.xlu2 %2815, %v4035_v3   ;;  %1865 = vperm.xlu0 %2819, %v4035_v3  }
 0x962   :  { %1851 = vperm.xlu1 %2818, %v4035_v3  }
 0x969   :  { %2821 = vset.pattern.permute.xlu0 %v4287_v19  ;;  %2823 = vset.pattern.permute.xlu2 %v4292_v33 }
 0x96a   :  { %2820 = vset.pattern.permute.xlu1 %v4290_v42  ;;  %1893 = vperm.xlu0 %2821, %v4035_v3  }
 0x96b   :  { %1879 = vperm.xlu1 %2820, %v4035_v3  }
 0x971   :  { %v1815_v55 = vpop.xlane.xlu1 %1814 }
 0x972   :  { %2929 = vrcp.f32 %v1815_v55  ;;  %2825 = vset.pattern.permute.xlu0 %v4294_v37  ;;  %v1887_v55 = vperm.slane %v3980_v63, 4 }
 0x973   :  { %2822 = vset.pattern.permute.xlu1 %v4292_v33 }
 0x974   :  { %2204 = vperm.xlu1 %2822, %v4049_v62  }
 0x978   :  { %v2930_v38 = vpop.eup %2929 }
 0x979   :  { %v1819_v43 = vmul.f32 %v2930_v38, %v2918_v21  ;;  %v1900_v21 = vperm.slane %v3965_v5, 5 }
 0x97b   :  { %1855 = vperm.xlu0 %2825, %v1819_v43   ;;  %1827 = vperm.xlu2 %2823, %v1819_v43   ;;  %v2197_v29 = vpop.xlane.xlu0 %2196 }
 0x97c   :  { %2829 = vset.pattern.permute.xlu1 %v4289_v40 }
 0x97d   :  { %1911 = vperm.xlu1 %2829, %v1819_v43  }
 0x983   :  { %2830 = vset.pattern.permute.xlu0 %v4293_v4  ;;  %2824 = vset.pattern.permute.xlu2 %v4291_v59  ;;  %v2021_v2 = vpop.xlane.xlu1 %2020 }
 0x984   :  { %2931 = vrcp.f32 %v2021_v2  ;;  %1925 = vperm.xlu0 %2830, %v1819_v43   ;;  %1841 = vperm.xlu2 %2824, %v1819_v43  }
 0x985   :  { %2832 = vset.pattern.permute.xlu1 %v4291_v59 }
 0x98a   :  { %v2932_v25 = vpop.eup %2931 }
 0x98b   :  { %v2027_v54 = vmul.f32 %v2932_v25, %v2922_v28 }
 0x98c   :  { %2826 = vset.pattern.permute.xlu2 %v4288_v36  ;;  %2844 = vset.pattern.permute.xlu0 %v4290_v42 }
 0x98d   :  { %1869 = vperm.xlu2 %2826, %v1819_v43   ;;  %2044 = vperm.xlu1 %2832, %v2027_v54  }
 0x995   :  { %2827 = vset.pattern.permute.xlu2 %v4290_v42  ;;  %2833 = vset.pattern.permute.xlu1 %v4294_v37 }
 0x996   :  { %1883 = vperm.xlu2 %2827, %v1819_v43   ;;  %2056 = vperm.xlu1 %2833, %v2027_v54  }
 0x99e   :  { %2828 = vset.pattern.permute.xlu2 %v4287_v19  ;;  %2834 = vset.pattern.permute.xlu1 %v4288_v36 }
 0x99f   :  { %1897 = vperm.xlu2 %2828, %v1819_v43   ;;  %2068 = vperm.xlu1 %2834, %v2027_v54  }
 0x9a7   :  { %2831 = vset.pattern.permute.xlu2 %v4292_v33  ;;  %2835 = vset.pattern.permute.xlu1 %v4290_v42 }
 0x9a8   :  { %2080 = vperm.xlu1 %2835, %v2027_v54   ;;  %2031 = vperm.xlu2 %2831, %v2027_v54  }
 0x9b0   :  { %2836 = vset.pattern.permute.xlu2 %v4287_v19  ;;  %2839 = vset.pattern.permute.xlu1 %v4292_v33 }
 0x9b1   :  { %2092 = vperm.xlu2 %2836, %v2027_v54  }
 0x9b9   :  { %2837 = vset.pattern.permute.xlu2 %v4289_v40 }
 0x9ba   :  { %2104 = vperm.xlu2 %2837, %v2027_v54  }
 0x9bb   :  { %v2024_v23 = vpop.xlane.xlu2 %2023 }
 0x9bc   :  { %2933 = vrcp.f32 %v2024_v23 }
 0x9bd   :  { %2935 = vrcp.f32 %v2197_v29  ;;  %v1901_v29 = vperm.slane %v3980_v63, 5 }
 0x9c2   :  { %v2934_v30 = vpop.eup %2933  ;;  %2838 = vset.pattern.permute.xlu2 %v4293_v4 }
 0x9c3   :  { %v4071_v31 = vmul.f32 %v2934_v30, %v4031_v24  ;;  %2116 = vperm.xlu2 %2838, %v2027_v54   ;;  %v2936_v8 = vpop.eup %2935  ;;  %v4086_v16 = vpop.permute.xlu2 %1921 }
 0x9c4   :  { %v4083_v39 = vmul.f32 %v2936_v8, %v4026_v34  ;;  %v1915_v8 = vperm.slane %v3980_v63, 6 }
 0x9c5   :  { %2084 = vperm.xlu0 %2844, %v4071_v31   ;;  %2036 = vperm.xlu1 %2839, %v4071_v31  }
 0x9ca   :  { %v1823_v0 = vpop.permute.xlu0 %1822  ;;  %v1838_v11 = vpop.permute.xlu1 %1837 }
 0x9cb   :  { %v1832_v35 = vmul.f32 %v1830_v41, %v1823_v0  ;;  %v1846_v12 = vmul.f32 %v1844_v10, %v1838_v11  ;;  %2841 = vset.pattern.permute.xlu2 %v4294_v37 }
 0x9cc   :  { %2060 = vperm.xlu2 %2841, %v4071_v31  }
 0x9cd   :  { %v1848_v56 = vadd.f32 %v1846_v12, %v1832_v35  ;;  %2845 = vset.pattern.permute.xlu0 %v4291_v59  ;;  %2840 = vset.pattern.permute.xlu1 %v4291_v59  ;;  %v1929_v12 = vperm.slane %v3980_v63, 7 }
 0x9ce   :  { %2223 = vperm.xlu0 %2845, %v4083_v39   ;;  %2048 = vperm.xlu1 %2840, %v4071_v31  }
 0x9d3   :  { %v1866_v27 = vpop.permute.xlu0 %1865 }
 0x9d4   :  { %v1874_v46 = vmul.f32 %v1872_v58, %v1866_v27  ;;  %v1852_v52 = vpop.permute.xlu1 %1851  ;;  %2842 = vset.pattern.permute.xlu2 %v4292_v33  ;;  %v1831_v33 = vperm.slane %v3980_v63, 0  ;;  %v2310_v63 = vperm.slane %v3967_v60, 7 }
 0x9d5   :  { %v1860_v22 = vmul.f32 %v1858_v45, %v1852_v52  ;;  %v1828_v6 = vpop.permute.xlu2 %1827  ;;  %2209 = vperm.xlu2 %2842, %v4083_v39  }
 0x9d6   :  { %2853 = vset.pattern.permute.xlu0 %v4290_v42  ;;  %2219 = vperm.xlu1 %2840, %v4049_v62   ;;  %v1833_v49 = vmul.f32 %v1831_v33, %v1828_v6 }
 0x9d7   :  { %v1862_v59 = vadd.f32 %v1860_v22, %v1848_v56  ;;  %2261 = vperm.xlu0 %2853, %v4049_v62  }
 0x9d9   :  { %v1876_v44 = vadd.f32 %v1874_v46, %v1862_v59 }
 0x9dc   :  { %v1894_v9 = vpop.permute.xlu0 %1893 }
 0x9dd   :  { %v1902_v13 = vmul.f32 %v1900_v21, %v1894_v9  ;;  %v1880_v47 = vpop.permute.xlu1 %1879  ;;  %2846 = vset.pattern.permute.xlu2 %v4294_v37 }
 0x9de   :  { %v1888_v34 = vmul.f32 %v1886_v61, %v1880_v47  ;;  %v1842_v57 = vpop.permute.xlu2 %1841  ;;  %2843 = vset.pattern.permute.xlu1 %v4288_v36  ;;  %2233 = vperm.xlu2 %2846, %v4049_v62  }
 0x9df   :  { %v1847_v28 = vmul.f32 %v1845_v1, %v1842_v57  ;;  %2854 = vset.pattern.permute.xlu0 %v4289_v40  ;;  %2072 = vperm.xlu1 %2843, %v4071_v31  }
 0x9e0   :  { %v1890_v20 = vadd.f32 %v1888_v34, %v1876_v44  ;;  %1907 = vperm.xlu0 %2854, %v4035_v3  }
 0x9e1   :  { %v1849_v17 = vadd.f32 %v1847_v28, %v1833_v49 }
 0x9e2   :  { %v4121_v50 = vadd.f32 %v1902_v13, %v1890_v20 }
 0x9e6   :  { %v2205_v24 = vpop.permute.xlu1 %2204  ;;  %2851 = vset.pattern.permute.xlu2 %v4288_v36 }
 0x9e7   :  { %v4125_v53 = vmul.f32 %v2212_v15, %v2205_v24  ;;  %v1870_v32 = vpop.permute.xlu2 %1869  ;;  %2847 = vset.pattern.permute.xlu1 %v4287_v19  ;;  %2247 = vperm.xlu2 %2851, %v4049_v62  }
 0x9e8   :  { %2293 = vperm.xlu0 %2854, %v4083_v39   ;;  %2096 = vperm.xlu1 %2847, %v4071_v31   ;;  %v1875_v38 = vmul.f32 %v1873_v18, %v1870_v32 }
 0x9ed   :  { %v1856_v3 = vpop.permute.xlu0 %1855 }
 0x9ee   :  { %v1861_v14 = vmul.f32 %v1859_v26, %v1856_v3 }
 0x9ef   :  { %2855 = vset.pattern.permute.xlu2 %v4290_v42  ;;  %v1912_v23 = vpop.permute.xlu1 %1911 }
 0x9f0   :  { %v1863_v43 = vadd.f32 %v1861_v14, %v1849_v17  ;;  %v1884_v2 = vpop.permute.xlu2 %1883  ;;  %2848 = vset.pattern.permute.xlu1 %v4289_v40  ;;  %2265 = vperm.xlu2 %2855, %v4083_v39   ;;  %v1917_v35 = vmul.f32 %v1915_v8, %v1912_v23  ;;  %v1928_v17 = vperm.slane %v3965_v5, 7 }
 0x9f1   :  { %v1889_v25 = vmul.f32 %v1887_v55, %v1884_v2  ;;  %2108 = vperm.xlu1 %2848, %v4071_v31   ;;  %2861 = vset.pattern.permute.xlu0 %v4293_v4  ;;  %v2226_v2 = vperm.slane %v3967_v60, 1 }
 0x9f2   :  { %v1877_v54 = vadd.f32 %v1875_v38, %v1863_v43 }
 0x9f4   :  { %v1891_v42 = vadd.f32 %v1889_v25, %v1877_v54  ;;  %v2240_v54 = vperm.slane %v3967_v60, 2 }
 0x9f6   :  { %v1926_v11 = vpop.permute.xlu0 %1925 }
 0x9f7   :  { %v1931_v27 = vmul.f32 %v1929_v12, %v1926_v11 }
 0x9f8   :  { %2857 = vset.pattern.permute.xlu2 %v4287_v19 }
 0x9f9   :  { %v1898_v30 = vpop.permute.xlu2 %1897  ;;  %2849 = vset.pattern.permute.xlu1 %v4293_v4  ;;  %2279 = vperm.xlu2 %2857, %v4083_v39  }
 0x9fa   :  { %v1903_v0 = vmul.f32 %v1901_v29, %v1898_v30  ;;  %2120 = vperm.xlu1 %2849, %v4071_v31   ;;  %v2254_v30 = vperm.slane %v3967_v60, 3 }
 0x9fc   :  { %v1905_v56 = vadd.f32 %v1903_v0, %v1891_v42 }
 0x9fe   :  { %v1919_v46 = vadd.f32 %v1917_v35, %v1905_v56  ;;  %v2268_v56 = vperm.slane %v3967_v60, 4 }
 0x9ff   :  { %v2045_v52 = vpop.permute.xlu1 %2044 }
 0xa00   :  { %v4158_v22 = vadd.f32 %v1931_v27, %v1919_v46 }
 0xa01   :  { %2859 = vset.pattern.permute.xlu2 %v4293_v4 }
 0xa02   :  { %2850 = vset.pattern.permute.xlu1 %v4294_v37  ;;  %2303 = vperm.xlu2 %2859, %v4049_v62   ;;  %v2032_v31 = vpop.permute.xlu2 %2031  ;;  %v2051_v37 = vmul.f32 %v2045_v52, %v1844_v10  ;;  %v1914_v10 = vperm.slane %v3965_v5, 6 }
 0xa03   :  { %2237 = vperm.xlu1 %2850, %v4083_v39   ;;  %v2039_v9 = vmul.f32 %v2032_v31, %v1830_v41 }
 0xa05   :  { %v2053_v34 = vadd.f32 %v2051_v37, %v2039_v9 }
 0xa08   :  { %v2057_v6 = vpop.permute.xlu1 %2056 }
 0xa09   :  { %v2063_v47 = vmul.f32 %v2057_v6, %v1858_v45 }
 0xa0b   :  { %2852 = vset.pattern.permute.xlu1 %v4288_v36  ;;  %v2093_v59 = vpop.permute.xlu2 %2092  ;;  %v2065_v57 = vadd.f32 %v2063_v47, %v2053_v34 }
 0xa0c   :  { %2251 = vperm.xlu1 %2852, %v4083_v39  }
 0xa11   :  { %v2069_v44 = vpop.permute.xlu1 %2068 }
 0xa12   :  { %v2075_v36 = vmul.f32 %v2069_v44, %v1872_v58  ;;  %v1930_v44 = vmul.f32 %v1928_v17, %v4086_v16 }
 0xa14   :  { %2856 = vset.pattern.permute.xlu1 %v4287_v19  ;;  %v2105_v13 = vpop.permute.xlu2 %2104  ;;  %v2077_v28 = vadd.f32 %v2075_v36, %v2065_v57  ;;  %v2099_v19 = vmul.f32 %v2093_v59, %v1900_v21 }
 0xa15   :  { %2275 = vperm.xlu1 %2856, %v4049_v62   ;;  %v2111_v58 = vmul.f32 %v2105_v13, %v1914_v10 }
 0xa1a   :  { %v2081_v49 = vpop.permute.xlu1 %2080 }
 0xa1b   :  { %v2087_v41 = vmul.f32 %v2081_v49, %v1886_v61 }
 0xa1d   :  { %v2089_v20 = vadd.f32 %v2087_v41, %v2077_v28  ;;  %2858 = vset.pattern.permute.xlu1 %v4289_v40  ;;  %v2117_v45 = vpop.permute.xlu2 %2116 }
 0xa1e   :  { %2289 = vperm.xlu1 %2858, %v4049_v62   ;;  %v2123_v32 = vmul.f32 %v2117_v45, %v1928_v17 }
 0xa1f   :  { %v2101_v15 = vadd.f32 %v2099_v19, %v2089_v20 }
 0xa21   :  { %v2113_v24 = vadd.f32 %v2111_v58, %v2101_v15 }
 0xa23   :  { %v2125_v3 = vadd.f32 %v2123_v32, %v2113_v24 }
 0xa25   :  { %v2132_v61 = vadd.f32 %v3996_v51, %v2125_v3 }
 0xa26   :  { %2860 = vset.pattern.permute.xlu1 %v4293_v4  ;;  %v2061_v21 = vpop.permute.xlu2 %2060 }
 0xa27   :  { %2307 = vperm.xlu1 %2860, %v4083_v39   ;;  %2321 = vrot.lane.b32.xlu2 %v2132_v61, %s2994_s29  ;;  %v2064_v36 = vmul.f32 %v2061_v21, %v1859_v26  ;;  %v2296_v61 = vperm.slane %v3967_v60, 6 }
 0xa2f   :  { %v4188_v40 = vpop.permute.xlu2 %2209 }
 0xa37   :  { %v2085_v14 = vpop.permute.xlu0 %2084  ;;  %v2037_v62 = vpop.permute.xlu1 %2036 }
 0xa38   :  { %v2234_v38 = vpop.permute.xlu2 %2233 }
 0xa39   :  { %v2242_v39 = vmul.f32 %v2240_v54, %v2234_v38 }
 0xa40   :  { %v4190_v5 = vpop.permute.xlu0 %2223  ;;  %v2049_v43 = vpop.permute.xlu1 %2048 }
 0xa41   :  { %v2248_v23 = vpop.permute.xlu2 %2247  ;;  %v2052_v47 = vmul.f32 %v2049_v43, %v1845_v1 }
 0xa42   :  { %v2256_v11 = vmul.f32 %v2254_v30, %v2248_v23  ;;  %v2227_v23 = vperm.slane %v3990_v7, 1  ;;  %v2241_v30 = vperm.slane %v3990_v7, 2 }
 0xa48   :  { %v2220_v25 = vpop.permute.xlu1 %2219 }
 0xa49   :  { %v2228_v42 = vmul.f32 %v2226_v2, %v2220_v25  ;;  %v2262_v4 = vpop.permute.xlu0 %2261 }
 0xa4a   :  { %v2270_v46 = vmul.f32 %v2268_v56, %v2262_v4 }
 0xa4b   :  { %v2230_v0 = vadd.f32 %v2228_v42, %v4125_v53  ;;  %v2040_v53 = vmul.f32 %v2037_v62, %v1831_v33  ;;  %v2864_v62 = vld [vmem:[%s4245_s5 + $0x28] ss:$0 sm:$0xff]  ;;  %s3003_s5 = smov [#allocation5]  }
 0xa4c   :  { %s2360_s0 = sshll.u32 %s3003_s5, 4  ;;  %s2361_s0 = int_to_ptr.vmem [resolvable:$true] %s2360_s0 }
 0xa4d   :  { %v2244_v35 = vadd.f32 %v2242_v39, %v2230_v0  ;;  %v2054_v34 = vadd.f32 %v2052_v47, %v2040_v53  ;;  %v2213_v39 = vperm.slane %v3990_v7, 0  ;;  %v2311_v47 = vperm.slane %v3990_v7, 7 }
 0xa4f   :  { %v2258_v27 = vadd.f32 %v2256_v11, %v2244_v35  ;;  %v2066_v49 = vadd.f32 %v2064_v36, %v2054_v34  ;;  %v2255_v11 = vperm.slane %v3990_v7, 3 }
 0xa51   :  { %v2272_v52 = vadd.f32 %v2270_v46, %v2258_v27  ;;  %v2073_v31 = vpop.permute.xlu1 %2072  ;;  %v2269_v46 = vperm.slane %v3990_v7, 4 }
 0xa52   :  { %v1908_v6 = vpop.permute.xlu0 %1907  ;;  %v2076_v57 = vmul.f32 %v2073_v31, %v1873_v18 }
 0xa53   :  { %v1916_v59 = vmul.f32 %v1914_v10, %v1908_v6  ;;  %v2283_v6 = vperm.slane %v3990_v7, 5 }
 0xa54   :  { %v2078_v16 = vadd.f32 %v2076_v57, %v2066_v49 }
 0xa55   :  { %v1918_v9 = vadd.f32 %v1916_v59, %v4121_v50  ;;  %v2088_v50 = vmul.f32 %v2085_v14, %v1887_v55  ;;  %v2266_v55 = vpop.permute.xlu2 %2265 }
 0xa56   :  { %v2271_v31 = vmul.f32 %v2269_v46, %v2266_v55 }
 0xa57   :  { %v1932_v13 = vadd.f32 %v1930_v44, %v1918_v9  ;;  %v2090_v1 = vadd.f32 %v2088_v50, %v2078_v16 }
 0xa5a   :  { %v2097_v37 = vpop.permute.xlu1 %2096 }
 0xa5b   :  { %v2100_v41 = vmul.f32 %v2097_v37, %v1901_v29  ;;  %v2282_v29 = vperm.slane %v3967_v60, 5  ;;  %v2229_v60 = vmul.f32 %v2227_v23, %v4190_v5  ;;  %v2294_v5 = vpop.permute.xlu0 %2293  ;;  %v2297_v37 = vperm.slane %v3990_v7, 6 }
 0xa5d   :  { %v2102_v19 = vadd.f32 %v2100_v41, %v2090_v1  ;;  %v2280_v15 = vpop.permute.xlu2 %2279  ;;  %v2299_v53 = vmul.f32 %v2297_v37, %v2294_v5 }
 0xa5e   :  { %v2285_v44 = vmul.f32 %v2283_v6, %v2280_v15 }
 0xa63   :  { %v2109_v28 = vpop.permute.xlu1 %2108 }
 0xa64   :  { %v2112_v33 = vmul.f32 %v2109_v28, %v1915_v8 }
 0xa65   :  { %v2304_v3 = vpop.permute.xlu2 %2303 }
 0xa66   :  { %v2114_v20 = vadd.f32 %v2112_v33, %v2102_v19  ;;  %v2312_v14 = vmul.f32 %v2310_v63, %v2304_v3 }
 0xa6c   :  { %v2121_v10 = vpop.permute.xlu1 %2120 }
 0xa6d   :  { %v2124_v26 = vmul.f32 %v2121_v10, %v1929_v12 }
 0xa6f   :  { %v2126_v18 = vadd.f32 %v2124_v26, %v2114_v20 }
 0xa71   :  { %v2133_v45 = vadd.f32 %v3996_v51, %v2126_v18  ;;  %v1934_v51 = vperm.slane %v3917_v48, 6  ;;  %v2215_v48 = vmul.f32 %v2213_v39, %v4188_v40 }
 0xa73   :  { %2323 = vrot.lane.b32.xlu1 %v2133_v45, %s2994_s29  ;;  %v1935_v2 = vadd.f32 %v1934_v51, %v1932_v13  ;;  %v2231_v35 = vadd.f32 %v2229_v60, %v2215_v48  ;;  %v1936_v16 = vadd.f32 %v1934_v51, %v4158_v22 }
 0xa75   :  { %v2238_v17 = vpop.permute.xlu1 %2237 }
 0xa76   :  { %v2243_v0 = vmul.f32 %v2241_v30, %v2238_v17 }
 0xa78   :  { %v2245_v27 = vadd.f32 %v2243_v0, %v2231_v35 }
 0xa7e   :  { %v2252_v58 = vpop.permute.xlu1 %2251 }
 0xa7f   :  { %v2257_v56 = vmul.f32 %v2255_v11, %v2252_v58 }
 0xa81   :  { %v2322_v43 = vpop.permute.xlu2 %2321 }
 0xa82   :  { %v2327_v54 = vadd.f32 %v2322_v43, %v1935_v2 }
 0xa87   :  { %v2276_v24 = vpop.permute.xlu1 %2275 }
 0xa88   :  { %v2284_v32 = vmul.f32 %v2282_v29, %v2276_v24 }
 0xa8a   :  { %v2286_v8 = vadd.f32 %v2284_v32, %v2272_v52  ;;  %v2259_v52 = vadd.f32 %v2257_v56, %v2245_v27 }
 0xa8c   :  { %v2273_v59 = vadd.f32 %v2271_v31, %v2259_v52 }
 0xa8e   :  { %v2287_v40 = vadd.f32 %v2285_v44, %v2273_v59 }
 0xa90   :  { %v2290_v21 = vpop.permute.xlu1 %2289  ;;  %v2301_v57 = vadd.f32 %v2299_v53, %v2287_v40 }
 0xa91   :  { %v2298_v12 = vmul.f32 %v2296_v61, %v2290_v21 }
 0xa93   :  { %v2300_v38 = vadd.f32 %v2298_v12, %v2286_v8 }
 0xa95   :  { %v2314_v25 = vadd.f32 %v2312_v14, %v2300_v38 }
 0xa97   :  { %v2317_v42 = vadd.f32 %v2864_v62, %v2314_v25 }
 0xa99   :  { %v2329_v4 = vadd.f32 %v2327_v54, %v2317_v42  ;;  %v2308_v13 = vpop.permute.xlu1 %2307 }
 0xa9a   :  { %v2313_v36 = vmul.f32 %v2311_v47, %v2308_v13 }
 0xa9b   :  { %v2331_v9 = vmul.f32 0.33333334, %v2329_v4 }
 0xa9c   :  { %v2315_v28 = vadd.f32 %v2313_v36, %v2301_v57 }
 0xa9d   :  { %v2333_v34 = vmax.f32 %v2331_v9, 0.0 }
 0xa9e   :  { %v2318_v1 = vadd.f32 %v2864_v62, %v2315_v28 }
 0xa9f   :  { %v2335_v49 = vsel %vm182_vm0, %v2333_v34, -inf }
 0xaa0   :  { %v2336_v50 = vrot.slane %v2335_v49, 4 }
 0xaa2   :  { %v2337_v10 = vmax.f32 %v2335_v49, %v2336_v50 }
 0xaa4   :  { %v2338_v18 = vrot.slane %v2337_v10, 2 }
 0xaa6   :  { %v2339_v55 = vmax.f32 %v2337_v10, %v2338_v18 }
 0xaa8   :  { %v2340_v29 = vrot.slane %v2339_v55, 1 }
 0xaaa   :  { %v2341_v22 = vmax.f32 %v2339_v55, %v2340_v29 }
 0xae5   :  { %v2324_v41 = vpop.permute.xlu1 %2323 }
 0xae6   :  { %v2328_v33 = vadd.f32 %v2324_v41, %v1936_v16 }
 0xae8   :  { %v2330_v19 = vadd.f32 %v2328_v33, %v2318_v1 }
 0xaea   :  { %v2332_v20 = vmul.f32 0.33333334, %v2330_v19 }
 0xaec   :  { %v2334_v26 = vmax.f32 %v2332_v20, 0.0 }
 0xaee   :  { %v2342_v7 = vsel %vm182_vm0, %v2334_v26, -inf }
 0xaef   :  { %v2343_v45 = vrot.slane %v2342_v7, 4 }
 0xaf1   :  { %v2344_v17 = vmax.f32 %v2342_v7, %v2343_v45 }
 0xaf3   :  { %v2345_v58 = vrot.slane %v2344_v17, 2 }
 0xaf5   :  { %v2346_v15 = vmax.f32 %v2344_v17, %v2345_v58 }
 0xaf7   :  { %v2347_v24 = vrot.slane %v2346_v15, 1 }
 0xaf9   :  { %v2348_v32 = vmax.f32 %v2346_v15, %v2347_v24 }
 0xafb   :  { %v2351_v8 = vsel %vm204_vm2, %v2348_v32, %v2341_v22 }
 0xafc   :  { %2354 = vst.msk [vmem:[#allocation5] sm:$0x3] %vm2353_vm6, %v2351_v8 }
 0xafd   :  { %2365 = dma.vmem_to_hbm [thread:$0]  %s2361_s0, 32, %s2363_s25, [#allocation4]  }
 0xafe   :  { %2989 = dma.done.wait [#allocation4], 32  }
 0xaff   :  { %2990 = vsyncadd [#allocation4], 4294967264 }
 0xb00   :  { %2370 = vsyncpa [#allocation3], 1 }
 0xb01   :  { %2371 = vsyncpa [#allocation4], 1 }

</bundles_post_ra>
